<compile_context>
chip_gen: v6e
topology: v6e:2x2x1
jax: 0.10.0
libtpu: 0.0.40
codegen_flags: <defaults>
</compile_context>

<pallas_src>
import math
import jax
import jax.numpy as jnp
from jax import lax
from jax.experimental import pallas as pl
from jax.experimental.pallas import tpu as pltpu

LANE = 128  # TPU vreg lane width


# ----------------------------------------------------------------------------
# Glue: sinusoidal timestep embedding (plain JAX, tiny elementwise op)
# ----------------------------------------------------------------------------
def timestep_embedding(timesteps, dim, max_period=10000.0):
    half = dim // 2
    freqs = jnp.exp(
        -math.log(max_period) * jnp.arange(half, dtype=jnp.float32) / half
    )
    args = timesteps.astype(jnp.float32)[:, None] * freqs[None, :]
    emb = jnp.concatenate([jnp.cos(args), jnp.sin(args)], axis=-1)
    if dim % 2:
        emb = jnp.concatenate([emb, jnp.zeros_like(emb[:, :1])], axis=-1)
    return emb


def _sigmoid(v):  # used only by the pure-JAX reference
    return 1.0 / (1.0 + jnp.exp(-v))


def _pad_last(a, to):
    pad = to - a.shape[-1]
    if pad <= 0:
        return a
    cfg = [(0, 0)] * (a.ndim - 1) + [(0, pad)]
    return jnp.pad(a, cfg)


def _round_up_lane(n):
    return max(LANE, ((n + LANE - 1) // LANE) * LANE)


# ----------------------------------------------------------------------------
# Pallas kernel: time-embed MLP + broadcast add + LayerNorm + 3-layer GRU
# ----------------------------------------------------------------------------
def make_kernel(N, L, D, DP, num_layers, eps=1e-6):
    f32 = jnp.float32
    bf16 = jnp.bfloat16
    inv_d = 1.0 / D

    def kernel(x_ref, tsin_ref, tw1_ref, tb1_ref, tw2_ref, tb2_ref,
               gamma_ref, beta_ref, wih_ref, whh_ref, bx_ref, bhn_ref,
               out_ref):
        # ---- time_embed: Linear -> SiLU -> Linear (bf16 MXU, f32 accum) ----
        tsin = tsin_ref[...].astype(bf16)                                  # [N, HtP]
        h1 = jnp.dot(tsin, tw1_ref[...], preferred_element_type=f32) + tb1_ref[...]
        h1 = h1 * lax.logistic(h1)                                         # SiLU
        emb_t = (jnp.dot(h1.astype(bf16), tw2_ref[...],
                         preferred_element_type=f32) + tb2_ref[...])       # [N, DP]

        # ---- emb_inputs = x + emb_t[:, None, :]; LayerNorm(eps=1e-6) -------
        # x / emb_t pad lanes are exact zeros, so sums over DP == sums over D.
        x = x_ref[...].astype(f32)                                         # [N, L, DP]
        emb = x + emb_t[:, None, :]
        mean = jnp.sum(emb, axis=-1, keepdims=True) * inv_d
        msq = jnp.sum(emb * emb, axis=-1, keepdims=True) * inv_d
        var = msq - mean * mean                                            # single pass
        cur = (emb - mean) * lax.rsqrt(var + eps)
        # gamma/beta pad lanes are zero -> pad lanes of `cur` are exactly zero.
        cur = cur * gamma_ref[...][None, :, :] + beta_ref[...][None, :, :]  # [N, L, DP]

        # ---- stacked GRU (scan over axis 0, recurrent batch = axis 1) ------
        for layer in range(num_layers):
            wih = wih_ref[layer]        # [DP, 3*DP] bf16, fused gates (r | z | n)
            whh = whh_ref[layer]        # [DP, 3*DP] bf16
            bx = bx_ref[layer]          # [1, 3*DP]  f32 (b_ir+b_hr | b_iz+b_hz | b_in)
            bhn = bhn_ref[layer]        # [L, DP]    f32, pre-broadcast (hoisted)

            # Hoisted input projection: one wide bf16 matmul for all timesteps.
            xp = jnp.dot(cur.reshape(N * L, DP).astype(bf16), wih,
                         preferred_element_type=f32) + bx                  # [N*L, 3*DP]

            hs = []
            h = jnp.zeros((L, DP), f32)
            for t in range(N):          # static unroll of the recurrence (N tiny)
                gx = xp[t * L:(t + 1) * L, :]                              # [L, 3*DP]
                if t == 0:
                    # h == 0  ->  h @ W_hh is exactly zero; skip the matmul.
                    r = lax.logistic(gx[:, 0:DP])
                    z = lax.logistic(gx[:, DP:2 * DP])
                    n = jnp.tanh(gx[:, 2 * DP:3 * DP] + r * bhn)
                    h = (1.0 - z) * n
                else:
                    hp = jnp.dot(h.astype(bf16), whh,
                                 preferred_element_type=f32)               # [L, 3*DP]
                    r = lax.logistic(gx[:, 0:DP] + hp[:, 0:DP])
                    z = lax.logistic(gx[:, DP:2 * DP] + hp[:, DP:2 * DP])
                    n = jnp.tanh(gx[:, 2 * DP:3 * DP]
                                 + r * (hp[:, 2 * DP:3 * DP] + bhn))
                    h = (1.0 - z) * n + z * h
                hs.append(h)

            # Layer output stays an SSA value (no VMEM scratch round-trip).
            cur = jnp.stack(hs, axis=0)                                    # [N, L, DP]

        # Single lane-dense store (last dim DP is a multiple of 128).
        out_ref[...] = cur.astype(out_ref.dtype)

    return kernel


# ----------------------------------------------------------------------------
# Wrapper: fuse GRU parameters to a gate-padded lane-dense layout, call kernel
# ----------------------------------------------------------------------------
def fuse_gru_params(params, L, DP):
    wih, whh = params["wih"], params["whh"]          # [nl, 3, Din, D] / [nl, 3, D, D]
    bih, bhh = params["bih"], params["bhh"]          # [nl, 3, 1, D]
    nl = wih.shape[0]

    def pad_w(w):                                    # [nl, 3, in, out] -> [nl, DP, 3*DP]
        w = jnp.pad(w, ((0, 0), (0, 0),
                        (0, DP - w.shape[2]), (0, DP - w.shape[3])))
        return jnp.transpose(w, (0, 2, 1, 3)).reshape(nl, DP, 3 * DP)

    def pad_b(b):                                    # [nl, 1, D] -> [nl, 1, DP]
        return _pad_last(b, DP)

    wih_cat = pad_w(wih).astype(jnp.bfloat16)        # bf16 MXU operands
    whh_cat = pad_w(whh).astype(jnp.bfloat16)
    # r/z biases pre-folded; b_in stays in the n column, b_hn kept separate
    # (it lives inside r * (W_hn h + b_hn)).
    bx_cat = jnp.concatenate([pad_b(bih[:, 0] + bhh[:, 0]),
                              pad_b(bih[:, 1] + bhh[:, 1]),
                              pad_b(bih[:, 2])], axis=-1)        # [nl, 1, 3*DP]
    # Hoist the b_hn broadcast out of the unrolled recurrence (done once, here).
    bhn = jnp.broadcast_to(pad_b(bhh[:, 2]), (nl, L, DP))        # [nl, L, DP]
    return wih_cat, whh_cat, bx_cat, bhn


def gru_net_forward(x, timesteps, params, hidden_t_dim, num_layers=3):
    N, L, D = x.shape
    DP = _round_up_lane(D)                 # per-gate lane padding (128 here)
    HtP = _round_up_lane(hidden_t_dim)

    tsin = _pad_last(timestep_embedding(timesteps, hidden_t_dim), HtP)   # [N, HtP]
    x_pad = _pad_last(x, DP)                                             # [N, L, DP]

    tw1 = jnp.pad(params["tw1"],
                  ((0, HtP - hidden_t_dim), (0, 0))).astype(jnp.bfloat16)  # [HtP, 4Ht]
    tb1 = params["tb1"]                                                    # [1, 4Ht]
    tw2 = _pad_last(params["tw2"], DP).astype(jnp.bfloat16)                # [4Ht, DP]
    tb2 = _pad_last(params["tb2"], DP)                                     # [1, DP]
    gamma = _pad_last(params["gamma"], DP)   # zero pad lanes (keeps padding at 0)
    beta = _pad_last(params["beta"], DP)

    wih_cat, whh_cat, bx_cat, bhn = fuse_gru_params(params, L, DP)

    args = (x_pad, tsin, tw1, tb1, tw2, tb2, gamma, beta,
            wih_cat, whh_cat, bx_cat, bhn)

    in_specs = [pl.BlockSpec(a.shape, lambda i, nd=a.ndim: (0,) * nd)
                for a in args]

    out = pl.pallas_call(
        make_kernel(N, L, D, DP, num_layers),
        out_shape=jax.ShapeDtypeStruct((N, L, DP), x.dtype),
        grid=(1,),
        in_specs=in_specs,
        out_specs=pl.BlockSpec((N, L, DP), lambda i: (0, 0, 0)),
        compiler_params=pltpu.CompilerParams(
            dimension_semantics=("arbitrary",)),
    )(*args)
    # Pad lanes are exact zeros; dropping them is wrapper-side layout plumbing.
    return out[..., :D]


# ----------------------------------------------------------------------------
# Deterministic parameter init (weights stored [in, out] so x @ W applies)
# ----------------------------------------------------------------------------
def init_params(key, input_dims, hidden_dims, hidden_t_dim, num_layers):
    D, Ht = hidden_dims, hidden_t_dim
    T4 = 4 * Ht
    ks = jax.random.split(key, 10)
    s = 0.1
    p = {
        "tw1": s * jax.random.normal(ks[0], (Ht, T4), jnp.float32),
        "tb1": s * jax.random.normal(ks[1], (1, T4), jnp.float32),
        "tw2": s * jax.random.normal(ks[2], (T4, D), jnp.float32),
        "tb2": s * jax.random.normal(ks[3], (1, D), jnp.float32),
        "gamma": 1.0 + 0.05 * jax.random.normal(ks[4], (1, D), jnp.float32),
        "beta": 0.05 * jax.random.normal(ks[5], (1, D), jnp.float32),
        # GRU gate order matches PyTorch: (r, z, n)
        "wih": s * jax.random.normal(ks[6], (num_layers, 3, input_dims, D), jnp.float32),
        "whh": s * jax.random.normal(ks[7], (num_layers, 3, D, D), jnp.float32),
        "bih": s * jax.random.normal(ks[8], (num_layers, 3, 1, D), jnp.float32),
        "bhh": s * jax.random.normal(ks[9], (num_layers, 3, 1, D), jnp.float32),
    }
    return p


# ----------------------------------------------------------------------------
# Pure-JAX reference (mirrors PyTorch f32 semantics) for correctness check
# ----------------------------------------------------------------------------
def reference_forward(x, timesteps, params, hidden_t_dim, num_layers, eps=1e-6):
    tsin = timestep_embedding(timesteps, hidden_t_dim)
    h1 = tsin @ params["tw1"] + params["tb1"]
    h1 = h1 * _sigmoid(h1)
    emb_t = h1 @ params["tw2"] + params["tb2"]
    emb = x + emb_t[:, None, :]
    mean = emb.mean(-1, keepdims=True)
    var = ((emb - mean) ** 2).mean(-1, keepdims=True)
    cur = (emb - mean) / jnp.sqrt(var + eps) * params["gamma"][0] + params["beta"][0]
    N, L, D = x.shape
    for l in range(num_layers):
        h = jnp.zeros((L, D), jnp.float32)
        outs = []
        for t in range(N):
            xt = cur[t]
            r = _sigmoid(xt @ params["wih"][l, 0] + params["bih"][l, 0, 0]
                         + h @ params["whh"][l, 0] + params["bhh"][l, 0, 0])
            z = _sigmoid(xt @ params["wih"][l, 1] + params["bih"][l, 1, 0]
                         + h @ params["whh"][l, 1] + params["bhh"][l, 1, 0])
            n = jnp.tanh(xt @ params["wih"][l, 2] + params["bih"][l, 2, 0]
                         + r * (h @ params["whh"][l, 2] + params["bhh"][l, 2, 0]))
            h = (1.0 - z) * n + z * h
            outs.append(h)
        cur = jnp.stack(outs, axis=0)
    return cur.astype(x.dtype)


if __name__ == "__main__":
    N, L = 4, 16                      # batch (GRU scan axis), seq_len (GRU batch)
    input_dims = hidden_dims = output_dims = 32
    hidden_t_dim = 32
    num_layers = 3

    key = jax.random.PRNGKey(0)
    kx, kt, kp = jax.random.split(key, 3)
    x = jax.random.normal(kx, (N, L, input_dims), jnp.float32)
    timesteps = jax.random.randint(kt, (N,), 0, 1000)

    params = init_params(kp, input_dims, hidden_dims, hidden_t_dim, num_layers)

    out = gru_net_forward(x, timesteps, params, hidden_t_dim, num_layers)
    out = jax.block_until_ready(out)

    ref = reference_forward(x, timesteps, params, hidden_t_dim, num_layers)
    assert out.shape == (N, L, output_dims) and out.dtype == x.dtype
    max_err = float(jnp.max(jnp.abs(out - ref)))
    # Kernel uses bf16 MXU operands (per perf review) with f32 accumulation;
    # tolerance vs the pure-f32 reference is widened accordingly.
    assert jnp.allclose(out, ref, atol=2e-2, rtol=2e-2), max_err
    print("KERNEL_OK")
</pallas_src>

<mosaic_0001>
module attributes {stable_mosaic.version = 11 : i64} {
  func.func @kernel(%arg0: i32, %arg1: memref<4x16x128xf32, #tpu.memory_space<vmem>>, %arg2: memref<4x128xf32, #tpu.memory_space<vmem>>, %arg3: memref<128x128xbf16, #tpu.memory_space<vmem>>, %arg4: memref<1x128xf32, #tpu.memory_space<vmem>>, %arg5: memref<128x128xbf16, #tpu.memory_space<vmem>>, %arg6: memref<1x128xf32, #tpu.memory_space<vmem>>, %arg7: memref<1x128xf32, #tpu.memory_space<vmem>>, %arg8: memref<1x128xf32, #tpu.memory_space<vmem>>, %arg9: memref<3x128x384xbf16, #tpu.memory_space<vmem>>, %arg10: memref<3x128x384xbf16, #tpu.memory_space<vmem>>, %arg11: memref<3x1x384xf32, #tpu.memory_space<vmem>>, %arg12: memref<3x16x128xf32, #tpu.memory_space<vmem>>, %arg13: memref<4x16x128xf32, #tpu.memory_space<vmem>>) attributes {dimension_semantics = [#tpu.dimension_semantics<arbitrary>], iteration_bounds = array<i64: 1>, scalar_prefetch = 0 : i64, scratch_operands = 0 : i64, tpu.core_type = #tpu.core_type<tc>, window_params = [{pipeline_mode = #tpu.pipeline_mode<synchronous>, transform_indices = @transform_0, window_bounds = array<i64: 4, 16, 128>}, {pipeline_mode = #tpu.pipeline_mode<synchronous>, transform_indices = @transform_1, window_bounds = array<i64: 4, 128>}, {pipeline_mode = #tpu.pipeline_mode<synchronous>, transform_indices = @transform_2, window_bounds = array<i64: 128, 128>}, {pipeline_mode = #tpu.pipeline_mode<synchronous>, transform_indices = @transform_3, window_bounds = array<i64: 1, 128>}, {pipeline_mode = #tpu.pipeline_mode<synchronous>, transform_indices = @transform_4, window_bounds = array<i64: 128, 128>}, {pipeline_mode = #tpu.pipeline_mode<synchronous>, transform_indices = @transform_5, window_bounds = array<i64: 1, 128>}, {pipeline_mode = #tpu.pipeline_mode<synchronous>, transform_indices = @transform_6, window_bounds = array<i64: 1, 128>}, {pipeline_mode = #tpu.pipeline_mode<synchronous>, transform_indices = @transform_7, window_bounds = array<i64: 1, 128>}, {pipeline_mode = #tpu.pipeline_mode<synchronous>, transform_indices = @transform_8, window_bounds = array<i64: 3, 128, 384>}, {pipeline_mode = #tpu.pipeline_mode<synchronous>, transform_indices = @transform_9, window_bounds = array<i64: 3, 128, 384>}, {pipeline_mode = #tpu.pipeline_mode<synchronous>, transform_indices = @transform_10, window_bounds = array<i64: 3, 1, 384>}, {pipeline_mode = #tpu.pipeline_mode<synchronous>, transform_indices = @transform_11, window_bounds = array<i64: 3, 16, 128>}, {pipeline_mode = #tpu.pipeline_mode<synchronous>, transform_indices = @transform_12, window_bounds = array<i64: 4, 16, 128>}]} {
    %c0 = arith.constant 0 : index
    %c0_0 = arith.constant 0 : index
    %0 = vector.load %arg2[%c0, %c0_0] : memref<4x128xf32, #tpu.memory_space<vmem>>, vector<4x128xf32>
    %1 = arith.truncf %0 : vector<4x128xf32> to vector<4x128xbf16>
    %c0_1 = arith.constant 0 : index
    %c0_2 = arith.constant 0 : index
    %2 = vector.load %arg3[%c0_1, %c0_2] : memref<128x128xbf16, #tpu.memory_space<vmem>>, vector<128x128xbf16>
    %cst = arith.constant dense<0.000000e+00> : vector<4x128xf32>
    %3 = tpu.matmul %1, %2, %cst {dimension_numbers = #tpu.dot_dimension_numbers<[1], [0], [0], [1], [0, 0, 1, 1], [], []>} : vector<4x128xbf16>, vector<128x128xbf16>, vector<4x128xf32> -> vector<4x128xf32>
    %c0_3 = arith.constant 0 : index
    %c0_4 = arith.constant 0 : index
    %4 = vector.load %arg4[%c0_3, %c0_4] : memref<1x128xf32, #tpu.memory_space<vmem>>, vector<1x128xf32>
    %5 = vector.broadcast %4 : vector<1x128xf32> to vector<4x128xf32>
    %6 = arith.addf %3, %5 : vector<4x128xf32>
    %7 = arith.negf %6 : vector<4x128xf32>
    %8 = math.exp %7 : vector<4x128xf32>
    %cst_5 = arith.constant 1.000000e+00 : f32
    %9 = vector.broadcast %cst_5 : f32 to vector<4x128xf32>
    %10 = arith.addf %9, %8 : vector<4x128xf32>
    %11 = arith.divf %9, %10 : vector<4x128xf32>
    %12 = arith.mulf %6, %11 : vector<4x128xf32>
    %13 = arith.truncf %12 : vector<4x128xf32> to vector<4x128xbf16>
    %c0_6 = arith.constant 0 : index
    %c0_7 = arith.constant 0 : index
    %14 = vector.load %arg5[%c0_6, %c0_7] : memref<128x128xbf16, #tpu.memory_space<vmem>>, vector<128x128xbf16>
    %cst_8 = arith.constant dense<0.000000e+00> : vector<4x128xf32>
    %15 = tpu.matmul %13, %14, %cst_8 {dimension_numbers = #tpu.dot_dimension_numbers<[1], [0], [0], [1], [0, 0, 1, 1], [], []>} : vector<4x128xbf16>, vector<128x128xbf16>, vector<4x128xf32> -> vector<4x128xf32>
    %c0_9 = arith.constant 0 : index
    %c0_10 = arith.constant 0 : index
    %16 = vector.load %arg6[%c0_9, %c0_10] : memref<1x128xf32, #tpu.memory_space<vmem>>, vector<1x128xf32>
    %17 = vector.broadcast %16 : vector<1x128xf32> to vector<4x128xf32>
    %18 = arith.addf %15, %17 : vector<4x128xf32>
    %c0_11 = arith.constant 0 : index
    %c0_12 = arith.constant 0 : index
    %c0_13 = arith.constant 0 : index
    %19 = vector.load %arg1[%c0_11, %c0_12, %c0_13] : memref<4x16x128xf32, #tpu.memory_space<vmem>>, vector<4x16x128xf32>
    %20 = vector.shape_cast %18 : vector<4x128xf32> to vector<4x1x128xf32>
    %21 = vector.broadcast %20 : vector<4x1x128xf32> to vector<4x16x128xf32>
    %22 = arith.addf %19, %21 : vector<4x16x128xf32>
    %cst_14 = arith.constant dense<0.000000e+00> : vector<4x16xf32>
    %23 = vector.multi_reduction <add>, %22, %cst_14 [2] : vector<4x16x128xf32> to vector<4x16xf32>
    %24 = vector.shape_cast %23 : vector<4x16xf32> to vector<4x16x1xf32>
    %cst_15 = arith.constant 3.125000e-02 : f32
    %25 = vector.broadcast %cst_15 : f32 to vector<4x16x1xf32>
    %26 = arith.mulf %24, %25 : vector<4x16x1xf32>
    %27 = arith.mulf %22, %22 : vector<4x16x128xf32>
    %cst_16 = arith.constant dense<0.000000e+00> : vector<4x16xf32>
    %28 = vector.multi_reduction <add>, %27, %cst_16 [2] : vector<4x16x128xf32> to vector<4x16xf32>
    %29 = vector.shape_cast %28 : vector<4x16xf32> to vector<4x16x1xf32>
    %cst_17 = arith.constant 3.125000e-02 : f32
    %30 = vector.broadcast %cst_17 : f32 to vector<4x16x1xf32>
    %31 = arith.mulf %29, %30 : vector<4x16x1xf32>
    %32 = arith.mulf %26, %26 : vector<4x16x1xf32>
    %33 = arith.subf %31, %32 : vector<4x16x1xf32>
    %34 = vector.broadcast %26 : vector<4x16x1xf32> to vector<4x16x128xf32>
    %35 = arith.subf %22, %34 : vector<4x16x128xf32>
    %cst_18 = arith.constant 9.99999997E-7 : f32
    %36 = vector.broadcast %cst_18 : f32 to vector<4x16x1xf32>
    %37 = arith.addf %33, %36 : vector<4x16x1xf32>
    %38 = math.rsqrt %37 : vector<4x16x1xf32>
    %39 = vector.broadcast %38 : vector<4x16x1xf32> to vector<4x16x128xf32>
    %40 = arith.mulf %35, %39 : vector<4x16x128xf32>
    %c0_19 = arith.constant 0 : index
    %c0_20 = arith.constant 0 : index
    %41 = vector.load %arg7[%c0_19, %c0_20] : memref<1x128xf32, #tpu.memory_space<vmem>>, vector<1x128xf32>
    %42 = vector.shape_cast %41 : vector<1x128xf32> to vector<1x1x128xf32>
    %43 = vector.broadcast %42 : vector<1x1x128xf32> to vector<4x16x128xf32>
    %44 = arith.mulf %40, %43 : vector<4x16x128xf32>
    %c0_21 = arith.constant 0 : index
    %c0_22 = arith.constant 0 : index
    %45 = vector.load %arg8[%c0_21, %c0_22] : memref<1x128xf32, #tpu.memory_space<vmem>>, vector<1x128xf32>
    %46 = vector.shape_cast %45 : vector<1x128xf32> to vector<1x1x128xf32>
    %47 = vector.broadcast %46 : vector<1x1x128xf32> to vector<4x16x128xf32>
    %48 = arith.addf %44, %47 : vector<4x16x128xf32>
    %c0_23 = arith.constant 0 : index
    %c0_24 = arith.constant 0 : index
    %c0_25 = arith.constant 0 : index
    %49 = vector.load %arg9[%c0_23, %c0_24, %c0_25] : memref<3x128x384xbf16, #tpu.memory_space<vmem>>, vector<1x128x384xbf16>
    %50 = vector.shape_cast %49 : vector<1x128x384xbf16> to vector<128x384xbf16>
    %c0_26 = arith.constant 0 : index
    %c0_27 = arith.constant 0 : index
    %c0_28 = arith.constant 0 : index
    %51 = vector.load %arg10[%c0_26, %c0_27, %c0_28] : memref<3x128x384xbf16, #tpu.memory_space<vmem>>, vector<1x128x384xbf16>
    %52 = vector.shape_cast %51 : vector<1x128x384xbf16> to vector<128x384xbf16>
    %c0_29 = arith.constant 0 : index
    %c0_30 = arith.constant 0 : index
    %c0_31 = arith.constant 0 : index
    %53 = vector.load %arg11[%c0_29, %c0_30, %c0_31] : memref<3x1x384xf32, #tpu.memory_space<vmem>>, vector<1x1x384xf32>
    %54 = vector.shape_cast %53 : vector<1x1x384xf32> to vector<1x384xf32>
    %c0_32 = arith.constant 0 : index
    %c0_33 = arith.constant 0 : index
    %c0_34 = arith.constant 0 : index
    %55 = vector.load %arg12[%c0_32, %c0_33, %c0_34] : memref<3x16x128xf32, #tpu.memory_space<vmem>>, vector<1x16x128xf32>
    %56 = vector.shape_cast %55 : vector<1x16x128xf32> to vector<16x128xf32>
    %57 = vector.shape_cast %48 : vector<4x16x128xf32> to vector<64x128xf32>
    %58 = arith.truncf %57 : vector<64x128xf32> to vector<64x128xbf16>
    %cst_35 = arith.constant dense<0.000000e+00> : vector<64x384xf32>
    %59 = tpu.matmul %58, %50, %cst_35 {dimension_numbers = #tpu.dot_dimension_numbers<[1], [0], [0], [1], [0, 0, 1, 1], [], []>} : vector<64x128xbf16>, vector<128x384xbf16>, vector<64x384xf32> -> vector<64x384xf32>
    %60 = vector.broadcast %54 : vector<1x384xf32> to vector<64x384xf32>
    %61 = arith.addf %59, %60 : vector<64x384xf32>
    %62 = vector.extract_strided_slice %61 {offsets = [0, 0], sizes = [16, 384], strides = [1, 1]} : vector<64x384xf32> to vector<16x384xf32>
    %63 = vector.extract_strided_slice %62 {offsets = [0, 0], sizes = [16, 128], strides = [1, 1]} : vector<16x384xf32> to vector<16x128xf32>
    %64 = arith.negf %63 : vector<16x128xf32>
    %65 = math.exp %64 : vector<16x128xf32>
    %cst_36 = arith.constant 1.000000e+00 : f32
    %66 = vector.broadcast %cst_36 : f32 to vector<16x128xf32>
    %67 = arith.addf %66, %65 : vector<16x128xf32>
    %68 = arith.divf %66, %67 : vector<16x128xf32>
    %69 = vector.extract_strided_slice %62 {offsets = [0, 128], sizes = [16, 128], strides = [1, 1]} : vector<16x384xf32> to vector<16x128xf32>
    %70 = arith.negf %69 : vector<16x128xf32>
    %71 = math.exp %70 : vector<16x128xf32>
    %cst_37 = arith.constant 1.000000e+00 : f32
    %72 = vector.broadcast %cst_37 : f32 to vector<16x128xf32>
    %73 = arith.addf %72, %71 : vector<16x128xf32>
    %74 = arith.divf %72, %73 : vector<16x128xf32>
    %75 = vector.extract_strided_slice %62 {offsets = [0, 256], sizes = [16, 128], strides = [1, 1]} : vector<16x384xf32> to vector<16x128xf32>
    %76 = arith.mulf %68, %56 : vector<16x128xf32>
    %77 = arith.addf %75, %76 : vector<16x128xf32>
    %78 = math.tanh %77 : vector<16x128xf32>
    %cst_38 = arith.constant 1.000000e+00 : f32
    %79 = vector.broadcast %cst_38 : f32 to vector<16x128xf32>
    %80 = arith.subf %79, %74 : vector<16x128xf32>
    %81 = arith.mulf %80, %78 : vector<16x128xf32>
    %82 = vector.extract_strided_slice %61 {offsets = [16, 0], sizes = [16, 384], strides = [1, 1]} : vector<64x384xf32> to vector<16x384xf32>
    %83 = arith.truncf %81 : vector<16x128xf32> to vector<16x128xbf16>
    %cst_39 = arith.constant dense<0.000000e+00> : vector<16x384xf32>
    %84 = tpu.matmul %83, %52, %cst_39 {dimension_numbers = #tpu.dot_dimension_numbers<[1], [0], [0], [1], [0, 0, 1, 1], [], []>} : vector<16x128xbf16>, vector<128x384xbf16>, vector<16x384xf32> -> vector<16x384xf32>
    %85 = vector.extract_strided_slice %82 {offsets = [0, 0], sizes = [16, 128], strides = [1, 1]} : vector<16x384xf32> to vector<16x128xf32>
    %86 = vector.extract_strided_slice %84 {offsets = [0, 0], sizes = [16, 128], strides = [1, 1]} : vector<16x384xf32> to vector<16x128xf32>
    %87 = arith.addf %85, %86 : vector<16x128xf32>
    %88 = arith.negf %87 : vector<16x128xf32>
    %89 = math.exp %88 : vector<16x128xf32>
    %cst_40 = arith.constant 1.000000e+00 : f32
    %90 = vector.broadcast %cst_40 : f32 to vector<16x128xf32>
    %91 = arith.addf %90, %89 : vector<16x128xf32>
    %92 = arith.divf %90, %91 : vector<16x128xf32>
    %93 = vector.extract_strided_slice %82 {offsets = [0, 128], sizes = [16, 128], strides = [1, 1]} : vector<16x384xf32> to vector<16x128xf32>
    %94 = vector.extract_strided_slice %84 {offsets = [0, 128], sizes = [16, 128], strides = [1, 1]} : vector<16x384xf32> to vector<16x128xf32>
    %95 = arith.addf %93, %94 : vector<16x128xf32>
    %96 = arith.negf %95 : vector<16x128xf32>
    %97 = math.exp %96 : vector<16x128xf32>
    %cst_41 = arith.constant 1.000000e+00 : f32
    %98 = vector.broadcast %cst_41 : f32 to vector<16x128xf32>
    %99 = arith.addf %98, %97 : vector<16x128xf32>
    %100 = arith.divf %98, %99 : vector<16x128xf32>
    %101 = vector.extract_strided_slice %82 {offsets = [0, 256], sizes = [16, 128], strides = [1, 1]} : vector<16x384xf32> to vector<16x128xf32>
    %102 = vector.extract_strided_slice %84 {offsets = [0, 256], sizes = [16, 128], strides = [1, 1]} : vector<16x384xf32> to vector<16x128xf32>
    %103 = arith.addf %102, %56 : vector<16x128xf32>
    %104 = arith.mulf %92, %103 : vector<16x128xf32>
    %105 = arith.addf %101, %104 : vector<16x128xf32>
    %106 = math.tanh %105 : vector<16x128xf32>
    %cst_42 = arith.constant 1.000000e+00 : f32
    %107 = vector.broadcast %cst_42 : f32 to vector<16x128xf32>
    %108 = arith.subf %107, %100 : vector<16x128xf32>
    %109 = arith.mulf %108, %106 : vector<16x128xf32>
    %110 = arith.mulf %100, %81 : vector<16x128xf32>
    %111 = arith.addf %109, %110 : vector<16x128xf32>
    %112 = vector.extract_strided_slice %61 {offsets = [32, 0], sizes = [16, 384], strides = [1, 1]} : vector<64x384xf32> to vector<16x384xf32>
    %113 = arith.truncf %111 : vector<16x128xf32> to vector<16x128xbf16>
    %cst_43 = arith.constant dense<0.000000e+00> : vector<16x384xf32>
    %114 = tpu.matmul %113, %52, %cst_43 {dimension_numbers = #tpu.dot_dimension_numbers<[1], [0], [0], [1], [0, 0, 1, 1], [], []>} : vector<16x128xbf16>, vector<128x384xbf16>, vector<16x384xf32> -> vector<16x384xf32>
    %115 = vector.extract_strided_slice %112 {offsets = [0, 0], sizes = [16, 128], strides = [1, 1]} : vector<16x384xf32> to vector<16x128xf32>
    %116 = vector.extract_strided_slice %114 {offsets = [0, 0], sizes = [16, 128], strides = [1, 1]} : vector<16x384xf32> to vector<16x128xf32>
    %117 = arith.addf %115, %116 : vector<16x128xf32>
    %118 = arith.negf %117 : vector<16x128xf32>
    %119 = math.exp %118 : vector<16x128xf32>
    %cst_44 = arith.constant 1.000000e+00 : f32
    %120 = vector.broadcast %cst_44 : f32 to vector<16x128xf32>
    %121 = arith.addf %120, %119 : vector<16x128xf32>
    %122 = arith.divf %120, %121 : vector<16x128xf32>
    %123 = vector.extract_strided_slice %112 {offsets = [0, 128], sizes = [16, 128], strides = [1, 1]} : vector<16x384xf32> to vector<16x128xf32>
    %124 = vector.extract_strided_slice %114 {offsets = [0, 128], sizes = [16, 128], strides = [1, 1]} : vector<16x384xf32> to vector<16x128xf32>
    %125 = arith.addf %123, %124 : vector<16x128xf32>
    %126 = arith.negf %125 : vector<16x128xf32>
    %127 = math.exp %126 : vector<16x128xf32>
    %cst_45 = arith.constant 1.000000e+00 : f32
    %128 = vector.broadcast %cst_45 : f32 to vector<16x128xf32>
    %129 = arith.addf %128, %127 : vector<16x128xf32>
    %130 = arith.divf %128, %129 : vector<16x128xf32>
    %131 = vector.extract_strided_slice %112 {offsets = [0, 256], sizes = [16, 128], strides = [1, 1]} : vector<16x384xf32> to vector<16x128xf32>
    %132 = vector.extract_strided_slice %114 {offsets = [0, 256], sizes = [16, 128], strides = [1, 1]} : vector<16x384xf32> to vector<16x128xf32>
    %133 = arith.addf %132, %56 : vector<16x128xf32>
    %134 = arith.mulf %122, %133 : vector<16x128xf32>
    %135 = arith.addf %131, %134 : vector<16x128xf32>
    %136 = math.tanh %135 : vector<16x128xf32>
    %cst_46 = arith.constant 1.000000e+00 : f32
    %137 = vector.broadcast %cst_46 : f32 to vector<16x128xf32>
    %138 = arith.subf %137, %130 : vector<16x128xf32>
    %139 = arith.mulf %138, %136 : vector<16x128xf32>
    %140 = arith.mulf %130, %111 : vector<16x128xf32>
    %141 = arith.addf %139, %140 : vector<16x128xf32>
    %142 = vector.extract_strided_slice %61 {offsets = [48, 0], sizes = [16, 384], strides = [1, 1]} : vector<64x384xf32> to vector<16x384xf32>
    %143 = arith.truncf %141 : vector<16x128xf32> to vector<16x128xbf16>
    %cst_47 = arith.constant dense<0.000000e+00> : vector<16x384xf32>
    %144 = tpu.matmul %143, %52, %cst_47 {dimension_numbers = #tpu.dot_dimension_numbers<[1], [0], [0], [1], [0, 0, 1, 1], [], []>} : vector<16x128xbf16>, vector<128x384xbf16>, vector<16x384xf32> -> vector<16x384xf32>
    %145 = vector.extract_strided_slice %142 {offsets = [0, 0], sizes = [16, 128], strides = [1, 1]} : vector<16x384xf32> to vector<16x128xf32>
    %146 = vector.extract_strided_slice %144 {offsets = [0, 0], sizes = [16, 128], strides = [1, 1]} : vector<16x384xf32> to vector<16x128xf32>
    %147 = arith.addf %145, %146 : vector<16x128xf32>
    %148 = arith.negf %147 : vector<16x128xf32>
    %149 = math.exp %148 : vector<16x128xf32>
    %cst_48 = arith.constant 1.000000e+00 : f32
    %150 = vector.broadcast %cst_48 : f32 to vector<16x128xf32>
    %151 = arith.addf %150, %149 : vector<16x128xf32>
    %152 = arith.divf %150, %151 : vector<16x128xf32>
    %153 = vector.extract_strided_slice %142 {offsets = [0, 128], sizes = [16, 128], strides = [1, 1]} : vector<16x384xf32> to vector<16x128xf32>
    %154 = vector.extract_strided_slice %144 {offsets = [0, 128], sizes = [16, 128], strides = [1, 1]} : vector<16x384xf32> to vector<16x128xf32>
    %155 = arith.addf %153, %154 : vector<16x128xf32>
    %156 = arith.negf %155 : vector<16x128xf32>
    %157 = math.exp %156 : vector<16x128xf32>
    %cst_49 = arith.constant 1.000000e+00 : f32
    %158 = vector.broadcast %cst_49 : f32 to vector<16x128xf32>
    %159 = arith.addf %158, %157 : vector<16x128xf32>
    %160 = arith.divf %158, %159 : vector<16x128xf32>
    %161 = vector.extract_strided_slice %142 {offsets = [0, 256], sizes = [16, 128], strides = [1, 1]} : vector<16x384xf32> to vector<16x128xf32>
    %162 = vector.extract_strided_slice %144 {offsets = [0, 256], sizes = [16, 128], strides = [1, 1]} : vector<16x384xf32> to vector<16x128xf32>
    %163 = arith.addf %162, %56 : vector<16x128xf32>
    %164 = arith.mulf %152, %163 : vector<16x128xf32>
    %165 = arith.addf %161, %164 : vector<16x128xf32>
    %166 = math.tanh %165 : vector<16x128xf32>
    %cst_50 = arith.constant 1.000000e+00 : f32
    %167 = vector.broadcast %cst_50 : f32 to vector<16x128xf32>
    %168 = arith.subf %167, %160 : vector<16x128xf32>
    %169 = arith.mulf %168, %166 : vector<16x128xf32>
    %170 = arith.mulf %160, %141 : vector<16x128xf32>
    %171 = arith.addf %169, %170 : vector<16x128xf32>
    %172 = vector.shape_cast %81 : vector<16x128xf32> to vector<1x16x128xf32>
    %173 = vector.shape_cast %111 : vector<16x128xf32> to vector<1x16x128xf32>
    %174 = vector.shape_cast %141 : vector<16x128xf32> to vector<1x16x128xf32>
    %175 = vector.shape_cast %171 : vector<16x128xf32> to vector<1x16x128xf32>
    %176 = tpu.concatenate %172, %173, %174, %175 in 0 : vector<1x16x128xf32>, vector<1x16x128xf32>, vector<1x16x128xf32>, vector<1x16x128xf32> -> vector<4x16x128xf32>
    %c1 = arith.constant 1 : index
    %c0_51 = arith.constant 0 : index
    %c0_52 = arith.constant 0 : index
    %177 = vector.load %arg9[%c1, %c0_51, %c0_52] : memref<3x128x384xbf16, #tpu.memory_space<vmem>>, vector<1x128x384xbf16>
    %178 = vector.shape_cast %177 : vector<1x128x384xbf16> to vector<128x384xbf16>
    %c1_53 = arith.constant 1 : index
    %c0_54 = arith.constant 0 : index
    %c0_55 = arith.constant 0 : index
    %179 = vector.load %arg10[%c1_53, %c0_54, %c0_55] : memref<3x128x384xbf16, #tpu.memory_space<vmem>>, vector<1x128x384xbf16>
    %180 = vector.shape_cast %179 : vector<1x128x384xbf16> to vector<128x384xbf16>
    %c1_56 = arith.constant 1 : index
    %c0_57 = arith.constant 0 : index
    %c0_58 = arith.constant 0 : index
    %181 = vector.load %arg11[%c1_56, %c0_57, %c0_58] : memref<3x1x384xf32, #tpu.memory_space<vmem>>, vector<1x1x384xf32>
    %182 = vector.shape_cast %181 : vector<1x1x384xf32> to vector<1x384xf32>
    %c1_59 = arith.constant 1 : index
    %c0_60 = arith.constant 0 : index
    %c0_61 = arith.constant 0 : index
    %183 = vector.load %arg12[%c1_59, %c0_60, %c0_61] : memref<3x16x128xf32, #tpu.memory_space<vmem>>, vector<1x16x128xf32>
    %184 = vector.shape_cast %183 : vector<1x16x128xf32> to vector<16x128xf32>
    %185 = vector.shape_cast %176 : vector<4x16x128xf32> to vector<64x128xf32>
    %186 = arith.truncf %185 : vector<64x128xf32> to vector<64x128xbf16>
    %cst_62 = arith.constant dense<0.000000e+00> : vector<64x384xf32>
    %187 = tpu.matmul %186, %178, %cst_62 {dimension_numbers = #tpu.dot_dimension_numbers<[1], [0], [0], [1], [0, 0, 1, 1], [], []>} : vector<64x128xbf16>, vector<128x384xbf16>, vector<64x384xf32> -> vector<64x384xf32>
    %188 = vector.broadcast %182 : vector<1x384xf32> to vector<64x384xf32>
    %189 = arith.addf %187, %188 : vector<64x384xf32>
    %190 = vector.extract_strided_slice %189 {offsets = [0, 0], sizes = [16, 384], strides = [1, 1]} : vector<64x384xf32> to vector<16x384xf32>
    %191 = vector.extract_strided_slice %190 {offsets = [0, 0], sizes = [16, 128], strides = [1, 1]} : vector<16x384xf32> to vector<16x128xf32>
    %192 = arith.negf %191 : vector<16x128xf32>
    %193 = math.exp %192 : vector<16x128xf32>
    %cst_63 = arith.constant 1.000000e+00 : f32
    %194 = vector.broadcast %cst_63 : f32 to vector<16x128xf32>
    %195 = arith.addf %194, %193 : vector<16x128xf32>
    %196 = arith.divf %194, %195 : vector<16x128xf32>
    %197 = vector.extract_strided_slice %190 {offsets = [0, 128], sizes = [16, 128], strides = [1, 1]} : vector<16x384xf32> to vector<16x128xf32>
    %198 = arith.negf %197 : vector<16x128xf32>
    %199 = math.exp %198 : vector<16x128xf32>
    %cst_64 = arith.constant 1.000000e+00 : f32
    %200 = vector.broadcast %cst_64 : f32 to vector<16x128xf32>
    %201 = arith.addf %200, %199 : vector<16x128xf32>
    %202 = arith.divf %200, %201 : vector<16x128xf32>
    %203 = vector.extract_strided_slice %190 {offsets = [0, 256], sizes = [16, 128], strides = [1, 1]} : vector<16x384xf32> to vector<16x128xf32>
    %204 = arith.mulf %196, %184 : vector<16x128xf32>
    %205 = arith.addf %203, %204 : vector<16x128xf32>
    %206 = math.tanh %205 : vector<16x128xf32>
    %cst_65 = arith.constant 1.000000e+00 : f32
    %207 = vector.broadcast %cst_65 : f32 to vector<16x128xf32>
    %208 = arith.subf %207, %202 : vector<16x128xf32>
    %209 = arith.mulf %208, %206 : vector<16x128xf32>
    %210 = vector.extract_strided_slice %189 {offsets = [16, 0], sizes = [16, 384], strides = [1, 1]} : vector<64x384xf32> to vector<16x384xf32>
    %211 = arith.truncf %209 : vector<16x128xf32> to vector<16x128xbf16>
    %cst_66 = arith.constant dense<0.000000e+00> : vector<16x384xf32>
    %212 = tpu.matmul %211, %180, %cst_66 {dimension_numbers = #tpu.dot_dimension_numbers<[1], [0], [0], [1], [0, 0, 1, 1], [], []>} : vector<16x128xbf16>, vector<128x384xbf16>, vector<16x384xf32> -> vector<16x384xf32>
    %213 = vector.extract_strided_slice %210 {offsets = [0, 0], sizes = [16, 128], strides = [1, 1]} : vector<16x384xf32> to vector<16x128xf32>
    %214 = vector.extract_strided_slice %212 {offsets = [0, 0], sizes = [16, 128], strides = [1, 1]} : vector<16x384xf32> to vector<16x128xf32>
    %215 = arith.addf %213, %214 : vector<16x128xf32>
    %216 = arith.negf %215 : vector<16x128xf32>
    %217 = math.exp %216 : vector<16x128xf32>
    %cst_67 = arith.constant 1.000000e+00 : f32
    %218 = vector.broadcast %cst_67 : f32 to vector<16x128xf32>
    %219 = arith.addf %218, %217 : vector<16x128xf32>
    %220 = arith.divf %218, %219 : vector<16x128xf32>
    %221 = vector.extract_strided_slice %210 {offsets = [0, 128], sizes = [16, 128], strides = [1, 1]} : vector<16x384xf32> to vector<16x128xf32>
    %222 = vector.extract_strided_slice %212 {offsets = [0, 128], sizes = [16, 128], strides = [1, 1]} : vector<16x384xf32> to vector<16x128xf32>
    %223 = arith.addf %221, %222 : vector<16x128xf32>
    %224 = arith.negf %223 : vector<16x128xf32>
    %225 = math.exp %224 : vector<16x128xf32>
    %cst_68 = arith.constant 1.000000e+00 : f32
    %226 = vector.broadcast %cst_68 : f32 to vector<16x128xf32>
    %227 = arith.addf %226, %225 : vector<16x128xf32>
    %228 = arith.divf %226, %227 : vector<16x128xf32>
    %229 = vector.extract_strided_slice %210 {offsets = [0, 256], sizes = [16, 128], strides = [1, 1]} : vector<16x384xf32> to vector<16x128xf32>
    %230 = vector.extract_strided_slice %212 {offsets = [0, 256], sizes = [16, 128], strides = [1, 1]} : vector<16x384xf32> to vector<16x128xf32>
    %231 = arith.addf %230, %184 : vector<16x128xf32>
    %232 = arith.mulf %220, %231 : vector<16x128xf32>
    %233 = arith.addf %229, %232 : vector<16x128xf32>
    %234 = math.tanh %233 : vector<16x128xf32>
    %cst_69 = arith.constant 1.000000e+00 : f32
    %235 = vector.broadcast %cst_69 : f32 to vector<16x128xf32>
    %236 = arith.subf %235, %228 : vector<16x128xf32>
    %237 = arith.mulf %236, %234 : vector<16x128xf32>
    %238 = arith.mulf %228, %209 : vector<16x128xf32>
    %239 = arith.addf %237, %238 : vector<16x128xf32>
    %240 = vector.extract_strided_slice %189 {offsets = [32, 0], sizes = [16, 384], strides = [1, 1]} : vector<64x384xf32> to vector<16x384xf32>
    %241 = arith.truncf %239 : vector<16x128xf32> to vector<16x128xbf16>
    %cst_70 = arith.constant dense<0.000000e+00> : vector<16x384xf32>
    %242 = tpu.matmul %241, %180, %cst_70 {dimension_numbers = #tpu.dot_dimension_numbers<[1], [0], [0], [1], [0, 0, 1, 1], [], []>} : vector<16x128xbf16>, vector<128x384xbf16>, vector<16x384xf32> -> vector<16x384xf32>
    %243 = vector.extract_strided_slice %240 {offsets = [0, 0], sizes = [16, 128], strides = [1, 1]} : vector<16x384xf32> to vector<16x128xf32>
    %244 = vector.extract_strided_slice %242 {offsets = [0, 0], sizes = [16, 128], strides = [1, 1]} : vector<16x384xf32> to vector<16x128xf32>
    %245 = arith.addf %243, %244 : vector<16x128xf32>
    %246 = arith.negf %245 : vector<16x128xf32>
    %247 = math.exp %246 : vector<16x128xf32>
    %cst_71 = arith.constant 1.000000e+00 : f32
    %248 = vector.broadcast %cst_71 : f32 to vector<16x128xf32>
    %249 = arith.addf %248, %247 : vector<16x128xf32>
    %250 = arith.divf %248, %249 : vector<16x128xf32>
    %251 = vector.extract_strided_slice %240 {offsets = [0, 128], sizes = [16, 128], strides = [1, 1]} : vector<16x384xf32> to vector<16x128xf32>
    %252 = vector.extract_strided_slice %242 {offsets = [0, 128], sizes = [16, 128], strides = [1, 1]} : vector<16x384xf32> to vector<16x128xf32>
    %253 = arith.addf %251, %252 : vector<16x128xf32>
    %254 = arith.negf %253 : vector<16x128xf32>
    %255 = math.exp %254 : vector<16x128xf32>
    %cst_72 = arith.constant 1.000000e+00 : f32
    %256 = vector.broadcast %cst_72 : f32 to vector<16x128xf32>
    %257 = arith.addf %256, %255 : vector<16x128xf32>
    %258 = arith.divf %256, %257 : vector<16x128xf32>
    %259 = vector.extract_strided_slice %240 {offsets = [0, 256], sizes = [16, 128], strides = [1, 1]} : vector<16x384xf32> to vector<16x128xf32>
    %260 = vector.extract_strided_slice %242 {offsets = [0, 256], sizes = [16, 128], strides = [1, 1]} : vector<16x384xf32> to vector<16x128xf32>
    %261 = arith.addf %260, %184 : vector<16x128xf32>
    %262 = arith.mulf %250, %261 : vector<16x128xf32>
    %263 = arith.addf %259, %262 : vector<16x128xf32>
    %264 = math.tanh %263 : vector<16x128xf32>
    %cst_73 = arith.constant 1.000000e+00 : f32
    %265 = vector.broadcast %cst_73 : f32 to vector<16x128xf32>
    %266 = arith.subf %265, %258 : vector<16x128xf32>
    %267 = arith.mulf %266, %264 : vector<16x128xf32>
    %268 = arith.mulf %258, %239 : vector<16x128xf32>
    %269 = arith.addf %267, %268 : vector<16x128xf32>
    %270 = vector.extract_strided_slice %189 {offsets = [48, 0], sizes = [16, 384], strides = [1, 1]} : vector<64x384xf32> to vector<16x384xf32>
    %271 = arith.truncf %269 : vector<16x128xf32> to vector<16x128xbf16>
    %cst_74 = arith.constant dense<0.000000e+00> : vector<16x384xf32>
    %272 = tpu.matmul %271, %180, %cst_74 {dimension_numbers = #tpu.dot_dimension_numbers<[1], [0], [0], [1], [0, 0, 1, 1], [], []>} : vector<16x128xbf16>, vector<128x384xbf16>, vector<16x384xf32> -> vector<16x384xf32>
    %273 = vector.extract_strided_slice %270 {offsets = [0, 0], sizes = [16, 128], strides = [1, 1]} : vector<16x384xf32> to vector<16x128xf32>
    %274 = vector.extract_strided_slice %272 {offsets = [0, 0], sizes = [16, 128], strides = [1, 1]} : vector<16x384xf32> to vector<16x128xf32>
    %275 = arith.addf %273, %274 : vector<16x128xf32>
    %276 = arith.negf %275 : vector<16x128xf32>
    %277 = math.exp %276 : vector<16x128xf32>
    %cst_75 = arith.constant 1.000000e+00 : f32
    %278 = vector.broadcast %cst_75 : f32 to vector<16x128xf32>
    %279 = arith.addf %278, %277 : vector<16x128xf32>
    %280 = arith.divf %278, %279 : vector<16x128xf32>
    %281 = vector.extract_strided_slice %270 {offsets = [0, 128], sizes = [16, 128], strides = [1, 1]} : vector<16x384xf32> to vector<16x128xf32>
    %282 = vector.extract_strided_slice %272 {offsets = [0, 128], sizes = [16, 128], strides = [1, 1]} : vector<16x384xf32> to vector<16x128xf32>
    %283 = arith.addf %281, %282 : vector<16x128xf32>
    %284 = arith.negf %283 : vector<16x128xf32>
    %285 = math.exp %284 : vector<16x128xf32>
    %cst_76 = arith.constant 1.000000e+00 : f32
    %286 = vector.broadcast %cst_76 : f32 to vector<16x128xf32>
    %287 = arith.addf %286, %285 : vector<16x128xf32>
    %288 = arith.divf %286, %287 : vector<16x128xf32>
    %289 = vector.extract_strided_slice %270 {offsets = [0, 256], sizes = [16, 128], strides = [1, 1]} : vector<16x384xf32> to vector<16x128xf32>
    %290 = vector.extract_strided_slice %272 {offsets = [0, 256], sizes = [16, 128], strides = [1, 1]} : vector<16x384xf32> to vector<16x128xf32>
    %291 = arith.addf %290, %184 : vector<16x128xf32>
    %292 = arith.mulf %280, %291 : vector<16x128xf32>
    %293 = arith.addf %289, %292 : vector<16x128xf32>
    %294 = math.tanh %293 : vector<16x128xf32>
    %cst_77 = arith.constant 1.000000e+00 : f32
    %295 = vector.broadcast %cst_77 : f32 to vector<16x128xf32>
    %296 = arith.subf %295, %288 : vector<16x128xf32>
    %297 = arith.mulf %296, %294 : vector<16x128xf32>
    %298 = arith.mulf %288, %269 : vector<16x128xf32>
    %299 = arith.addf %297, %298 : vector<16x128xf32>
    %300 = vector.shape_cast %209 : vector<16x128xf32> to vector<1x16x128xf32>
    %301 = vector.shape_cast %239 : vector<16x128xf32> to vector<1x16x128xf32>
    %302 = vector.shape_cast %269 : vector<16x128xf32> to vector<1x16x128xf32>
    %303 = vector.shape_cast %299 : vector<16x128xf32> to vector<1x16x128xf32>
    %304 = tpu.concatenate %300, %301, %302, %303 in 0 : vector<1x16x128xf32>, vector<1x16x128xf32>, vector<1x16x128xf32>, vector<1x16x128xf32> -> vector<4x16x128xf32>
    %c2 = arith.constant 2 : index
    %c0_78 = arith.constant 0 : index
    %c0_79 = arith.constant 0 : index
    %305 = vector.load %arg9[%c2, %c0_78, %c0_79] : memref<3x128x384xbf16, #tpu.memory_space<vmem>>, vector<1x128x384xbf16>
    %306 = vector.shape_cast %305 : vector<1x128x384xbf16> to vector<128x384xbf16>
    %c2_80 = arith.constant 2 : index
    %c0_81 = arith.constant 0 : index
    %c0_82 = arith.constant 0 : index
    %307 = vector.load %arg10[%c2_80, %c0_81, %c0_82] : memref<3x128x384xbf16, #tpu.memory_space<vmem>>, vector<1x128x384xbf16>
    %308 = vector.shape_cast %307 : vector<1x128x384xbf16> to vector<128x384xbf16>
    %c2_83 = arith.constant 2 : index
    %c0_84 = arith.constant 0 : index
    %c0_85 = arith.constant 0 : index
    %309 = vector.load %arg11[%c2_83, %c0_84, %c0_85] : memref<3x1x384xf32, #tpu.memory_space<vmem>>, vector<1x1x384xf32>
    %310 = vector.shape_cast %309 : vector<1x1x384xf32> to vector<1x384xf32>
    %c2_86 = arith.constant 2 : index
    %c0_87 = arith.constant 0 : index
    %c0_88 = arith.constant 0 : index
    %311 = vector.load %arg12[%c2_86, %c0_87, %c0_88] : memref<3x16x128xf32, #tpu.memory_space<vmem>>, vector<1x16x128xf32>
    %312 = vector.shape_cast %311 : vector<1x16x128xf32> to vector<16x128xf32>
    %313 = vector.shape_cast %304 : vector<4x16x128xf32> to vector<64x128xf32>
    %314 = arith.truncf %313 : vector<64x128xf32> to vector<64x128xbf16>
    %cst_89 = arith.constant dense<0.000000e+00> : vector<64x384xf32>
    %315 = tpu.matmul %314, %306, %cst_89 {dimension_numbers = #tpu.dot_dimension_numbers<[1], [0], [0], [1], [0, 0, 1, 1], [], []>} : vector<64x128xbf16>, vector<128x384xbf16>, vector<64x384xf32> -> vector<64x384xf32>
    %316 = vector.broadcast %310 : vector<1x384xf32> to vector<64x384xf32>
    %317 = arith.addf %315, %316 : vector<64x384xf32>
    %318 = vector.extract_strided_slice %317 {offsets = [0, 0], sizes = [16, 384], strides = [1, 1]} : vector<64x384xf32> to vector<16x384xf32>
    %319 = vector.extract_strided_slice %318 {offsets = [0, 0], sizes = [16, 128], strides = [1, 1]} : vector<16x384xf32> to vector<16x128xf32>
    %320 = arith.negf %319 : vector<16x128xf32>
    %321 = math.exp %320 : vector<16x128xf32>
    %cst_90 = arith.constant 1.000000e+00 : f32
    %322 = vector.broadcast %cst_90 : f32 to vector<16x128xf32>
    %323 = arith.addf %322, %321 : vector<16x128xf32>
    %324 = arith.divf %322, %323 : vector<16x128xf32>
    %325 = vector.extract_strided_slice %318 {offsets = [0, 128], sizes = [16, 128], strides = [1, 1]} : vector<16x384xf32> to vector<16x128xf32>
    %326 = arith.negf %325 : vector<16x128xf32>
    %327 = math.exp %326 : vector<16x128xf32>
    %cst_91 = arith.constant 1.000000e+00 : f32
    %328 = vector.broadcast %cst_91 : f32 to vector<16x128xf32>
    %329 = arith.addf %328, %327 : vector<16x128xf32>
    %330 = arith.divf %328, %329 : vector<16x128xf32>
    %331 = vector.extract_strided_slice %318 {offsets = [0, 256], sizes = [16, 128], strides = [1, 1]} : vector<16x384xf32> to vector<16x128xf32>
    %332 = arith.mulf %324, %312 : vector<16x128xf32>
    %333 = arith.addf %331, %332 : vector<16x128xf32>
    %334 = math.tanh %333 : vector<16x128xf32>
    %cst_92 = arith.constant 1.000000e+00 : f32
    %335 = vector.broadcast %cst_92 : f32 to vector<16x128xf32>
    %336 = arith.subf %335, %330 : vector<16x128xf32>
    %337 = arith.mulf %336, %334 : vector<16x128xf32>
    %338 = vector.extract_strided_slice %317 {offsets = [16, 0], sizes = [16, 384], strides = [1, 1]} : vector<64x384xf32> to vector<16x384xf32>
    %339 = arith.truncf %337 : vector<16x128xf32> to vector<16x128xbf16>
    %cst_93 = arith.constant dense<0.000000e+00> : vector<16x384xf32>
    %340 = tpu.matmul %339, %308, %cst_93 {dimension_numbers = #tpu.dot_dimension_numbers<[1], [0], [0], [1], [0, 0, 1, 1], [], []>} : vector<16x128xbf16>, vector<128x384xbf16>, vector<16x384xf32> -> vector<16x384xf32>
    %341 = vector.extract_strided_slice %338 {offsets = [0, 0], sizes = [16, 128], strides = [1, 1]} : vector<16x384xf32> to vector<16x128xf32>
    %342 = vector.extract_strided_slice %340 {offsets = [0, 0], sizes = [16, 128], strides = [1, 1]} : vector<16x384xf32> to vector<16x128xf32>
    %343 = arith.addf %341, %342 : vector<16x128xf32>
    %344 = arith.negf %343 : vector<16x128xf32>
    %345 = math.exp %344 : vector<16x128xf32>
    %cst_94 = arith.constant 1.000000e+00 : f32
    %346 = vector.broadcast %cst_94 : f32 to vector<16x128xf32>
    %347 = arith.addf %346, %345 : vector<16x128xf32>
    %348 = arith.divf %346, %347 : vector<16x128xf32>
    %349 = vector.extract_strided_slice %338 {offsets = [0, 128], sizes = [16, 128], strides = [1, 1]} : vector<16x384xf32> to vector<16x128xf32>
    %350 = vector.extract_strided_slice %340 {offsets = [0, 128], sizes = [16, 128], strides = [1, 1]} : vector<16x384xf32> to vector<16x128xf32>
    %351 = arith.addf %349, %350 : vector<16x128xf32>
    %352 = arith.negf %351 : vector<16x128xf32>
    %353 = math.exp %352 : vector<16x128xf32>
    %cst_95 = arith.constant 1.000000e+00 : f32
    %354 = vector.broadcast %cst_95 : f32 to vector<16x128xf32>
    %355 = arith.addf %354, %353 : vector<16x128xf32>
    %356 = arith.divf %354, %355 : vector<16x128xf32>
    %357 = vector.extract_strided_slice %338 {offsets = [0, 256], sizes = [16, 128], strides = [1, 1]} : vector<16x384xf32> to vector<16x128xf32>
    %358 = vector.extract_strided_slice %340 {offsets = [0, 256], sizes = [16, 128], strides = [1, 1]} : vector<16x384xf32> to vector<16x128xf32>
    %359 = arith.addf %358, %312 : vector<16x128xf32>
    %360 = arith.mulf %348, %359 : vector<16x128xf32>
    %361 = arith.addf %357, %360 : vector<16x128xf32>
    %362 = math.tanh %361 : vector<16x128xf32>
    %cst_96 = arith.constant 1.000000e+00 : f32
    %363 = vector.broadcast %cst_96 : f32 to vector<16x128xf32>
    %364 = arith.subf %363, %356 : vector<16x128xf32>
    %365 = arith.mulf %364, %362 : vector<16x128xf32>
    %366 = arith.mulf %356, %337 : vector<16x128xf32>
    %367 = arith.addf %365, %366 : vector<16x128xf32>
    %368 = vector.extract_strided_slice %317 {offsets = [32, 0], sizes = [16, 384], strides = [1, 1]} : vector<64x384xf32> to vector<16x384xf32>
    %369 = arith.truncf %367 : vector<16x128xf32> to vector<16x128xbf16>
    %cst_97 = arith.constant dense<0.000000e+00> : vector<16x384xf32>
    %370 = tpu.matmul %369, %308, %cst_97 {dimension_numbers = #tpu.dot_dimension_numbers<[1], [0], [0], [1], [0, 0, 1, 1], [], []>} : vector<16x128xbf16>, vector<128x384xbf16>, vector<16x384xf32> -> vector<16x384xf32>
    %371 = vector.extract_strided_slice %368 {offsets = [0, 0], sizes = [16, 128], strides = [1, 1]} : vector<16x384xf32> to vector<16x128xf32>
    %372 = vector.extract_strided_slice %370 {offsets = [0, 0], sizes = [16, 128], strides = [1, 1]} : vector<16x384xf32> to vector<16x128xf32>
    %373 = arith.addf %371, %372 : vector<16x128xf32>
    %374 = arith.negf %373 : vector<16x128xf32>
    %375 = math.exp %374 : vector<16x128xf32>
    %cst_98 = arith.constant 1.000000e+00 : f32
    %376 = vector.broadcast %cst_98 : f32 to vector<16x128xf32>
    %377 = arith.addf %376, %375 : vector<16x128xf32>
    %378 = arith.divf %376, %377 : vector<16x128xf32>
    %379 = vector.extract_strided_slice %368 {offsets = [0, 128], sizes = [16, 128], strides = [1, 1]} : vector<16x384xf32> to vector<16x128xf32>
    %380 = vector.extract_strided_slice %370 {offsets = [0, 128], sizes = [16, 128], strides = [1, 1]} : vector<16x384xf32> to vector<16x128xf32>
    %381 = arith.addf %379, %380 : vector<16x128xf32>
    %382 = arith.negf %381 : vector<16x128xf32>
    %383 = math.exp %382 : vector<16x128xf32>
    %cst_99 = arith.constant 1.000000e+00 : f32
    %384 = vector.broadcast %cst_99 : f32 to vector<16x128xf32>
    %385 = arith.addf %384, %383 : vector<16x128xf32>
    %386 = arith.divf %384, %385 : vector<16x128xf32>
    %387 = vector.extract_strided_slice %368 {offsets = [0, 256], sizes = [16, 128], strides = [1, 1]} : vector<16x384xf32> to vector<16x128xf32>
    %388 = vector.extract_strided_slice %370 {offsets = [0, 256], sizes = [16, 128], strides = [1, 1]} : vector<16x384xf32> to vector<16x128xf32>
    %389 = arith.addf %388, %312 : vector<16x128xf32>
    %390 = arith.mulf %378, %389 : vector<16x128xf32>
    %391 = arith.addf %387, %390 : vector<16x128xf32>
    %392 = math.tanh %391 : vector<16x128xf32>
    %cst_100 = arith.constant 1.000000e+00 : f32
    %393 = vector.broadcast %cst_100 : f32 to vector<16x128xf32>
    %394 = arith.subf %393, %386 : vector<16x128xf32>
    %395 = arith.mulf %394, %392 : vector<16x128xf32>
    %396 = arith.mulf %386, %367 : vector<16x128xf32>
    %397 = arith.addf %395, %396 : vector<16x128xf32>
    %398 = vector.extract_strided_slice %317 {offsets = [48, 0], sizes = [16, 384], strides = [1, 1]} : vector<64x384xf32> to vector<16x384xf32>
    %399 = arith.truncf %397 : vector<16x128xf32> to vector<16x128xbf16>
    %cst_101 = arith.constant dense<0.000000e+00> : vector<16x384xf32>
    %400 = tpu.matmul %399, %308, %cst_101 {dimension_numbers = #tpu.dot_dimension_numbers<[1], [0], [0], [1], [0, 0, 1, 1], [], []>} : vector<16x128xbf16>, vector<128x384xbf16>, vector<16x384xf32> -> vector<16x384xf32>
    %401 = vector.extract_strided_slice %398 {offsets = [0, 0], sizes = [16, 128], strides = [1, 1]} : vector<16x384xf32> to vector<16x128xf32>
    %402 = vector.extract_strided_slice %400 {offsets = [0, 0], sizes = [16, 128], strides = [1, 1]} : vector<16x384xf32> to vector<16x128xf32>
    %403 = arith.addf %401, %402 : vector<16x128xf32>
    %404 = arith.negf %403 : vector<16x128xf32>
    %405 = math.exp %404 : vector<16x128xf32>
    %cst_102 = arith.constant 1.000000e+00 : f32
    %406 = vector.broadcast %cst_102 : f32 to vector<16x128xf32>
    %407 = arith.addf %406, %405 : vector<16x128xf32>
    %408 = arith.divf %406, %407 : vector<16x128xf32>
    %409 = vector.extract_strided_slice %398 {offsets = [0, 128], sizes = [16, 128], strides = [1, 1]} : vector<16x384xf32> to vector<16x128xf32>
    %410 = vector.extract_strided_slice %400 {offsets = [0, 128], sizes = [16, 128], strides = [1, 1]} : vector<16x384xf32> to vector<16x128xf32>
    %411 = arith.addf %409, %410 : vector<16x128xf32>
    %412 = arith.negf %411 : vector<16x128xf32>
    %413 = math.exp %412 : vector<16x128xf32>
    %cst_103 = arith.constant 1.000000e+00 : f32
    %414 = vector.broadcast %cst_103 : f32 to vector<16x128xf32>
    %415 = arith.addf %414, %413 : vector<16x128xf32>
    %416 = arith.divf %414, %415 : vector<16x128xf32>
    %417 = vector.extract_strided_slice %398 {offsets = [0, 256], sizes = [16, 128], strides = [1, 1]} : vector<16x384xf32> to vector<16x128xf32>
    %418 = vector.extract_strided_slice %400 {offsets = [0, 256], sizes = [16, 128], strides = [1, 1]} : vector<16x384xf32> to vector<16x128xf32>
    %419 = arith.addf %418, %312 : vector<16x128xf32>
    %420 = arith.mulf %408, %419 : vector<16x128xf32>
    %421 = arith.addf %417, %420 : vector<16x128xf32>
    %422 = math.tanh %421 : vector<16x128xf32>
    %cst_104 = arith.constant 1.000000e+00 : f32
    %423 = vector.broadcast %cst_104 : f32 to vector<16x128xf32>
    %424 = arith.subf %423, %416 : vector<16x128xf32>
    %425 = arith.mulf %424, %422 : vector<16x128xf32>
    %426 = arith.mulf %416, %397 : vector<16x128xf32>
    %427 = arith.addf %425, %426 : vector<16x128xf32>
    %428 = vector.shape_cast %337 : vector<16x128xf32> to vector<1x16x128xf32>
    %429 = vector.shape_cast %367 : vector<16x128xf32> to vector<1x16x128xf32>
    %430 = vector.shape_cast %397 : vector<16x128xf32> to vector<1x16x128xf32>
    %431 = vector.shape_cast %427 : vector<16x128xf32> to vector<1x16x128xf32>
    %432 = tpu.concatenate %428, %429, %430, %431 in 0 : vector<1x16x128xf32>, vector<1x16x128xf32>, vector<1x16x128xf32>, vector<1x16x128xf32> -> vector<4x16x128xf32>
    %c0_105 = arith.constant 0 : index
    %c0_106 = arith.constant 0 : index
    %c0_107 = arith.constant 0 : index
    %433 = vector.load %arg13[%c0_105, %c0_106, %c0_107] : memref<4x16x128xf32, #tpu.memory_space<vmem>>, vector<4x16x128xf32>
    tpu.vector_store %arg13[%c0_105, %c0_106, %c0_107], %432 {strides = array<i32>} : memref<4x16x128xf32, #tpu.memory_space<vmem>>, vector<4x16x128xf32>,
    return
  }
  func.func @transform_0(%arg0: i32) -> (i32, i32, i32) {
    %c0_i32 = arith.constant 0 : i32
    %c0_i32_0 = arith.constant 0 : i32
    %c0_i32_1 = arith.constant 0 : i32
    %c0_i32_2 = arith.constant 0 : i32
    return %c0_i32, %c0_i32_0, %c0_i32_1 : i32, i32, i32
  }
  func.func @transform_1(%arg0: i32) -> (i32, i32) {
    %c0_i32 = arith.constant 0 : i32
    %c0_i32_0 = arith.constant 0 : i32
    %c0_i32_1 = arith.constant 0 : i32
    return %c0_i32, %c0_i32_0 : i32, i32
  }
  func.func @transform_2(%arg0: i32) -> (i32, i32) {
    %c0_i32 = arith.constant 0 : i32
    %c0_i32_0 = arith.constant 0 : i32
    %c0_i32_1 = arith.constant 0 : i32
    return %c0_i32, %c0_i32_0 : i32, i32
  }
  func.func @transform_3(%arg0: i32) -> (i32, i32) {
    %c0_i32 = arith.constant 0 : i32
    %c0_i32_0 = arith.constant 0 : i32
    %c0_i32_1 = arith.constant 0 : i32
    return %c0_i32, %c0_i32_0 : i32, i32
  }
  func.func @transform_4(%arg0: i32) -> (i32, i32) {
    %c0_i32 = arith.constant 0 : i32
    %c0_i32_0 = arith.constant 0 : i32
    %c0_i32_1 = arith.constant 0 : i32
    return %c0_i32, %c0_i32_0 : i32, i32
  }
  func.func @transform_5(%arg0: i32) -> (i32, i32) {
    %c0_i32 = arith.constant 0 : i32
    %c0_i32_0 = arith.constant 0 : i32
    %c0_i32_1 = arith.constant 0 : i32
    return %c0_i32, %c0_i32_0 : i32, i32
  }
  func.func @transform_6(%arg0: i32) -> (i32, i32) {
    %c0_i32 = arith.constant 0 : i32
    %c0_i32_0 = arith.constant 0 : i32
    %c0_i32_1 = arith.constant 0 : i32
    return %c0_i32, %c0_i32_0 : i32, i32
  }
  func.func @transform_7(%arg0: i32) -> (i32, i32) {
    %c0_i32 = arith.constant 0 : i32
    %c0_i32_0 = arith.constant 0 : i32
    %c0_i32_1 = arith.constant 0 : i32
    return %c0_i32, %c0_i32_0 : i32, i32
  }
  func.func @transform_8(%arg0: i32) -> (i32, i32, i32) {
    %c0_i32 = arith.constant 0 : i32
    %c0_i32_0 = arith.constant 0 : i32
    %c0_i32_1 = arith.constant 0 : i32
    %c0_i32_2 = arith.constant 0 : i32
    return %c0_i32, %c0_i32_0, %c0_i32_1 : i32, i32, i32
  }
  func.func @transform_9(%arg0: i32) -> (i32, i32, i32) {
    %c0_i32 = arith.constant 0 : i32
    %c0_i32_0 = arith.constant 0 : i32
    %c0_i32_1 = arith.constant 0 : i32
    %c0_i32_2 = arith.constant 0 : i32
    return %c0_i32, %c0_i32_0, %c0_i32_1 : i32, i32, i32
  }
  func.func @transform_10(%arg0: i32) -> (i32, i32, i32) {
    %c0_i32 = arith.constant 0 : i32
    %c0_i32_0 = arith.constant 0 : i32
    %c0_i32_1 = arith.constant 0 : i32
    %c0_i32_2 = arith.constant 0 : i32
    return %c0_i32, %c0_i32_0, %c0_i32_1 : i32, i32, i32
  }
  func.func @transform_11(%arg0: i32) -> (i32, i32, i32) {
    %c0_i32 = arith.constant 0 : i32
    %c0_i32_0 = arith.constant 0 : i32
    %c0_i32_1 = arith.constant 0 : i32
    %c0_i32_2 = arith.constant 0 : i32
    return %c0_i32, %c0_i32_0, %c0_i32_1 : i32, i32, i32
  }
  func.func @transform_12(%arg0: i32) -> (i32, i32, i32) {
    %c0_i32 = arith.constant 0 : i32
    %c0_i32_0 = arith.constant 0 : i32
    %c0_i32_1 = arith.constant 0 : i32
    %c0_i32_2 = arith.constant 0 : i32
    return %c0_i32, %c0_i32_0, %c0_i32_1 : i32, i32, i32
  }
}

</mosaic_0001>

<bundles_post_ra>
// kernel: tpu_custom_call.1
= control target key start
LH: loop header
LB: loop body
LE: loop exit
PB: predicated region body
PF: predicated region fallthrough
CT: control target
= control target key end

     0   :  { %17 = vsyncpa [#allocation3], 0  ;;  %s5719_s0 = inlined_call_operand.hbm [shape: f32[4,16,128], index: 0, kind: input, shape index: {}]   ;;  %s5720_s1 = inlined_call_operand.hbm [shape: f32[4,128], index: 1, kind: input, shape index: {}]   ;;  %s5721_s2 = inlined_call_operand.hbm [shape: bf16[128,128], index: 2, kind: input, shape index: {}]   ;;  %s5722_s3 = inlined_call_operand.vmem [shape: f32[1,128], index: 3, kind: input, shape index: {}]   ;;  %s5723_s4 = inlined_call_operand.hbm [shape: bf16[128,128], index: 4, kind: input, shape index: {}]   ;;  %s5724_s5 = inlined_call_operand.vmem [shape: f32[1,128], index: 5, kind: input, shape index: {}]   ;;  %s5725_s6 = inlined_call_operand.vmem [shape: f32[1,128], index: 6, kind: input, shape index: {}]   ;;  %s5726_s7 = inlined_call_operand.vmem [shape: f32[1,128], index: 7, kind: input, shape index: {}]   ;;  %s5727_s8 = inlined_call_operand.hbm [shape: bf16[3,128,384], index: 8, kind: input, shape index: {}]   ;;  %s5728_s9 = inlined_call_operand.hbm [shape: bf16[3,128,384], index: 9, kind: input, shape index: {}]   ;;  %s5729_s10 = inlined_call_operand.vmem [shape: f32[3,1,384], index: 10, kind: input, shape index: {}]   ;;  %s5730_s11 = inlined_call_operand.hbm [shape: f32[3,16,128], index: 11, kind: input, shape index: {}]   ;;  %s5731_s12 = inlined_call_operand.hbm [shape: f32[4,16,128], index: 12, kind: output, shape index: {}]  }
   0x1   :  { %18 = vsyncpa [#allocation6], 0 }
   0x2   :  { %19 = vsyncpa [#allocation9], 0 }
   0x3   :  { %20 = vsyncpa [#allocation12], 0 }
   0x4   :  { %21 = vsyncpa [#allocation4], 0  ;;  %s4597_s21 = smov [#allocation5]  }
   0x5   :  { %s40_s22 = sshll.u32 %s4597_s21, 4  ;;  %s41_s22 = int_to_ptr.vmem [resolvable:$true] %s40_s22 }
   0x6   :  { %s4435_s23 = scalar_lea.vmem %s41_s22, 64  ;;  %p4440_p1 = scmp.lt.s32.totalorder %s41_s22, %s41_s22 }
   0x7   :  { %p4436_p0 = scmp.ne.s32.totalorder %s41_s22, %s4435_s23  ;;  %p4441_p2 = scmp.lt.s32.totalorder %s4435_s23, %s4435_s23 }
   0x9   :  { %p4442_p3 = por %p4441_p2, %p4440_p1 }
   0xb   :  { %p4443_p4 = pnand %p4442_p3, %p4436_p0 }
   0xd   :  { %4446 = shalt.err (!%p4443_p4)
}
   0xe   :  { %43 = dma.hbm_to_vmem [thread:$0]  %s5720_s1, 64, %s41_s22, [#allocation6]  }
   0xf   :  { %s4598_s26 = smov [#allocation8]  }
  0x10   :  { %s63_s27 = sshll.u32 %s4598_s26, 4  ;;  %s64_s27 = int_to_ptr.vmem [resolvable:$true] %s63_s27 }
  0x11   :  { %s4455_s28 = scalar_lea.vmem %s64_s27, 1024  ;;  %p4460_p6 = scmp.lt.s32.totalorder %s64_s27, %s64_s27 }
  0x12   :  { %p4456_p5 = scmp.ne.s32.totalorder %s64_s27, %s4455_s28  ;;  %p4461_p7 = scmp.lt.s32.totalorder %s4455_s28, %s4455_s28 }
  0x14   :  { %p4462_p8 = por %p4461_p7, %p4460_p6 }
  0x16   :  { %p4463_p9 = pnand %p4462_p8, %p4456_p5 }
  0x18   :  { %4466 = shalt.err (!%p4463_p9)
}
  0x19   :  { %s4599_s29 = smov 64   ;;  %s4600_s30 = smov 4  }
  0x1a   :  { %69 = dma.hbm_to_vmem [thread:$0]  %s5723_s4, 1024, %s64_s27, [#allocation9], %s4599_s29, %s4599_s29, %s4600_s30  }
  0x1b   :  { %s4601_s1 = smov [#allocation11]   ;;  %s4602_s16 = smov [#allocation2]  }
  0x1c   :  { %s93_s15 = sshll.u32 %s4601_s1, 4  ;;  %s27_s17 = sshll.u32 %s4602_s16, 4  ;;  %s94_s15 = int_to_ptr.vmem [resolvable:$true] %s93_s15  ;;  %s28_s17 = int_to_ptr.vmem [resolvable:$true] %s27_s17 }
  0x1d   :  { %s4475_s18 = scalar_lea.vmem %s94_s15, 9216  ;;  %p4480_p11 = scmp.lt.s32.totalorder %s94_s15, %s94_s15 }
  0x1e   :  { %p4476_p10 = scmp.ne.s32.totalorder %s94_s15, %s4475_s18  ;;  %p4481_p12 = scmp.lt.s32.totalorder %s4475_s18, %s4475_s18 }
  0x20   :  { %p4482_p13 = por %p4481_p12, %p4480_p11 }
  0x22   :  { %p4483_p0 = pnand %p4482_p13, %p4476_p10 }
  0x24   :  { %4486 = shalt.err (!%p4483_p0)
}
  0x25   :  { %s4603_s19 = smov 192   ;;  %s4604_s20 = smov 12  }
  0x26   :  { %99 = dma.hbm_to_vmem [thread:$0]  %s5728_s9, 9216, %s94_s15, [#allocation12], %s4603_s19, %s4603_s19, %s4604_s20  }
  0x27   :  { %s4495_s22 = scalar_lea.vmem %s28_s17, 1024  ;;  %p4500_p2 = scmp.lt.s32.totalorder %s28_s17, %s28_s17 }
  0x28   :  { %p4496_p1 = scmp.ne.s32.totalorder %s28_s17, %s4495_s22  ;;  %p4501_p3 = scmp.lt.s32.totalorder %s4495_s22, %s4495_s22 }
  0x2a   :  { %p4502_p4 = por %p4501_p3, %p4500_p2 }
  0x2c   :  { %p4503_p5 = pnand %p4502_p4, %p4496_p1 }
  0x2e   :  { %4506 = shalt.err (!%p4503_p5)
}
  0x2f   :  { %s4605_s23 = smov 128   ;;  %s4606_s24 = smov 8  }
  0x30   :  { %33 = dma.hbm_to_vmem [thread:$0]  %s5719_s0, 1024, %s28_s17, [#allocation3], %s4605_s23, %s4605_s23, %s4606_s24  }
  0x31   :  { %s4607_s27 = smov [#allocation7]   ;;  %s4608_s13 = smov [#allocation10]  }
  0x32   :  { %s49_s28 = sshll.u32 %s4607_s27, 4  ;;  %s81_s9 = sshll.u32 %s4608_s13, 4  ;;  %s50_s28 = int_to_ptr.vmem [resolvable:$true] %s49_s28  ;;  %s82_s9 = int_to_ptr.vmem [resolvable:$true] %s81_s9 }
  0x33   :  { %s4515_s14 = scalar_lea.vmem %s50_s28, 1024  ;;  %p4520_p7 = scmp.lt.s32.totalorder %s50_s28, %s50_s28 }
  0x34   :  { %p4516_p6 = scmp.ne.s32.totalorder %s50_s28, %s4515_s14  ;;  %p4521_p8 = scmp.lt.s32.totalorder %s4515_s14, %s4515_s14 }
  0x36   :  { %p4522_p9 = por %p4521_p8, %p4520_p7 }
  0x38   :  { %p4523_p10 = pnand %p4522_p9, %p4516_p6 }
  0x3a   :  { %4526 = shalt.err (!%p4523_p10)
}
  0x3b   :  { %55 = dma.hbm_to_vmem [thread:$0]  %s5721_s2, 1024, %s50_s28, [#allocation6], %s4599_s29, %s4599_s29, %s4600_s30  }
  0x3c   :  { %s4535_s0 = scalar_lea.vmem %s82_s9, 9216  ;;  %p4540_p12 = scmp.lt.s32.totalorder %s82_s9, %s82_s9 }
  0x3d   :  { %p4536_p11 = scmp.ne.s32.totalorder %s82_s9, %s4535_s0  ;;  %p4541_p13 = scmp.lt.s32.totalorder %s4535_s0, %s4535_s0 }
  0x3f   :  { %p4542_p0 = por %p4541_p13, %p4540_p12 }
  0x41   :  { %p4543_p1 = pnand %p4542_p0, %p4536_p11 }
  0x43   :  { %4546 = shalt.err (!%p4543_p1)
}
  0x44   :  { %87 = dma.hbm_to_vmem [thread:$0]  %s5727_s8, 9216, %s82_s9, [#allocation9], %s4603_s19, %s4603_s19, %s4604_s20  }
  0x45   :  { %s4609_s18 = smov [#allocation13]  }
  0x46   :  { %s107_s21 = sshll.u32 %s4609_s18, 4  ;;  %s108_s21 = int_to_ptr.vmem [resolvable:$true] %s107_s21 }
  0x47   :  { %s4555_s4 = scalar_lea.vmem %s108_s21, 768  ;;  %p4560_p3 = scmp.lt.s32.totalorder %s108_s21, %s108_s21 }
  0x48   :  { %p4556_p2 = scmp.ne.s32.totalorder %s108_s21, %s4555_s4  ;;  %p4561_p4 = scmp.lt.s32.totalorder %s4555_s4, %s4555_s4 }
  0x4a   :  { %p4562_p5 = por %p4561_p4, %p4560_p3 }
  0x4c   :  { %p4563_p6 = pnand %p4562_p5, %p4556_p2 }
  0x4e   :  { %4566 = shalt.err (!%p4563_p6)
}
  0x4f   :  { %113 = dma.hbm_to_vmem [thread:$0]  %s5730_s11, 768, %s108_s21, [#allocation12], %s4605_s23, %s4605_s23, %s4606_s24  }
  0x50   :  { %4587 = dma.done.wait [#allocation3], 1024  }
  0x51   :  { %4588 = vsyncadd [#allocation3], 4294966272 }
  0x52   :  { %4589 = dma.done.wait [#allocation6], 1088  }
  0x53   :  { %4590 = vsyncadd [#allocation6], 4294966208 }
  0x54   :  { %4591 = dma.done.wait [#allocation9], 10240  }
  0x55   :  { %4592 = vsyncadd [#allocation9], 4294957056 }
  0x56   :  { %4593 = dma.done.wait [#allocation12], 9984  }
  0x57   :  { %4594 = vsyncadd [#allocation12], 4294957312  ;;  %v5734_v0 = vmov 0.0   ;;  %vm4611_vm0 = vmmov 0   ;;  %v3959_v1 = vld [vmem:[#allocation7 + $0x38] sm:$0xff]   ;;  %v3960_v2 = vld [vmem:[#allocation7 + $0x30] sm:$0xff]   ;;  %v380_v33 = vlaneseq }
  0x58   :  { %3649 = vmatprep.subr.bf16.mxu0 %v5734_v0  ;;  %3665 = vmatprep.mubr.msk.bf16.mxu0 %vm4611_vm0, %v5734_v0  ;;  %v3961_v3 = vld [vmem:[#allocation7 + $0x28] sm:$0xff]   ;;  %v3962_v4 = vld [vmem:[#allocation7 + $0x20] sm:$0xff]   ;;  %v3963_v5 = vld [vmem:[#allocation7 + $0x18] sm:$0xff]   ;;  %v4612_v31 = vmov 1966171168  }
  0x59   :  { %3669 = vmatprep.subr.bf16.mxu1 %v5734_v0  ;;  %3685 = vmatprep.mubr.msk.bf16.mxu1 %vm4611_vm0, %v5734_v0  ;;  %v3964_v6 = vld [vmem:[#allocation7 + $0x10] sm:$0xff]   ;;  %v3965_v7 = vld [vmem:[#allocation7 + $0x8] sm:$0xff]   ;;  %v3966_v8 = vld [vmem:[#allocation7] sm:$0xff]   ;;  %v378_v32 = vunpack.c.l.s4 %v4612_v31  ;;  %v4742_v35 = vshrl.u32 %v380_v33, 7 }
  0x5a   :  { %3650 = vmatpush3.bf16.msra.mxu0 %v3959_v1  ;;  %v136_v9 = vld [vmem:[#allocation5] sm:$0xf]  ;;  %v3968_v12 = vld [vmem:[#allocation8 + $0x30] sm:$0xff]   ;;  %v3969_v13 = vld [vmem:[#allocation8 + $0x28] sm:$0xff]  }
  0x5b   :  { %3651 = vmatprep.subr.bf16.mxu0 %v5734_v0  ;;  %v137_v10 = vpack.c.bf16 %v136_v9, %v136_v9  ;;  %v3967_v11 = vld [vmem:[#allocation8 + $0x38] sm:$0xff]   ;;  %v3970_v14 = vld [vmem:[#allocation8 + $0x20] sm:$0xff]   ;;  %v3972_v16 = vld [vmem:[#allocation8 + $0x10] sm:$0xff]   ;;  %v379_v34 = vunpack.c.0.s8 %v378_v32  ;;  %v4749_v42 = vsub.s32 0, %v4742_v35 }
  0x5c   :  { %3670 = vmatpush3.bf16.msra.mxu1 %v3967_v11  ;;  %v3971_v15 = vld [vmem:[#allocation8 + $0x18] sm:$0xff]   ;;  %v3973_v17 = vld [vmem:[#allocation8 + $0x8] sm:$0xff]   ;;  %v3974_v18 = vld [vmem:[#allocation8] sm:$0xff]  }
  0x5d   :  { %3671 = vmatprep.subr.bf16.mxu1 %v5734_v0  ;;  %v3299_v19 = vld [vmem:[%s5722_s3] ss:$0 sm:$0xff]  ;;  %v382_v37 = vsub.s32 %v379_v34, %v4742_v35  ;;  %5742 = vst [vmem:[#allocation20_spill] sm:$0xff] %v4749_v42  ;;  %v369_v49 = vld [vmem:[#allocation2 + $0x8] sm:$0xff]  ;;  %v370_v55 = vld [vmem:[#allocation2 + $0x10] sm:$0xff] }
  0x5e   :  { %3652 = vmatpush3.bf16.msra.mxu0 %v3960_v2  ;;  %v3309_v36 = vld [vmem:[%s5724_s5] ss:$0 sm:$0xff]  ;;  %v371_v57 = vld [vmem:[#allocation2 + $0x18] sm:$0xff]  ;;  %v4003_v34 = vld [vmem:[#allocation10 + $0x4] ss:$12 sps:$4 sm:$0xff]  }
  0x5f   :  { %3653 = vmatprep.subr.bf16.mxu0 %v5734_v0  ;;  %v368_v47 = vld [vmem:[#allocation2] sm:$0xff]  ;;  %v3977_v1 = vld [vmem:[#allocation10 + $0xac] ss:$12 sps:$4 sm:$0xff]  }
  0x60   :  { %3672 = vmatpush3.bf16.msra.mxu1 %v3968_v12  ;;  %v372_v63 = vld [vmem:[#allocation2 + $0x20] sm:$0xff]  ;;  %v374_v12 = vld [vmem:[#allocation2 + $0x30] sm:$0xff]  ;;  %v3997_v33 = vld [vmem:[#allocation10 + $0x18] ss:$12 sps:$4 sm:$0xff]  }
  0x61   :  { %3673 = vmatprep.subr.bf16.mxu1 %v5734_v0  ;;  %v3978_v9 = vld [vmem:[#allocation10 + $0x90] ss:$12 sps:$4 sm:$0xff]  }
  0x62   :  { %3654 = vmatpush3.bf16.msra.mxu0 %v3961_v3  ;;  %v3975_v3 = vld [vmem:[#allocation10 + $0xa8] ss:$12 sps:$4 sm:$0xff]   ;;  %v4000_v32 = vld [vmem:[#allocation10 + $0x50] ss:$12 sps:$4 sm:$0xff]  }
  0x63   :  { %3655 = vmatprep.subr.bf16.mxu0 %v5734_v0  ;;  %v3999_v31 = vld [vmem:[#allocation10 + $0x1c] ss:$12 sps:$4 sm:$0xff]  }
  0x64   :  { %3674 = vmatpush3.bf16.msra.mxu1 %v3969_v13  ;;  %v3983_v13 = vld [vmem:[#allocation10 + $0x7c] ss:$12 sps:$4 sm:$0xff]  }
  0x65   :  { %3675 = vmatprep.subr.bf16.mxu1 %v5734_v0 }
  0x66   :  { %3656 = vmatpush3.bf16.msra.mxu0 %v3962_v4  ;;  %v373_v4 = vld [vmem:[#allocation2 + $0x28] sm:$0xff] }
  0x67   :  { %3657 = vmatprep.subr.bf16.mxu0 %v5734_v0 }
  0x68   :  { %3676 = vmatpush3.bf16.msra.mxu1 %v3970_v14  ;;  %v3984_v14 = vld [vmem:[#allocation10 + $0xb0] ss:$12 sps:$4 sm:$0xff]  }
  0x69   :  { %3677 = vmatprep.subr.bf16.mxu1 %v5734_v0 }
  0x6a   :  { %3658 = vmatpush3.bf16.msra.mxu0 %v3963_v5 }
  0x6b   :  { %3659 = vmatprep.subr.bf16.mxu0 %v5734_v0 }
  0x6c   :  { %3678 = vmatpush3.bf16.msra.mxu1 %v3971_v15 }
  0x6d   :  { %3679 = vmatprep.subr.bf16.mxu1 %v5734_v0 }
  0x6e   :  { %3660 = vmatpush3.bf16.msra.mxu0 %v3964_v6 }
  0x6f   :  { %3661 = vmatprep.subr.bf16.mxu0 %v5734_v0 }
  0x70   :  { %3680 = vmatpush3.bf16.msra.mxu1 %v3972_v16  ;;  %v3981_v16 = vld [vmem:[#allocation10 + $0x78] ss:$12 sps:$4 sm:$0xff]  }
  0x71   :  { %3681 = vmatprep.subr.bf16.mxu1 %v5734_v0 }
  0x72   :  { %3662 = vmatpush3.bf16.msra.mxu0 %v3965_v7  ;;  %v3980_v7 = vld [vmem:[#allocation10 + $0x94] ss:$12 sps:$4 sm:$0xff]  }
  0x73   :  { %3663 = vmatprep.subr.bf16.mxu0 %v5734_v0 }
  0x74   :  { %3682 = vmatpush3.bf16.msra.mxu1 %v3973_v17  ;;  %v375_v17 = vld [vmem:[#allocation2 + $0x38] sm:$0xff] }
  0x75   :  { %3683 = vmatprep.subr.bf16.mxu1 %v5734_v0 }
  0x76   :  { %3664 = vmatpush3.bf16.msra.mxu0 %v3966_v8 }
  0x77   :  { %778 = vmatprep.subr.bf16.mxu0 %v3977_v1 }
  0x78   :  { %3684 = vmatpush3.bf16.msra.mxu1 %v3974_v18 }
  0x79   :  { %3666 = vmatmul.mubr.bf16.vlgmr.msra.gmra.mxu0 %v137_v10  ;;  %3689 = vmatprep.subr.bf16.mxu1 %v3984_v14 }
  0x7a   :  { %779 = vmatpush1.bf16.msra.mxu0 %v3975_v3 }
  0x7b   :  { %780 = vmatprep.subr.bf16.mxu0 %v3980_v7 }
  0x7e   :  { %781 = vmatpush1.bf16.msra.mxu0 %v3978_v9 }
  0x7f   :  { %782 = vmatprep.subr.bf16.mxu0 %v3983_v13 }
  0x82   :  { %783 = vmatpush1.bf16.msra.mxu0 %v3981_v16 }
 0x139   :  { %v243_v20 = vpop.f32.mrf.mxu0 }
 0x13a   :  { %v244_v21 = vadd.f32 %v3299_v19, %v243_v20  ;;  %v3987_v19 = vld [vmem:[#allocation10 + $0x64] ss:$12 sps:$4 sm:$0xff]  }
 0x13b   :  { %v3667_v22 = vpop.f32.mrf.mxu0  ;;  %v3988_v20 = vld [vmem:[#allocation10 + $0x98] ss:$12 sps:$4 sm:$0xff]   ;;  %784 = vmatprep.subr.bf16.mxu0 %v3987_v19 }
 0x13c   :  { %v3308_v23 = vmul.f32 -1.442695, %v244_v21  ;;  %v3985_v22 = vld [vmem:[#allocation10 + $0x60] ss:$12 sps:$4 sm:$0xff]  }
 0x13d   :  { %v246_v24 = vpop.f32.mrf.mxu0  ;;  %785 = vmatpush1.bf16.msra.mxu0 %v3985_v22 }
 0x13e   :  { %4167 = vpow2.f32 %v3308_v23  ;;  %v3991_v24 = vld [vmem:[#allocation10 + $0x4c] ss:$12 sps:$4 sm:$0xff]  }
 0x13f   :  { %v3668_v25 = vpop.f32.mrf.mxu0  ;;  %786 = vmatprep.subr.bf16.mxu0 %v3991_v24 }
 0x140   :  { %v3992_v25 = vld [vmem:[#allocation10 + $0x80] ss:$12 sps:$4 sm:$0xff]  }
 0x14b   :  { %v4168_v26 = vpop.eup %4167 }
 0x14c   :  { %v252_v27 = vadd.f32 1.0, %v4168_v26 }
 0x14e   :  { %4169 = vrcp.f32 %v252_v27  ;;  %v3989_v27 = vld [vmem:[#allocation10 + $0x48] ss:$12 sps:$4 sm:$0xff]  }
 0x14f   :  { %787 = vmatpush1.bf16.msra.mxu0 %v3989_v27 }
 0x15b   :  { %v4170_v28 = vpop.eup %4169 }
 0x15c   :  { %v255_v29 = vmul.f32 %v4170_v28, %v244_v21  ;;  %v3995_v28 = vld [vmem:[#allocation10 + $0x34] ss:$12 sps:$4 sm:$0xff]  }
 0x15d   :  { %788 = vmatprep.subr.bf16.mxu0 %v3995_v28 }
 0x15e   :  { %v256_v30 = vpack.c.bf16 %v255_v29, %v255_v29  ;;  %v3996_v29 = vld [vmem:[#allocation10 + $0x68] ss:$12 sps:$4 sm:$0xff]  }
 0x160   :  { %3686 = vmatmul.mubr.bf16.vlgmr.msra.gmra.mxu1 %v256_v30  ;;  %v3993_v30 = vld [vmem:[#allocation10 + $0x30] ss:$12 sps:$4 sm:$0xff]  }
 0x161   :  { %3690 = vmatpush3.bf16.msra.mxu1 %v3984_v14  ;;  %789 = vmatpush1.bf16.msra.mxu0 %v3993_v30 }
 0x162   :  { %3691 = vmatprep.subr.bf16.mxu1 %v3988_v20  ;;  %790 = vmatprep.subr.bf16.mxu0 %v3999_v31 }
 0x165   :  { %3692 = vmatpush3.bf16.msra.mxu1 %v3988_v20  ;;  %791 = vmatpush1.bf16.msra.mxu0 %v3997_v33  ;;  %v4813_v33 = vld [vmem:[%s5725_s6] ss:$0 sm:$0xff] }
 0x166   :  { %3693 = vmatprep.subr.bf16.mxu1 %v3992_v25  ;;  %792 = vmatprep.subr.bf16.mxu0 %v4003_v34 }
 0x169   :  { %3694 = vmatpush3.bf16.msra.mxu1 %v3992_v25 }
 0x16a   :  { %3695 = vmatprep.subr.bf16.mxu1 %v3996_v29 }
 0x16d   :  { %3696 = vmatpush3.bf16.msra.mxu1 %v3996_v29 }
 0x16e   :  { %3697 = vmatprep.subr.bf16.mxu1 %v4000_v32 }
 0x171   :  { %3698 = vmatpush3.bf16.msra.mxu1 %v4000_v32 }
 0x220   :  { %v362_v38 = vpop.f32.mrf.mxu1 }
 0x221   :  { %v363_v39 = vadd.f32 %v3309_v36, %v362_v38  ;;  %v4004_v36 = vld [vmem:[#allocation10 + $0x38] ss:$12 sps:$4 sm:$0xff]   ;;  %v4005_v38 = vld [vmem:[#allocation10 + $0x20] ss:$12 sps:$4 sm:$0xff]  }
 0x222   :  { %v3687_v40 = vpop.f32.mrf.mxu1  ;;  %3699 = vmatprep.subr.bf16.mxu1 %v4004_v36 }
 0x223   :  { %v383_v41 = vrot.slane %v363_v39, %v382_v37  ;;  %3700 = vmatpush3.bf16.msra.mxu1 %v4004_v36  ;;  %v5732_v39 = vmov 0   ;;  %v4006_v40 = vld [vmem:[#allocation10 + $0x8] ss:$12 sps:$4 sm:$0xff]  }
 0x224   :  { %v365_v43 = vpop.f32.mrf.mxu1  ;;  %810 = vmatprep.mubr.bf16.mxu0 %v5732_v39  ;;  %3701 = vmatprep.subr.bf16.mxu1 %v4005_v38 }
 0x225   :  { %v384_v44 = vcombine.high %v383_v41, %v383_v41  ;;  %v391_v45 = vrot.slane %v383_v41, %v382_v37 }
 0x226   :  { %v3688_v46 = vpop.f32.mrf.mxu1 }
 0x227   :  { %v404_v48 = vrot.slane %v391_v45, %v4749_v42  ;;  %v398_v50 = vrot.slane %v384_v44, %v382_v37  ;;  %v399_v58 = vcombine.high %v391_v45, %v391_v45  ;;  %v4001_v37 = vld [vmem:[#allocation10] ss:$12 sps:$4 sm:$0xff]   ;;  %3702 = vmatpush3.bf16.msra.mxu1 %v4005_v38 }
 0x228   :  { %793 = vmatpush1.bf16.msra.mxu0 %v4001_v37  ;;  %3703 = vmatprep.subr.bf16.mxu1 %v4006_v40 }
 0x229   :  { %v4752_v51 = vadd.f32 %v404_v48, %v368_v47  ;;  %v4757_v53 = vadd.f32 %v404_v48, %v369_v49  ;;  %v408_v54 = vrot.slane %v398_v50, %v4749_v42  ;;  %v412_v62 = vrot.slane %v399_v58, %v4749_v42 }
 0x22a   :  { %v400_v6 = vcombine.high %v398_v50, %v398_v50 }
 0x22b   :  { %429 = vadd.xlane.f32.xlu0 %v4752_v51  ;;  %v453_v52 = vmul.f32 %v4752_v51, %v4752_v51  ;;  %v454_v56 = vmul.f32 %v4757_v53, %v4757_v53  ;;  %v4763_v59 = vadd.f32 %v408_v54, %v370_v55  ;;  %v4766_v60 = vadd.f32 %v408_v54, %v371_v57 }
 0x22c   :  { %v4774_v5 = vadd.f32 %v412_v62, %v372_v63  ;;  %v4777_v8 = vadd.f32 %v412_v62, %v373_v4  ;;  %v416_v11 = vrot.slane %v400_v6, %v4749_v42  ;;  %3704 = vmatpush3.bf16.msra.mxu1 %v4006_v40 }
 0x22d   :  { %461 = vadd.xlane.f32.xlu1 %v453_v52  ;;  %v455_v61 = vmul.f32 %v4763_v59, %v4763_v59  ;;  %v456_v2 = vmul.f32 %v4766_v60, %v4766_v60  ;;  %3713 = vmatprep.subr.bf16.mxu1 %v5734_v0 }
 0x22e   :  { %v457_v10 = vmul.f32 %v4774_v5, %v4774_v5  ;;  %v458_v15 = vmul.f32 %v4777_v8, %v4777_v8  ;;  %v4785_v18 = vadd.f32 %v416_v11, %v374_v12  ;;  %v4788_v21 = vadd.f32 %v416_v11, %v375_v17 }
 0x22f   :  { %431 = vadd.xlane.f32.xlu0 %v4757_v53 }
 0x230   :  { %v459_v23 = vmul.f32 %v4785_v18, %v4785_v18  ;;  %v460_v26 = vmul.f32 %v4788_v21, %v4788_v21 }
 0x231   :  { %463 = vadd.xlane.f32.xlu1 %v454_v56 }
 0x233   :  { %433 = vadd.xlane.f32.xlu0 %v4763_v59 }
 0x235   :  { %435 = vadd.xlane.f32.xlu1 %v4766_v60 }
 0x237   :  { %465 = vadd.xlane.f32.xlu0 %v455_v61 }
 0x239   :  { %467 = vadd.xlane.f32.xlu1 %v456_v2 }
 0x23b   :  { %437 = vadd.xlane.f32.xlu0 %v4774_v5 }
 0x23d   :  { %439 = vadd.xlane.f32.xlu1 %v4777_v8 }
 0x23f   :  { %469 = vadd.xlane.f32.xlu0 %v457_v10 }
 0x241   :  { %471 = vadd.xlane.f32.xlu1 %v458_v15 }
 0x243   :  { %441 = vadd.xlane.f32.xlu0 %v4785_v18 }
 0x245   :  { %443 = vadd.xlane.f32.xlu1 %v4788_v21 }
 0x247   :  { %473 = vadd.xlane.f32.xlu0 %v459_v23 }
 0x249   :  { %475 = vadd.xlane.f32.xlu1 %v460_v26 }
 0x2b4   :  { %v430_v41 = vpop.xlane.xlu0 %429 }
 0x2b5   :  { %v445_v43 = vmul.f32 0.03125, %v430_v41 }
 0x2b6   :  { %v462_v44 = vpop.xlane.xlu1 %461 }
 0x2b7   :  { %v485_v45 = vmul.f32 %v445_v43, %v445_v43  ;;  %v477_v46 = vmul.f32 0.03125, %v462_v44  ;;  %v501_v23 = vsub.f32 %v4752_v51, %v445_v43 }
 0x2b8   :  { %v432_v47 = vpop.xlane.xlu0 %431 }
 0x2b9   :  { %v493_v48 = vsub.f32 %v477_v46, %v485_v45  ;;  %v446_v49 = vmul.f32 0.03125, %v432_v47  ;;  %v3319_v46 = vld [vmem:[%s5726_s7] ss:$0 sm:$0xff] }
 0x2ba   :  { %v464_v50 = vpop.xlane.xlu1 %463 }
 0x2bb   :  { %v509_v52 = vadd.f32 1e-06, %v493_v48  ;;  %v486_v54 = vmul.f32 %v446_v49, %v446_v49  ;;  %v478_v55 = vmul.f32 0.03125, %v464_v50  ;;  %v502_v36 = vsub.f32 %v4757_v53, %v446_v49 }
 0x2bc   :  { %v434_v56 = vpop.xlane.xlu0 %433 }
 0x2bd   :  { %4171 = vrsqrt.f32 %v509_v52  ;;  %v494_v57 = vsub.f32 %v478_v55, %v486_v54  ;;  %v447_v58 = vmul.f32 0.03125, %v434_v56 }
 0x2be   :  { %v436_v61 = vpop.xlane.xlu1 %435 }
 0x2bf   :  { %v510_v62 = vadd.f32 1e-06, %v494_v57  ;;  %v4797_v63 = vmul.f32 0.03125, %v436_v61  ;;  %v487_v2 = vmul.f32 %v447_v58, %v447_v58  ;;  %v503_v53 = vsub.f32 %v4763_v59, %v447_v58 }
 0x2c0   :  { %v466_v1 = vpop.xlane.xlu0 %465 }
 0x2c1   :  { %4173 = vrsqrt.f32 %v510_v62  ;;  %v479_v3 = vmul.f32 0.03125, %v466_v1  ;;  %v488_v6 = vmul.f32 %v4797_v63, %v4797_v63  ;;  %v504_v57 = vsub.f32 %v4766_v60, %v4797_v63 }
 0x2c2   :  { %v468_v4 = vpop.xlane.xlu1 %467 }
 0x2c3   :  { %v495_v7 = vsub.f32 %v479_v3, %v487_v2  ;;  %v480_v9 = vmul.f32 0.03125, %v468_v4 }
 0x2c4   :  { %v438_v10 = vpop.xlane.xlu0 %437 }
 0x2c5   :  { %v511_v11 = vadd.f32 1e-06, %v495_v7  ;;  %v496_v12 = vsub.f32 %v480_v9, %v488_v6  ;;  %v4801_v13 = vmul.f32 0.03125, %v438_v10 }
 0x2c6   :  { %v440_v14 = vpop.xlane.xlu1 %439 }
 0x2c7   :  { %4175 = vrsqrt.f32 %v511_v11  ;;  %v512_v15 = vadd.f32 1e-06, %v496_v12  ;;  %v4803_v16 = vmul.f32 0.03125, %v440_v14  ;;  %v489_v19 = vmul.f32 %v4801_v13, %v4801_v13 }
 0x2c8   :  { %v470_v17 = vpop.xlane.xlu0 %469  ;;  %v505_v60 = vsub.f32 %v4774_v5, %v4801_v13 }
 0x2c9   :  { %4177 = vrsqrt.f32 %v512_v15  ;;  %v481_v20 = vmul.f32 0.03125, %v470_v17  ;;  %v490_v25 = vmul.f32 %v4803_v16, %v4803_v16  ;;  %v506_v10 = vsub.f32 %v4777_v8, %v4803_v16 }
 0x2ca   :  { %v4172_v22 = vpop.eup %4171  ;;  %v472_v24 = vpop.xlane.xlu1 %471 }
 0x2cb   :  { %v497_v26 = vsub.f32 %v481_v20, %v489_v19  ;;  %v482_v27 = vmul.f32 0.03125, %v472_v24  ;;  %v525_v29 = vmul.f32 %v4172_v22, %v501_v23 }
 0x2cc   :  { %v442_v28 = vpop.xlane.xlu0 %441 }
 0x2cd   :  { %v513_v30 = vadd.f32 1e-06, %v497_v26  ;;  %v498_v31 = vsub.f32 %v482_v27, %v490_v25  ;;  %v451_v32 = vmul.f32 0.03125, %v442_v28  ;;  %v540_v43 = vmul.f32 %v4813_v33, %v525_v29 }
 0x2ce   :  { %v4174_v34 = vpop.eup %4173  ;;  %v444_v51 = vpop.xlane.xlu1 %443 }
 0x2cf   :  { %4179 = vrsqrt.f32 %v513_v30  ;;  %v514_v37 = vadd.f32 1e-06, %v498_v31  ;;  %v452_v38 = vmul.f32 0.03125, %v444_v51  ;;  %v526_v41 = vmul.f32 %v4174_v34, %v502_v36  ;;  %v4844_v30 = vld [vmem:[#allocation11 + $0xa8] ss:$12 sps:$4 sm:$0xff]  }
 0x2d0   :  { %v474_v40 = vpop.xlane.xlu0 %473  ;;  %v491_v44 = vmul.f32 %v451_v32, %v451_v32  ;;  %v555_v55 = vadd.f32 %v3319_v46, %v540_v43  ;;  %v507_v5 = vsub.f32 %v4785_v18, %v451_v32  ;;  %v4846_v31 = vld [vmem:[#allocation11 + $0xb0] ss:$12 sps:$4 sm:$0xff]   ;;  %v4851_v32 = vld [vmem:[#allocation11 + $0x94] ss:$12 sps:$4 sm:$0xff]   ;;  %v4856_v34 = vld [vmem:[#allocation11 + $0x98] ss:$12 sps:$4 sm:$0xff]  }
 0x2d1   :  { %4181 = vrsqrt.f32 %v514_v37  ;;  %v483_v45 = vmul.f32 0.03125, %v474_v40  ;;  %v541_v48 = vmul.f32 %v4813_v33, %v526_v41  ;;  %v492_v49 = vmul.f32 %v452_v38, %v452_v38  ;;  %v4861_v36 = vld [vmem:[#allocation11 + $0x7c] ss:$12 sps:$4 sm:$0xff]   ;;  %v4864_v51 = vld [vmem:[#allocation11 + $0x78] ss:$12 sps:$4 sm:$0xff]  }
 0x2d2   :  { %v476_v47 = vpop.xlane.xlu1 %475  ;;  %v508_v23 = vsub.f32 %v4788_v21, %v452_v38  ;;  %v4842_v21 = vld [vmem:[#allocation11 + $0xac] ss:$12 sps:$4 sm:$0xff]   ;;  %v4871_v38 = vld [vmem:[#allocation11 + $0x64] ss:$12 sps:$4 sm:$0xff]   ;;  %v4876_v41 = vld [vmem:[#allocation11 + $0x68] ss:$12 sps:$4 sm:$0xff]  }
 0x2d3   :  { %v499_v50 = vsub.f32 %v483_v45, %v491_v44  ;;  %v484_v52 = vmul.f32 0.03125, %v476_v47  ;;  %v556_v56 = vadd.f32 %v3319_v46, %v541_v48  ;;  %1079 = vmatprep.subr.bf16.mxu0 %v4842_v21  ;;  %v4866_v37 = vld [vmem:[#allocation11 + $0x80] ss:$12 sps:$4 sm:$0xff]   ;;  %v4881_v43 = vld [vmem:[#allocation11 + $0x48] ss:$12 sps:$4 sm:$0xff]  }
 0x2d4   :  { %v4176_v54 = vpop.eup %4175  ;;  %v4874_v40 = vld [vmem:[#allocation11 + $0x60] ss:$12 sps:$4 sm:$0xff]   ;;  %v4886_v45 = vld [vmem:[#allocation11 + $0x50] ss:$12 sps:$4 sm:$0xff]   ;;  %v4895_v48 = vld [vmem:[#allocation11 + $0x38] ss:$12 sps:$4 sm:$0xff]  }
 0x2d5   :  { %v515_v61 = vadd.f32 1e-06, %v499_v50  ;;  %v500_v62 = vsub.f32 %v484_v52, %v492_v49  ;;  %v527_v1 = vmul.f32 %v4176_v54, %v503_v53  ;;  %v630_v3 = vpack.c.bf16 %v556_v56, %v555_v55  ;;  %v4883_v44 = vld [vmem:[#allocation11 + $0x4c] ss:$12 sps:$4 sm:$0xff]   ;;  %v4893_v47 = vld [vmem:[#allocation11 + $0x30] ss:$12 sps:$4 sm:$0xff]  }
 0x2d6   :  { %v4178_v2 = vpop.eup %4177  ;;  %v4899_v53 = vld [vmem:[#allocation11 + $0x1c] ss:$12 sps:$4 sm:$0xff]   ;;  %v4903_v49 = vld [vmem:[#allocation11 + $0x18] ss:$12 sps:$4 sm:$0xff]   ;;  %v4905_v50 = vld [vmem:[#allocation11 + $0x20] ss:$12 sps:$4 sm:$0xff]  }
 0x2d7   :  { %4183 = vrsqrt.f32 %v515_v61  ;;  %v516_v4 = vadd.f32 1e-06, %v500_v62  ;;  %v528_v6 = vmul.f32 %v4178_v2, %v504_v57  ;;  %v542_v7 = vmul.f32 %v4813_v33, %v527_v1  ;;  %811 = vmatmul.mubr.bf16.vlgmr.msra.gmra.mxu0 %v630_v3  ;;  %3705 = vmatprep.mubr.bf16.mxu1 %v630_v3  ;;  %v4909_v52 = vld [vmem:[#allocation11 + $0x4] ss:$12 sps:$4 sm:$0xff]   ;;  %v4913_v54 = vld [vmem:[#allocation11] ss:$12 sps:$4 sm:$0xff]  }
 0x2d8   :  { %820 = vmatprep.mubr.bf16.mxu0 %v5732_v39  ;;  %1080 = vmatpush1.bf16.msra.mxu0 %v4844_v30  ;;  %v4915_v55 = vld [vmem:[#allocation11 + $0x8] ss:$12 sps:$4 sm:$0xff]   ;;  %v627_v56 = vld [vmem:[%s5729_s10] sm:$0x7]  ;;  %v4930_v61 = vsub.s32 2, %v4742_v35  ;;  %v4934_v2 = vsub.s32 1, %v4742_v35 }
 0x2d9   :  { %4185 = vrsqrt.f32 %v516_v4  ;;  %v543_v59 = vmul.f32 %v4813_v33, %v528_v6  ;;  %v557_v58 = vadd.f32 %v3319_v46, %v542_v7  ;;  %1081 = vmatprep.subr.bf16.mxu0 %v4851_v32  ;;  %v4927_v57 = vrot.slane %v627_v56, %v4749_v42 }
 0x2da   :  { %5743 = vst [vmem:[#allocation21_spill] sm:$0xff] %v4930_v61  ;;  %5744 = vst [vmem:[#allocation22_spill] sm:$0xff] %v4934_v2  ;;  %v4937_v6 = vrot.slane %v627_v56, %v4930_v61 }
 0x2db   :  { %v558_v63 = vadd.f32 %v3319_v46, %v543_v59 }
 0x2dc   :  { %v4180_v9 = vpop.eup %4179 }
 0x2dd   :  { %v631_v11 = vpack.c.bf16 %v558_v63, %v557_v58  ;;  %v529_v12 = vmul.f32 %v4180_v9, %v505_v60  ;;  %v4941_v60 = vrot.slane %v627_v56, %v4934_v2 }
 0x2de   :  { %v4182_v14 = vpop.eup %4181 }
 0x2df   :  { %3706 = vmatmul.mubr.bf16.vlgmr.msra.gmra.mxu1 %v631_v11  ;;  %v530_v15 = vmul.f32 %v4182_v14, %v506_v10  ;;  %v544_v17 = vmul.f32 %v4813_v33, %v529_v12  ;;  %821 = vmatmul.mubr.bf16.gmra.mxu0 %v631_v11 }
 0x2e0   :  { %830 = vmatprep.mubr.bf16.mxu0 %v5732_v39  ;;  %3714 = vmatpush3.bf16.msra.mxu1 %v4846_v31 }
 0x2e1   :  { %v545_v19 = vmul.f32 %v4813_v33, %v530_v15  ;;  %v559_v13 = vadd.f32 %v3319_v46, %v544_v17  ;;  %3715 = vmatprep.subr.bf16.mxu1 %v5734_v0 }
 0x2e3   :  { %v560_v20 = vadd.f32 %v3319_v46, %v545_v19 }
 0x2e4   :  { %v4184_v22 = vpop.eup %4183  ;;  %3716 = vmatpush3.bf16.msra.mxu1 %v4856_v34 }
 0x2e5   :  { %v632_v8 = vpack.c.bf16 %v560_v20, %v559_v13  ;;  %v531_v16 = vmul.f32 %v4184_v22, %v507_v5  ;;  %3717 = vmatprep.subr.bf16.mxu1 %v5734_v0 }
 0x2e6   :  { %v4186_v24 = vpop.eup %4185 }
 0x2e7   :  { %3709 = vmatprep.mubr.bf16.mxu1 %v632_v8  ;;  %v532_v25 = vmul.f32 %v4186_v24, %v508_v23  ;;  %v546_v26 = vmul.f32 %v4813_v33, %v531_v16  ;;  %831 = vmatmul.mubr.bf16.gmra.mxu0 %v632_v8 }
 0x2e8   :  { %840 = vmatprep.mubr.bf16.mxu0 %v5732_v39  ;;  %3718 = vmatpush3.bf16.msra.mxu1 %v4866_v37 }
 0x2e9   :  { %v547_v27 = vmul.f32 %v4813_v33, %v532_v25  ;;  %v561_v28 = vadd.f32 %v3319_v46, %v546_v26  ;;  %v4854_v33 = vld [vmem:[#allocation11 + $0x90] ss:$12 sps:$4 sm:$0xff]   ;;  %3719 = vmatprep.subr.bf16.mxu1 %v5734_v0 }
 0x2ea   :  { %1082 = vmatpush1.bf16.msra.mxu0 %v4854_v33 }
 0x2eb   :  { %v562_v29 = vadd.f32 %v3319_v46, %v547_v27  ;;  %1083 = vmatprep.subr.bf16.mxu0 %v4861_v36  ;;  %v4888_v46 = vld [vmem:[#allocation11 + $0x34] ss:$12 sps:$4 sm:$0xff]  }
 0x2ec   :  { %3720 = vmatpush3.bf16.msra.mxu1 %v4876_v41 }
 0x2ed   :  { %v633_v18 = vpack.c.bf16 %v562_v29, %v561_v28  ;;  %3721 = vmatprep.subr.bf16.mxu1 %v5734_v0 }
 0x2ee   :  { %1084 = vmatpush1.bf16.msra.mxu0 %v4864_v51 }
 0x2ef   :  { %3710 = vmatmul.mubr.bf16.gmra.mxu1 %v633_v18  ;;  %841 = vmatmul.mubr.bf16.gmra.mxu0 %v633_v18 }
 0x2f0   :  { %3729 = vmatprep.mubr.msk.bf16.mxu1 %vm4611_vm0, %v5734_v0  ;;  %1111 = vmatprep.mubr.bf16.mxu0 %v5732_v39 }
 0x2f1   :  { %1085 = vmatprep.subr.bf16.mxu0 %v4871_v38  ;;  %3722 = vmatpush3.bf16.msra.mxu1 %v4886_v45 }
 0x2f2   :  { %1086 = vmatpush1.bf16.msra.mxu0 %v4874_v40  ;;  %3723 = vmatprep.subr.bf16.mxu1 %v5734_v0 }
 0x2f3   :  { %1087 = vmatprep.subr.bf16.mxu0 %v4883_v44 }
 0x2f5   :  { %3724 = vmatpush3.bf16.msra.mxu1 %v4895_v48 }
 0x2f6   :  { %1088 = vmatpush1.bf16.msra.mxu0 %v4881_v43  ;;  %3725 = vmatprep.subr.bf16.mxu1 %v5734_v0 }
 0x2f7   :  { %1089 = vmatprep.subr.bf16.mxu0 %v4888_v46 }
 0x2f9   :  { %3726 = vmatpush3.bf16.msra.mxu1 %v4905_v50 }
 0x2fa   :  { %1090 = vmatpush1.bf16.msra.mxu0 %v4893_v47  ;;  %3727 = vmatprep.subr.bf16.mxu1 %v5734_v0 }
 0x2fb   :  { %1091 = vmatprep.subr.bf16.mxu0 %v4899_v53 }
 0x2fd   :  { %3728 = vmatpush3.bf16.msra.mxu1 %v4915_v55 }
 0x2fe   :  { %1092 = vmatpush1.bf16.msra.mxu0 %v4903_v49  ;;  %3733 = vmatprep.subr.bf16.mxu1 %v5734_v0 }
 0x2ff   :  { %1093 = vmatprep.subr.bf16.mxu0 %v4909_v52 }
 0x302   :  { %1094 = vmatpush1.bf16.msra.mxu0 %v4913_v54 }
 0x303   :  { %1208 = vmatprep.subr.bf16.mxu0 %v4842_v21 }
 0x397   :  { %v812_v62 = vpop.f32.mrf.mxu0 }
 0x398   :  { %v813_v1 = vadd.f32 %v812_v62, %v4927_v57 }
 0x399   :  { %v814_v3 = vpop.f32.mrf.mxu0 }
 0x39a   :  { %v3344_v4 = vmul.f32 -1.442695, %v813_v1  ;;  %v815_v12 = vadd.f32 %v814_v3, %v4941_v60 }
 0x39b   :  { %v816_v7 = vpop.f32.mrf.mxu0 }
 0x39c   :  { %4187 = vpow2.f32 %v3344_v4  ;;  %v817_v59 = vadd.f32 %v816_v7, %v4927_v57  ;;  %v3346_v13 = vmul.f32 -1.442695, %v815_v12 }
 0x39d   :  { %v818_v58 = vpop.f32.mrf.mxu0 }
 0x39e   :  { %v3345_v63 = vmul.f32 -1.442695, %v817_v59  ;;  %v819_v15 = vadd.f32 %v818_v58, %v4941_v60 }
 0x39f   :  { %v3707_v9 = vpop.f32.mrf.mxu1  ;;  %v4943_v10 = vpop.f32.mrf.mxu0 }
 0x3a0   :  { %v4946_v35 = vadd.f32 %v3707_v9, %v4937_v6  ;;  %4189 = vpow2.f32 %v3345_v63  ;;  %v3347_v22 = vmul.f32 -1.442695, %v819_v15 }
 0x3a1   :  { %v885_v11 = vpop.f32.mrf.mxu1  ;;  %v4949_v14 = vpop.f32.mrf.mxu0  ;;  %4191 = vpow2.f32 %v3346_v13 }
 0x3a2   :  { %4193 = vpow2.f32 %v3347_v22 }
 0x3a3   :  { %v3708_v17 = vpop.f32.mrf.mxu1  ;;  %v4952_v19 = vpop.f32.mrf.mxu0 }
 0x3a4   :  { %v4955_v5 = vadd.f32 %v3708_v17, %v4937_v6 }
 0x3a5   :  { %v4957_v20 = vpop.f32.mrf.mxu0  ;;  %v888_v28 = vpop.f32.mrf.mxu1 }
 0x3a7   :  { %v832_v23 = vpop.f32.mrf.mxu0 }
 0x3a8   :  { %v4960_v8 = vadd.f32 %v832_v23, %v4927_v57 }
 0x3a9   :  { %v4188_v16 = vpop.eup %4187  ;;  %v834_v24 = vpop.f32.mrf.mxu0 }
 0x3aa   :  { %v922_v25 = vadd.f32 1.0, %v4188_v16  ;;  %v4963_v26 = vadd.f32 %v834_v24, %v4941_v60  ;;  %v4989_v24 = vld [vmem:[#allocation13] sm:$0xff] }
 0x3ab   :  { %v836_v27 = vpop.f32.mrf.mxu0 }
 0x3ac   :  { %4195 = vrcp.f32 %v922_v25  ;;  %v4966_v29 = vadd.f32 %v836_v27, %v4927_v57 }
 0x3ad   :  { %v4190_v18 = vpop.eup %4189  ;;  %v838_v56 = vpop.f32.mrf.mxu0 }
 0x3ae   :  { %v923_v62 = vadd.f32 1.0, %v4190_v18  ;;  %v4969_v1 = vadd.f32 %v838_v56, %v4941_v60  ;;  %v4192_v23 = vpop.eup %4191  ;;  %v886_v56 = vadd.f32 %v885_v11, %v4937_v6 }
 0x3af   :  { %v3711_v3 = vpop.f32.mrf.mxu1  ;;  %v842_v4 = vpop.f32.mrf.mxu0  ;;  %v934_v27 = vadd.f32 1.0, %v4192_v23 }
 0x3b0   :  { %v4972_v7 = vadd.f32 %v3711_v3, %v4937_v6  ;;  %4197 = vrcp.f32 %v923_v62  ;;  %v4975_v59 = vadd.f32 %v842_v4, %v4927_v57  ;;  %v4194_v16 = vpop.eup %4193  ;;  %v4993_v3 = vld [vmem:[#allocation13 + $0x8] sm:$0xff] }
 0x3b1   :  { %v901_v58 = vpop.f32.mrf.mxu1  ;;  %v844_v63 = vpop.f32.mrf.mxu0  ;;  %v935_v18 = vadd.f32 1.0, %v4194_v16  ;;  %4199 = vrcp.f32 %v934_v27 }
 0x3b2   :  { %5745 = vst [vmem:[#allocation23_spill] sm:$0xff] %v4972_v7  ;;  %v4978_v9 = vadd.f32 %v901_v58, %v4937_v6  ;;  %v4981_v12 = vadd.f32 %v844_v63, %v4941_v60  ;;  %v889_v63 = vadd.f32 %v888_v28, %v4937_v6 }
 0x3b3   :  { %v3712_v15 = vpop.f32.mrf.mxu1  ;;  %v846_v17 = vpop.f32.mrf.mxu0  ;;  %4201 = vrcp.f32 %v935_v18  ;;  %v823_v18 = vadd.f32 %v4943_v10, %v4927_v57 }
 0x3b4   :  { %v4984_v13 = vadd.f32 %v3712_v15, %v4937_v6  ;;  %v4987_v22 = vadd.f32 %v846_v17, %v4927_v57 }
 0x3b5   :  { %v5044_v28 = vpop.f32.mrf.mxu1 }
 0x3b6   :  { %5746 = vst [vmem:[#allocation24_spill] sm:$0xff] %v4984_v13 }
 0x3b9   :  { %v4196_v25 = vpop.eup %4195 }
 0x3ba   :  { %v940_v62 = vmul.f32 %v4196_v25, %v4989_v24 }
 0x3bc   :  { %v942_v4 = vadd.f32 %v940_v62, %v886_v56 }
 0x3bd   :  { %v4198_v58 = vpop.eup %4197 }
 0x3be   :  { %v941_v15 = vmul.f32 %v4198_v58, %v4993_v3  ;;  %4203 = vtanh.f32 %v942_v4  ;;  %v4200_v39 = vpop.eup %4199 }
 0x3bf   :  { %v946_v0 = vsub.f32 1.0, %v4200_v39  ;;  %v5747_v39 = vmov 0.0  }
 0x3c0   :  { %v943_v17 = vadd.f32 %v941_v15, %v889_v63  ;;  %v4202_v23 = vpop.eup %4201  ;;  %v827_v15 = vadd.f32 %v4952_v19, %v4927_v57 }
 0x3c1   :  { %v947_v11 = vsub.f32 1.0, %v4202_v23 }
 0x3c2   :  { %4205 = vtanh.f32 %v943_v17 }
 0x3cb   :  { %v4204_v16 = vpop.eup %4203 }
 0x3cc   :  { %v4997_v25 = vmul.f32 %v4204_v16, %v946_v0  ;;  %v5748_v0 = vmov 0   ;;  %v825_v16 = vadd.f32 %v4949_v14, %v4941_v60 }
 0x3cf   :  { %v4206_v61 = vpop.eup %4205 }
 0x3d0   :  { %v4999_v13 = vmul.f32 %v4206_v61, %v947_v11  ;;  %v5042_v61 = vpop.f32.mrf.mxu0 }
 0x3d1   :  { %5749 = vst [vmem:[#allocation25_spill] sm:$0xff] %v5042_v61 }
 0x3d2   :  { %v5003_v27 = vpack.c.bf16 %v4999_v13, %v4997_v25 }
 0x3d4   :  { %1112 = vmatmul.mubr.bf16.vlgmr.msra.gmra.mxu0 %v5003_v27  ;;  %3730 = vmatmul.mubr.bf16.vlgmr.msra.gmra.mxu1 %v5003_v27 }
 0x3d5   :  { %1209 = vmatpush1.bf16.msra.mxu0 %v4844_v30  ;;  %3734 = vmatpush3.bf16.msra.mxu1 %v4846_v31 }
 0x3d6   :  { %1210 = vmatprep.subr.bf16.mxu0 %v4851_v32  ;;  %3735 = vmatprep.subr.bf16.mxu1 %v5747_v39 }
 0x3d7   :  { %1240 = vmatprep.mubr.bf16.mxu0 %v5748_v0  ;;  %3749 = vmatprep.mubr.msk.bf16.mxu1 %vm4611_vm0, %v5747_v39 }
 0x3d9   :  { %1211 = vmatpush1.bf16.msra.mxu0 %v4854_v33  ;;  %3736 = vmatpush3.bf16.msra.mxu1 %v4856_v34 }
 0x3da   :  { %1212 = vmatprep.subr.bf16.mxu0 %v4861_v36  ;;  %3737 = vmatprep.subr.bf16.mxu1 %v5747_v39 }
 0x3dd   :  { %1213 = vmatpush1.bf16.msra.mxu0 %v4864_v51  ;;  %3738 = vmatpush3.bf16.msra.mxu1 %v4866_v37 }
 0x3de   :  { %1214 = vmatprep.subr.bf16.mxu0 %v4871_v38  ;;  %3739 = vmatprep.subr.bf16.mxu1 %v5747_v39 }
 0x3e1   :  { %1215 = vmatpush1.bf16.msra.mxu0 %v4874_v40  ;;  %3740 = vmatpush3.bf16.msra.mxu1 %v4876_v41 }
 0x3e2   :  { %1216 = vmatprep.subr.bf16.mxu0 %v4883_v44  ;;  %3741 = vmatprep.subr.bf16.mxu1 %v5747_v39 }
 0x3e5   :  { %1217 = vmatpush1.bf16.msra.mxu0 %v4881_v43  ;;  %3742 = vmatpush3.bf16.msra.mxu1 %v4886_v45 }
 0x3e6   :  { %1218 = vmatprep.subr.bf16.mxu0 %v4888_v46  ;;  %3743 = vmatprep.subr.bf16.mxu1 %v5747_v39 }
 0x3e9   :  { %1219 = vmatpush1.bf16.msra.mxu0 %v4893_v47  ;;  %3744 = vmatpush3.bf16.msra.mxu1 %v4895_v48 }
 0x3ea   :  { %1220 = vmatprep.subr.bf16.mxu0 %v4899_v53  ;;  %3745 = vmatprep.subr.bf16.mxu1 %v5747_v39 }
 0x3ed   :  { %1221 = vmatpush1.bf16.msra.mxu0 %v4903_v49  ;;  %3746 = vmatpush3.bf16.msra.mxu1 %v4905_v50 }
 0x3ee   :  { %1222 = vmatprep.subr.bf16.mxu0 %v4909_v52  ;;  %3747 = vmatprep.subr.bf16.mxu1 %v5747_v39 }
 0x3f1   :  { %1223 = vmatpush1.bf16.msra.mxu0 %v4913_v54  ;;  %3748 = vmatpush3.bf16.msra.mxu1 %v4915_v55 }
 0x3f2   :  { %1337 = vmatprep.subr.bf16.mxu0 %v4842_v21  ;;  %3753 = vmatprep.subr.bf16.mxu1 %v5747_v39 }
 0x494   :  { %v1113_v56 = vpop.f32.mrf.mxu0  ;;  %v1156_v62 = vpop.f32.mrf.mxu1 }
 0x495   :  { %v1163_v4 = vadd.f32 %v1113_v56, %v823_v18  ;;  %v829_v18 = vadd.f32 %v4957_v20, %v4941_v60 }
 0x496   :  { %v1115_v58 = vpop.f32.mrf.mxu0  ;;  %v3731_v63 = vpop.f32.mrf.mxu1 }
 0x497   :  { %v3372_v17 = vmul.f32 -1.442695, %v1163_v4  ;;  %v1177_v7 = vadd.f32 %v1115_v58, %v825_v16 }
 0x498   :  { %v1117_v23 = vpop.f32.mrf.mxu0  ;;  %v1159_v21 = vpop.f32.mrf.mxu1 }
 0x499   :  { %4207 = vpow2.f32 %v3372_v17  ;;  %v1164_v11 = vadd.f32 %v1117_v23, %v827_v15  ;;  %v3374_v63 = vmul.f32 -1.442695, %v1177_v7  ;;  %v1191_v17 = vadd.f32 %v1156_v62, %v4989_v24 }
 0x49a   :  { %v3732_v2 = vpop.f32.mrf.mxu1  ;;  %v1119_v10 = vpop.f32.mrf.mxu0  ;;  %v1192_v7 = vadd.f32 %v1159_v21, %v4993_v3 }
 0x49b   :  { %v3373_v42 = vmul.f32 -1.442695, %v1164_v11  ;;  %v1178_v56 = vadd.f32 %v1119_v10, %v829_v18 }
 0x49d   :  { %4209 = vpow2.f32 %v3373_v42  ;;  %v3375_v61 = vmul.f32 -1.442695, %v1178_v56 }
 0x49e   :  { %4211 = vpow2.f32 %v3374_v63 }
 0x49f   :  { %4213 = vpow2.f32 %v3375_v61 }
 0x4a6   :  { %v4208_v57 = vpop.eup %4207 }
 0x4a7   :  { %v1171_v19 = vadd.f32 1.0, %v4208_v57 }
 0x4a9   :  { %4215 = vrcp.f32 %v1171_v19 }
 0x4aa   :  { %v4210_v4 = vpop.eup %4209 }
 0x4ab   :  { %v1172_v14 = vadd.f32 1.0, %v4210_v4  ;;  %v4212_v15 = vpop.eup %4211 }
 0x4ac   :  { %v4214_v2 = vpop.eup %4213  ;;  %v1185_v58 = vadd.f32 1.0, %v4212_v15 }
 0x4ad   :  { %4217 = vrcp.f32 %v1172_v14  ;;  %v1186_v16 = vadd.f32 1.0, %v4214_v2 }
 0x4ae   :  { %4219 = vrcp.f32 %v1185_v58 }
 0x4af   :  { %4221 = vrcp.f32 %v1186_v16  ;;  %v905_v16 = vadd.f32 %v5044_v28, %v4937_v6  ;;  %v4039_v6 = vld [vmem:[#allocation10 + $0x168] ss:$12 sps:$4 sm:$0xff]  }
 0x4b6   :  { %v4216_v23 = vpop.eup %4215 }
 0x4b7   :  { %v1193_v20 = vmul.f32 %v4216_v23, %v1191_v17 }
 0x4b9   :  { %v1195_v42 = vadd.f32 %v1193_v20, %v4946_v35 }
 0x4ba   :  { %v4218_v11 = vpop.eup %4217 }
 0x4bb   :  { %4223 = vtanh.f32 %v1195_v42  ;;  %v1194_v61 = vmul.f32 %v4218_v11, %v1192_v7  ;;  %v4220_v18 = vpop.eup %4219 }
 0x4bc   :  { %v4222_v56 = vpop.eup %4221  ;;  %v1199_v63 = vsub.f32 1.0, %v4220_v18  ;;  %v1203_v19 = vmul.f32 %v4220_v18, %v4997_v25 }
 0x4bd   :  { %v1196_v10 = vadd.f32 %v1194_v61, %v4955_v5  ;;  %v1200_v4 = vsub.f32 1.0, %v4222_v56  ;;  %v1204_v21 = vmul.f32 %v4222_v56, %v4999_v13 }
 0x4bf   :  { %4225 = vtanh.f32 %v1196_v10 }
 0x4c8   :  { %v4224_v57 = vpop.eup %4223 }
 0x4c9   :  { %v1201_v62 = vmul.f32 %v4224_v57, %v1199_v63 }
 0x4cb   :  { %v5059_v14 = vadd.f32 %v1203_v19, %v1201_v62 }
 0x4cc   :  { %v4226_v35 = vpop.eup %4225 }
 0x4cd   :  { %v1202_v15 = vmul.f32 %v4226_v35, %v1200_v4  ;;  %v4045_v35 = vld [vmem:[#allocation10 + $0x154] ss:$12 sps:$4 sm:$0xff]  }
 0x4cf   :  { %v5062_v2 = vadd.f32 %v1204_v21, %v1202_v15  ;;  %v4046_v15 = vld [vmem:[#allocation10 + $0x158] ss:$12 sps:$4 sm:$0xff]   ;;  %v4049_v21 = vld [vmem:[#allocation10 + $0x13c] ss:$12 sps:$4 sm:$0xff]  }
 0x4d1   :  { %v5066_v5 = vpack.c.bf16 %v5062_v2, %v5059_v14 }
 0x4d3   :  { %1241 = vmatmul.mubr.bf16.vlgmr.msra.gmra.mxu0 %v5066_v5  ;;  %3750 = vmatmul.mubr.bf16.vlgmr.msra.gmra.mxu1 %v5066_v5 }
 0x4d4   :  { %1338 = vmatpush1.bf16.msra.mxu0 %v4844_v30  ;;  %3754 = vmatpush3.bf16.msra.mxu1 %v4846_v31  ;;  %v4041_v30 = vld [vmem:[#allocation10 + $0x16c] ss:$12 sps:$4 sm:$0xff]   ;;  %v5103_v31 = vld [vmem:[#allocation10 + $0x170] ss:$12 sps:$4 sm:$0xff]  }
 0x4d5   :  { %1339 = vmatprep.subr.bf16.mxu0 %v4851_v32  ;;  %3755 = vmatprep.subr.bf16.mxu1 %v5747_v39 }
 0x4d6   :  { %1369 = vmatprep.mubr.bf16.mxu0 %v5748_v0  ;;  %3769 = vmatprep.mubr.msk.bf16.mxu1 %vm4611_vm0, %v5747_v39 }
 0x4d8   :  { %1340 = vmatpush1.bf16.msra.mxu0 %v4854_v33  ;;  %3756 = vmatpush3.bf16.msra.mxu1 %v4856_v34 }
 0x4d9   :  { %1341 = vmatprep.subr.bf16.mxu0 %v4861_v36  ;;  %3757 = vmatprep.subr.bf16.mxu1 %v5747_v39 }
 0x4dc   :  { %1342 = vmatpush1.bf16.msra.mxu0 %v4864_v51  ;;  %3758 = vmatpush3.bf16.msra.mxu1 %v4866_v37 }
 0x4dd   :  { %1343 = vmatprep.subr.bf16.mxu0 %v4871_v38  ;;  %3759 = vmatprep.subr.bf16.mxu1 %v5747_v39 }
 0x4e0   :  { %1344 = vmatpush1.bf16.msra.mxu0 %v4874_v40  ;;  %3760 = vmatpush3.bf16.msra.mxu1 %v4876_v41 }
 0x4e1   :  { %1345 = vmatprep.subr.bf16.mxu0 %v4883_v44  ;;  %3761 = vmatprep.subr.bf16.mxu1 %v5747_v39 }
 0x4e4   :  { %1346 = vmatpush1.bf16.msra.mxu0 %v4881_v43  ;;  %3762 = vmatpush3.bf16.msra.mxu1 %v4886_v45 }
 0x4e5   :  { %1347 = vmatprep.subr.bf16.mxu0 %v4888_v46  ;;  %3763 = vmatprep.subr.bf16.mxu1 %v5747_v39 }
 0x4e8   :  { %1348 = vmatpush1.bf16.msra.mxu0 %v4893_v47  ;;  %3764 = vmatpush3.bf16.msra.mxu1 %v4895_v48 }
 0x4e9   :  { %1349 = vmatprep.subr.bf16.mxu0 %v4899_v53  ;;  %3765 = vmatprep.subr.bf16.mxu1 %v5747_v39 }
 0x4ec   :  { %1350 = vmatpush1.bf16.msra.mxu0 %v4903_v49  ;;  %3766 = vmatpush3.bf16.msra.mxu1 %v4905_v50 }
 0x4ed   :  { %1351 = vmatprep.subr.bf16.mxu0 %v4909_v52  ;;  %3767 = vmatprep.subr.bf16.mxu1 %v5747_v39 }
 0x4f0   :  { %1352 = vmatpush1.bf16.msra.mxu0 %v4913_v54  ;;  %3768 = vmatpush3.bf16.msra.mxu1 %v4915_v55 }
 0x4f1   :  { %1681 = vmatprep.subr.bf16.mxu0 %v4041_v30  ;;  %3773 = vmatprep.subr.bf16.mxu1 %v5103_v31  ;;  %v4050_v30 = vld [vmem:[#allocation10 + $0x140] ss:$12 sps:$4 sm:$0xff]  }
 0x593   :  { %v1242_v32 = vpop.f32.mrf.mxu0  ;;  %v1285_v33 = vpop.f32.mrf.mxu1 }
 0x594   :  { %v1292_v34 = vadd.f32 %v1242_v32, %v4960_v8  ;;  %v4053_v32 = vld [vmem:[#allocation10 + $0x124] ss:$12 sps:$4 sm:$0xff]  }
 0x595   :  { %v1244_v36 = vpop.f32.mrf.mxu0  ;;  %v3751_v51 = vpop.f32.mrf.mxu1 }
 0x596   :  { %v3376_v37 = vmul.f32 -1.442695, %v1292_v34  ;;  %v1306_v44 = vadd.f32 %v1244_v36, %v4963_v26  ;;  %v1320_v26 = vadd.f32 %v1285_v33, %v4989_v24  ;;  %v4054_v33 = vld [vmem:[#allocation10 + $0x128] ss:$12 sps:$4 sm:$0xff]   ;;  %v4051_v34 = vld [vmem:[#allocation10 + $0x120] ss:$12 sps:$4 sm:$0xff]  }
 0x597   :  { %v1246_v38 = vpop.f32.mrf.mxu0  ;;  %v1288_v40 = vpop.f32.mrf.mxu1  ;;  %v4058_v36 = vld [vmem:[#allocation10 + $0x110] ss:$12 sps:$4 sm:$0xff]   ;;  %v4055_v51 = vld [vmem:[#allocation10 + $0x108] ss:$12 sps:$4 sm:$0xff]  }
 0x598   :  { %4227 = vpow2.f32 %v3376_v37  ;;  %v1293_v41 = vadd.f32 %v1246_v38, %v4966_v29  ;;  %v3378_v48 = vmul.f32 -1.442695, %v1306_v44  ;;  %v1321_v17 = vadd.f32 %v1288_v40, %v4993_v3  ;;  %v4061_v37 = vld [vmem:[#allocation10 + $0xf4] ss:$12 sps:$4 sm:$0xff]   ;;  %v4062_v38 = vld [vmem:[#allocation10 + $0xf8] ss:$12 sps:$4 sm:$0xff]  }
 0x599   :  { %v3752_v43 = vpop.f32.mrf.mxu1  ;;  %v1248_v46 = vpop.f32.mrf.mxu0  ;;  %v4059_v40 = vld [vmem:[#allocation10 + $0xf0] ss:$12 sps:$4 sm:$0xff]   ;;  %v4063_v44 = vld [vmem:[#allocation10 + $0xd8] ss:$12 sps:$4 sm:$0xff]  }
 0x59a   :  { %v3377_v45 = vmul.f32 -1.442695, %v1293_v41  ;;  %v1307_v47 = vadd.f32 %v1248_v46, %v4969_v1  ;;  %v4065_v41 = vld [vmem:[#allocation10 + $0xdc] ss:$12 sps:$4 sm:$0xff]   ;;  %v4066_v43 = vld [vmem:[#allocation10 + $0xe0] ss:$12 sps:$4 sm:$0xff]  }
 0x59b   :  { %v4070_v46 = vld [vmem:[#allocation10 + $0xc8] ss:$12 sps:$4 sm:$0xff]  }
 0x59c   :  { %4229 = vpow2.f32 %v3377_v45  ;;  %v3379_v53 = vmul.f32 -1.442695, %v1307_v47  ;;  %v4069_v45 = vld [vmem:[#allocation10 + $0xc4] ss:$12 sps:$4 sm:$0xff]   ;;  %v4067_v47 = vld [vmem:[#allocation10 + $0xc0] ss:$12 sps:$4 sm:$0xff]  }
 0x59d   :  { %4231 = vpow2.f32 %v3378_v48  ;;  %v5133_v48 = vld [vmem:[#allocation11 + $0x16c] ss:$12 sps:$4 sm:$0xff]  }
 0x59e   :  { %4233 = vpow2.f32 %v3379_v53  ;;  %v5135_v53 = vld [vmem:[#allocation11 + $0x168] ss:$12 sps:$4 sm:$0xff]  }
 0x5a5   :  { %v4228_v49 = vpop.eup %4227 }
 0x5a6   :  { %v1300_v50 = vadd.f32 1.0, %v4228_v49  ;;  %v5137_v49 = vld [vmem:[#allocation11 + $0x170] ss:$12 sps:$4 sm:$0xff]  }
 0x5a8   :  { %4235 = vrcp.f32 %v1300_v50  ;;  %v5147_v50 = vld [vmem:[#allocation11 + $0x158] ss:$12 sps:$4 sm:$0xff]  }
 0x5a9   :  { %v4230_v52 = vpop.eup %4229 }
 0x5aa   :  { %v1301_v54 = vadd.f32 1.0, %v4230_v52  ;;  %v4232_v55 = vpop.eup %4231  ;;  %v5152_v52 = vld [vmem:[#allocation11 + $0x13c] ss:$12 sps:$4 sm:$0xff]  }
 0x5ab   :  { %v4234_v8 = vpop.eup %4233  ;;  %v1314_v29 = vadd.f32 1.0, %v4232_v55  ;;  %v5157_v55 = vld [vmem:[#allocation11 + $0x140] ss:$12 sps:$4 sm:$0xff]  }
 0x5ac   :  { %4237 = vrcp.f32 %v1301_v54  ;;  %v1315_v25 = vadd.f32 1.0, %v4234_v8  ;;  %v5155_v54 = vld [vmem:[#allocation11 + $0x138] ss:$12 sps:$4 sm:$0xff]  }
 0x5ad   :  { %4239 = vrcp.f32 %v1314_v29  ;;  %v5162_v8 = vld [vmem:[#allocation11 + $0x124] ss:$12 sps:$4 sm:$0xff]   ;;  %v5165_v29 = vld [vmem:[#allocation11 + $0x120] ss:$12 sps:$4 sm:$0xff]  }
 0x5ae   :  { %4241 = vrcp.f32 %v1315_v25  ;;  %v5174_v25 = vld [vmem:[#allocation11 + $0x10c] ss:$12 sps:$4 sm:$0xff]  }
 0x5b5   :  { %v4236_v13 = vpop.eup %4235 }
 0x5b6   :  { %v1322_v58 = vmul.f32 %v4236_v13, %v1320_v26  ;;  %v5167_v26 = vld [vmem:[#allocation11 + $0x128] ss:$12 sps:$4 sm:$0xff]  }
 0x5b7   :  { %v5172_v13 = vld [vmem:[#allocation11 + $0x108] ss:$12 sps:$4 sm:$0xff]  }
 0x5b8   :  { %v1324_v1 = vadd.f32 %v1322_v58, %v4978_v9  ;;  %v5176_v58 = vld [vmem:[#allocation11 + $0x110] ss:$12 sps:$4 sm:$0xff]  }
 0x5b9   :  { %v4238_v23 = vpop.eup %4237 }
 0x5ba   :  { %4243 = vtanh.f32 %v1324_v1  ;;  %v1323_v20 = vmul.f32 %v4238_v23, %v1321_v17  ;;  %v4240_v7 = vpop.eup %4239  ;;  %v5179_v1 = vld [vmem:[#allocation11 + $0xf4] ss:$12 sps:$4 sm:$0xff]   ;;  %v5184_v17 = vld [vmem:[#allocation11 + $0xf0] ss:$12 sps:$4 sm:$0xff]   ;;  %v5186_v23 = vld [vmem:[#allocation11 + $0xf8] ss:$12 sps:$4 sm:$0xff]  }
 0x5bb   :  { %v4242_v11 = vpop.eup %4241  ;;  %v1328_v61 = vsub.f32 1.0, %v4240_v7  ;;  %v1332_v56 = vmul.f32 %v4240_v7, %v5059_v14  ;;  %v4043_v14 = vld [vmem:[#allocation10 + $0x150] ss:$12 sps:$4 sm:$0xff]  }
 0x5bc   :  { %v1325_v42 = vadd.f32 %v1323_v20, %v905_v16  ;;  %v1329_v63 = vsub.f32 1.0, %v4242_v11  ;;  %v1333_v19 = vmul.f32 %v4242_v11, %v5062_v2  ;;  %v4047_v2 = vld [vmem:[#allocation10 + $0x138] ss:$12 sps:$4 sm:$0xff]   ;;  %v5190_v16 = vld [vmem:[#allocation11 + $0xdc] ss:$12 sps:$4 sm:$0xff]  }
 0x5bd   :  { %v5194_v20 = vld [vmem:[#allocation11 + $0xd8] ss:$12 sps:$4 sm:$0xff]   ;;  %v5204_v11 = vld [vmem:[#allocation11 + $0xc0] ss:$12 sps:$4 sm:$0xff]  }
 0x5be   :  { %4245 = vtanh.f32 %v1325_v42  ;;  %v5196_v42 = vld [vmem:[#allocation11 + $0xe0] ss:$12 sps:$4 sm:$0xff]   ;;  %v5200_v7 = vld [vmem:[#allocation11 + $0xc4] ss:$12 sps:$4 sm:$0xff]  }
 0x5c7   :  { %v4244_v10 = vpop.eup %4243 }
 0x5c8   :  { %v1330_v18 = vmul.f32 %v4244_v10, %v1328_v61  ;;  %v5206_v61 = vld [vmem:[#allocation11 + $0xc8] ss:$12 sps:$4 sm:$0xff]  }
 0x5ca   :  { %v5116_v9 = vadd.f32 %v1332_v56, %v1330_v18 }
 0x5cb   :  { %v4246_v57 = vpop.eup %4245 }
 0x5cc   :  { %v1331_v62 = vmul.f32 %v4246_v57, %v1329_v63 }
 0x5ce   :  { %v5119_v4 = vadd.f32 %v1333_v19, %v1331_v62 }
 0x5d0   :  { %v1336_v28 = vpack.c.bf16 %v5119_v4, %v5116_v9 }
 0x5d2   :  { %1370 = vmatmul.mubr.bf16.vlgmr.msra.gmra.mxu0 %v1336_v28  ;;  %3770 = vmatmul.mubr.bf16.vlgmr.msra.gmra.mxu1 %v1336_v28 }
 0x5d3   :  { %1682 = vmatpush1.bf16.msra.mxu0 %v4039_v6  ;;  %3774 = vmatpush3.bf16.msra.mxu1 %v5103_v31  ;;  %v4057_v31 = vld [vmem:[#allocation10 + $0x10c] ss:$12 sps:$4 sm:$0xff]  }
 0x5d4   :  { %3789 = vmatprep.mubr.bf16.mxu1 %v5003_v27  ;;  %1683 = vmatprep.subr.bf16.mxu0 %v4045_v35 }
 0x5d5   :  { %3775 = vmatprep.subr.bf16.mxu1 %v4046_v15  ;;  %1713 = vmatprep.mubr.bf16.mxu0 %v5748_v0 }
 0x5d7   :  { %1684 = vmatpush1.bf16.msra.mxu0 %v4043_v14  ;;  %3776 = vmatpush3.bf16.msra.mxu1 %v4046_v15 }
 0x5d8   :  { %1685 = vmatprep.subr.bf16.mxu0 %v4049_v21  ;;  %3777 = vmatprep.subr.bf16.mxu1 %v4050_v30 }
 0x5db   :  { %1686 = vmatpush1.bf16.msra.mxu0 %v4047_v2  ;;  %3778 = vmatpush3.bf16.msra.mxu1 %v4050_v30  ;;  %v5750_v30 = vld [vmem:[#allocation25_spill] sm:$0xff] }
 0x5dc   :  { %1687 = vmatprep.subr.bf16.mxu0 %v4053_v32  ;;  %3779 = vmatprep.subr.bf16.mxu1 %v4054_v33  ;;  %v849_v2 = vadd.f32 %v5750_v30, %v4941_v60  ;;  %v5754_v30 = vld [vmem:[#allocation24_spill] sm:$0xff] }
 0x5df   :  { %1688 = vmatpush1.bf16.msra.mxu0 %v4051_v34  ;;  %3780 = vmatpush3.bf16.msra.mxu1 %v4054_v33 }
 0x5e0   :  { %1689 = vmatprep.subr.bf16.mxu0 %v4057_v31  ;;  %3781 = vmatprep.subr.bf16.mxu1 %v4058_v36 }
 0x5e3   :  { %1690 = vmatpush1.bf16.msra.mxu0 %v4055_v51  ;;  %3782 = vmatpush3.bf16.msra.mxu1 %v4058_v36 }
 0x5e4   :  { %1691 = vmatprep.subr.bf16.mxu0 %v4061_v37  ;;  %3783 = vmatprep.subr.bf16.mxu1 %v4062_v38  ;;  %v5751_v37 = vld [vmem:[#allocation20_spill] sm:$0xff] }
 0x5e7   :  { %1692 = vmatpush1.bf16.msra.mxu0 %v4059_v40  ;;  %3784 = vmatpush3.bf16.msra.mxu1 %v4062_v38 }
 0x5e8   :  { %1693 = vmatprep.subr.bf16.mxu0 %v4065_v41  ;;  %3785 = vmatprep.subr.bf16.mxu1 %v4066_v43 }
 0x5eb   :  { %1694 = vmatpush1.bf16.msra.mxu0 %v4063_v44  ;;  %3786 = vmatpush3.bf16.msra.mxu1 %v4066_v43 }
 0x5ec   :  { %1695 = vmatprep.subr.bf16.mxu0 %v4069_v45  ;;  %3787 = vmatprep.subr.bf16.mxu1 %v4070_v46 }
 0x5ef   :  { %1696 = vmatpush1.bf16.msra.mxu0 %v4067_v47  ;;  %3788 = vmatpush3.bf16.msra.mxu1 %v4070_v46 }
 0x5f0   :  { %3797 = vmatprep.subr.bf16.mxu1 %v5747_v39  ;;  %1982 = vmatprep.subr.bf16.mxu0 %v5133_v48 }
 0x5f2   :  { %1714 = vmatmul.mubr.bf16.vlgmr.msra.gmra.mxu0 %v5003_v27  ;;  %3790 = vmatmul.mubr.bf16.vlgmr.msra.gmra.mxu1 %v5066_v5  ;;  %v5142_v27 = vld [vmem:[#allocation11 + $0x154] ss:$12 sps:$4 sm:$0xff]  }
 0x5f3   :  { %3793 = vmatprep.mubr.bf16.mxu1 %v1336_v28  ;;  %1723 = vmatprep.mubr.bf16.mxu0 %v5748_v0 }
 0x5f4   :  { %1983 = vmatpush1.bf16.msra.mxu0 %v5135_v53  ;;  %3798 = vmatpush3.bf16.msra.mxu1 %v5137_v49 }
 0x5f5   :  { %3799 = vmatprep.subr.bf16.mxu1 %v5747_v39  ;;  %1984 = vmatprep.subr.bf16.mxu0 %v5142_v27 }
 0x5f8   :  { %3800 = vmatpush3.bf16.msra.mxu1 %v5147_v50 }
 0x5f9   :  { %3801 = vmatprep.subr.bf16.mxu1 %v5747_v39 }
 0x5fa   :  { %1724 = vmatmul.mubr.bf16.gmra.mxu0 %v5066_v5  ;;  %v5145_v5 = vld [vmem:[#allocation11 + $0x150] ss:$12 sps:$4 sm:$0xff]  }
 0x5fb   :  { %1733 = vmatprep.mubr.bf16.mxu0 %v5748_v0  ;;  %1985 = vmatpush1.bf16.msra.mxu0 %v5145_v5 }
 0x5fc   :  { %1986 = vmatprep.subr.bf16.mxu0 %v5152_v52  ;;  %3802 = vmatpush3.bf16.msra.mxu1 %v5157_v55 }
 0x5fd   :  { %3803 = vmatprep.subr.bf16.mxu1 %v5747_v39 }
 0x5ff   :  { %1987 = vmatpush1.bf16.msra.mxu0 %v5155_v54 }
 0x600   :  { %1988 = vmatprep.subr.bf16.mxu0 %v5162_v8  ;;  %3804 = vmatpush3.bf16.msra.mxu1 %v5167_v26 }
 0x601   :  { %3805 = vmatprep.subr.bf16.mxu1 %v5747_v39 }
 0x602   :  { %1734 = vmatmul.mubr.bf16.gmra.mxu0 %v1336_v28 }
 0x603   :  { %1743 = vmatprep.mubr.bf16.mxu0 %v5748_v0  ;;  %1989 = vmatpush1.bf16.msra.mxu0 %v5165_v29 }
 0x604   :  { %1990 = vmatprep.subr.bf16.mxu0 %v5174_v25  ;;  %3806 = vmatpush3.bf16.msra.mxu1 %v5176_v58 }
 0x605   :  { %3807 = vmatprep.subr.bf16.mxu1 %v5747_v39 }
 0x607   :  { %1991 = vmatpush1.bf16.msra.mxu0 %v5172_v13 }
 0x608   :  { %1992 = vmatprep.subr.bf16.mxu0 %v5179_v1  ;;  %3808 = vmatpush3.bf16.msra.mxu1 %v5186_v23 }
 0x609   :  { %3809 = vmatprep.subr.bf16.mxu1 %v5747_v39 }
 0x60b   :  { %1993 = vmatpush1.bf16.msra.mxu0 %v5184_v17 }
 0x60c   :  { %1994 = vmatprep.subr.bf16.mxu0 %v5190_v16  ;;  %3810 = vmatpush3.bf16.msra.mxu1 %v5196_v42 }
 0x60d   :  { %3811 = vmatprep.subr.bf16.mxu1 %v5747_v39 }
 0x60f   :  { %1995 = vmatpush1.bf16.msra.mxu0 %v5194_v20 }
 0x610   :  { %1996 = vmatprep.subr.bf16.mxu0 %v5200_v7  ;;  %3812 = vmatpush3.bf16.msra.mxu1 %v5206_v61 }
 0x611   :  { %3817 = vmatprep.subr.bf16.mxu1 %v5747_v39 }
 0x613   :  { %1997 = vmatpush1.bf16.msra.mxu0 %v5204_v11 }
 0x614   :  { %2111 = vmatprep.subr.bf16.mxu0 %v5133_v48 }
 0x692   :  { %v1371_v10 = vpop.f32.mrf.mxu0  ;;  %v1414_v18 = vpop.f32.mrf.mxu1 }
 0x693   :  { %v1421_v56 = vadd.f32 %v1371_v10, %v4975_v59  ;;  %v1449_v43 = vadd.f32 %v1414_v18, %v4989_v24 }
 0x694   :  { %v1373_v63 = vpop.f32.mrf.mxu0  ;;  %v3771_v57 = vpop.f32.mrf.mxu1 }
 0x695   :  { %v3380_v62 = vmul.f32 -1.442695, %v1421_v56  ;;  %v1435_v15 = vadd.f32 %v1373_v63, %v4981_v12  ;;  %v5222_v12 = vld [vmem:[%s5729_s10 + $0x3] sm:$0x7]  ;;  %v5752_v57 = vld [vmem:[#allocation23_spill] sm:$0xff] }
 0x696   :  { %v1375_v19 = vpop.f32.mrf.mxu0  ;;  %v1417_v6 = vpop.f32.mrf.mxu1  ;;  %v5226_v60 = vrot.slane %v5222_v12, %v5751_v37 }
 0x697   :  { %4247 = vpow2.f32 %v3380_v62  ;;  %v1422_v28 = vadd.f32 %v1375_v19, %v4987_v22  ;;  %v3382_v33 = vmul.f32 -1.442695, %v1435_v15  ;;  %v1450_v19 = vadd.f32 %v1417_v6, %v4993_v3  ;;  %v5753_v15 = vld [vmem:[#allocation22_spill] sm:$0xff] }
 0x698   :  { %v3772_v35 = vpop.f32.mrf.mxu1  ;;  %v1377_v21 = vpop.f32.mrf.mxu0  ;;  %v5235_v24 = vrot.slane %v5222_v12, %v5753_v15 }
 0x699   :  { %v3381_v14 = vmul.f32 -1.442695, %v1422_v28  ;;  %v1436_v32 = vadd.f32 %v1377_v21, %v849_v2 }
 0x69b   :  { %4249 = vpow2.f32 %v3381_v14  ;;  %v3383_v59 = vmul.f32 -1.442695, %v1436_v32 }
 0x69c   :  { %4251 = vpow2.f32 %v3382_v33 }
 0x69d   :  { %4253 = vpow2.f32 %v3383_v59 }
 0x6a4   :  { %v4248_v34 = vpop.eup %4247 }
 0x6a5   :  { %v1429_v31 = vadd.f32 1.0, %v4248_v34 }
 0x6a7   :  { %4255 = vrcp.f32 %v1429_v31 }
 0x6a8   :  { %v4250_v36 = vpop.eup %4249 }
 0x6a9   :  { %v1430_v51 = vadd.f32 1.0, %v4250_v36  ;;  %v4252_v22 = vpop.eup %4251 }
 0x6aa   :  { %v4254_v38 = vpop.eup %4253  ;;  %v1443_v40 = vadd.f32 1.0, %v4252_v22 }
 0x6ab   :  { %4257 = vrcp.f32 %v1430_v51  ;;  %v1444_v46 = vadd.f32 1.0, %v4254_v38 }
 0x6ac   :  { %4259 = vrcp.f32 %v1443_v40 }
 0x6b2   :  { %v1715_v41 = vpop.f32.mrf.mxu0 }
 0x6b3   :  { %v1716_v44 = vadd.f32 %v1715_v41, %v5226_v60 }
 0x6b4   :  { %v4256_v45 = vpop.eup %4255  ;;  %v1717_v47 = vpop.f32.mrf.mxu0 }
 0x6b5   :  { %v1451_v10 = vmul.f32 %v4256_v45, %v1449_v43  ;;  %v3409_v56 = vmul.f32 -1.442695, %v1716_v44  ;;  %v1718_v32 = vadd.f32 %v1717_v47, %v5235_v24  ;;  %v5241_v47 = vpop.f32.mrf.mxu1 }
 0x6b6   :  { %v1719_v63 = vpop.f32.mrf.mxu0 }
 0x6b7   :  { %v1453_v62 = vadd.f32 %v1451_v10, %v5752_v57  ;;  %4261 = vpow2.f32 %v3409_v56  ;;  %v1720_v28 = vadd.f32 %v1719_v63, %v5226_v60  ;;  %v3411_v6 = vmul.f32 -1.442695, %v1718_v32  ;;  %v1788_v57 = vpop.f32.mrf.mxu1 }
 0x6b8   :  { %v4258_v35 = vpop.eup %4257  ;;  %4263 = vrcp.f32 %v1444_v46  ;;  %v1721_v21 = vpop.f32.mrf.mxu0 }
 0x6b9   :  { %4265 = vtanh.f32 %v1453_v62  ;;  %v1452_v18 = vmul.f32 %v4258_v35, %v1450_v19  ;;  %v3410_v14 = vmul.f32 -1.442695, %v1720_v28  ;;  %v1722_v3 = vadd.f32 %v1721_v21, %v5235_v24  ;;  %v4260_v59 = vpop.eup %4259  ;;  %v5244_v35 = vld [vmem:[#allocation13 + $0x10] sm:$0xff] }
 0x6ba   :  { %v1457_v51 = vsub.f32 1.0, %v4260_v59  ;;  %v1461_v40 = vmul.f32 %v4260_v59, %v5116_v9  ;;  %v5246_v9 = vpop.f32.mrf.mxu1 }
 0x6bb   :  { %v1454_v2 = vadd.f32 %v1452_v18, %v5754_v30  ;;  %4267 = vpow2.f32 %v3410_v14  ;;  %v3412_v33 = vmul.f32 -1.442695, %v1722_v3  ;;  %v5755_v18 = vld [vmem:[#allocation21_spill] sm:$0xff] }
 0x6bc   :  { %v5253_v14 = vrot.slane %v5222_v12, %v5755_v18  ;;  %v5257_v3 = vld [vmem:[#allocation13 + $0x18] sm:$0xff] }
 0x6bd   :  { %4269 = vtanh.f32 %v1454_v2 }
 0x6be   :  { %4271 = vpow2.f32 %v3411_v6  ;;  %v1789_v30 = vadd.f32 %v1788_v57, %v5253_v14  ;;  %v1791_v6 = vpop.f32.mrf.mxu1 }
 0x6bf   :  { %4273 = vpow2.f32 %v3412_v33 }
 0x6c4   :  { %v4262_v34 = vpop.eup %4261 }
 0x6c5   :  { %v4264_v31 = vpop.eup %4263  ;;  %v1825_v36 = vadd.f32 1.0, %v4262_v34  ;;  %v1792_v34 = vadd.f32 %v1791_v6, %v5253_v14 }
 0x6c6   :  { %v4266_v22 = vpop.eup %4265  ;;  %v1458_v44 = vsub.f32 1.0, %v4264_v31  ;;  %v1462_v56 = vmul.f32 %v4264_v31, %v5119_v4 }
 0x6c7   :  { %4275 = vrcp.f32 %v1825_v36  ;;  %v1459_v38 = vmul.f32 %v4266_v22, %v1457_v51 }
 0x6c8   :  { %v4268_v41 = vpop.eup %4267 }
 0x6c9   :  { %v1826_v43 = vadd.f32 1.0, %v4268_v41  ;;  %v1463_v45 = vadd.f32 %v1461_v40, %v1459_v38 }
 0x6ca   :  { %v4270_v46 = vpop.eup %4269 }
 0x6cb   :  { %4277 = vrcp.f32 %v1826_v43  ;;  %v1460_v10 = vmul.f32 %v4270_v46, %v1458_v44  ;;  %v4272_v19 = vpop.eup %4271  ;;  %v1725_v46 = vpop.f32.mrf.mxu0 }
 0x6cc   :  { %v4274_v28 = vpop.eup %4273  ;;  %v1837_v21 = vadd.f32 1.0, %v4272_v19 }
 0x6cd   :  { %v1464_v63 = vadd.f32 %v1462_v56, %v1460_v10  ;;  %v1838_v32 = vadd.f32 1.0, %v4274_v28  ;;  %v1727_v10 = vpop.f32.mrf.mxu0 }
 0x6ce   :  { %4279 = vrcp.f32 %v1837_v21 }
 0x6cf   :  { %v1536_v62 = vpack.c.bf16 %v1464_v63, %v1463_v45  ;;  %4281 = vrcp.f32 %v1838_v32  ;;  %v1729_v56 = vpop.f32.mrf.mxu0 }
 0x6d1   :  { %1744 = vmatmul.mubr.bf16.gmra.mxu0 %v1536_v62  ;;  %3794 = vmatmul.mubr.bf16.gmra.mxu1 %v1536_v62  ;;  %v1731_v63 = vpop.f32.mrf.mxu0 }
 0x6d2   :  { %2014 = vmatprep.mubr.bf16.mxu0 %v5748_v0  ;;  %3813 = vmatprep.mubr.msk.bf16.mxu1 %vm4611_vm0, %v5747_v39 }
 0x6d3   :  { %v5306_v57 = vpop.f32.mrf.mxu0 }
 0x6d4   :  { %v4276_v4 = vpop.eup %4275 }
 0x6d5   :  { %v1843_v2 = vmul.f32 %v4276_v4, %v5244_v35  ;;  %v5308_v62 = vpop.f32.mrf.mxu0 }
 0x6d7   :  { %v1845_v33 = vadd.f32 %v1843_v2, %v1789_v30  ;;  %v5310_v19 = vpop.f32.mrf.mxu0 }
 0x6d8   :  { %v4278_v59 = vpop.eup %4277 }
 0x6d9   :  { %v1844_v31 = vmul.f32 %v4278_v59, %v5257_v3  ;;  %4283 = vtanh.f32 %v1845_v33  ;;  %v5312_v28 = vpop.f32.mrf.mxu0  ;;  %v1726_v59 = vadd.f32 %v1725_v46, %v5226_v60 }
 0x6db   :  { %v1846_v12 = vadd.f32 %v1844_v31, %v1792_v34  ;;  %v4280_v36 = vpop.eup %4279 }
 0x6dc   :  { %v4282_v51 = vpop.eup %4281  ;;  %v1849_v38 = vsub.f32 1.0, %v4280_v36 }
 0x6dd   :  { %4285 = vtanh.f32 %v1846_v12  ;;  %v1850_v40 = vsub.f32 1.0, %v4282_v51 }
 0x6e6   :  { %v4284_v22 = vpop.eup %4283 }
 0x6e7   :  { %v5261_v43 = vmul.f32 %v4284_v22, %v1849_v38  ;;  %v1730_v22 = vadd.f32 %v1729_v56, %v5226_v60 }
 0x6ea   :  { %v4286_v41 = vpop.eup %4285 }
 0x6eb   :  { %v5263_v44 = vmul.f32 %v4286_v41, %v1850_v40 }
 0x6ed   :  { %v5267_v45 = vpack.c.bf16 %v5263_v44, %v5261_v43 }
 0x6ef   :  { %2015 = vmatmul.mubr.bf16.vlgmr.msra.gmra.mxu0 %v5267_v45  ;;  %3814 = vmatmul.mubr.bf16.vlgmr.msra.gmra.mxu1 %v5267_v45 }
 0x6f0   :  { %2112 = vmatpush1.bf16.msra.mxu0 %v5135_v53  ;;  %3818 = vmatpush3.bf16.msra.mxu1 %v5137_v49 }
 0x6f1   :  { %2113 = vmatprep.subr.bf16.mxu0 %v5142_v27  ;;  %3819 = vmatprep.subr.bf16.mxu1 %v5747_v39 }
 0x6f2   :  { %2143 = vmatprep.mubr.bf16.mxu0 %v5748_v0  ;;  %3833 = vmatprep.mubr.msk.bf16.mxu1 %vm4611_vm0, %v5747_v39 }
 0x6f4   :  { %2114 = vmatpush1.bf16.msra.mxu0 %v5145_v5  ;;  %3820 = vmatpush3.bf16.msra.mxu1 %v5147_v50 }
 0x6f5   :  { %2115 = vmatprep.subr.bf16.mxu0 %v5152_v52  ;;  %3821 = vmatprep.subr.bf16.mxu1 %v5747_v39 }
 0x6f8   :  { %2116 = vmatpush1.bf16.msra.mxu0 %v5155_v54  ;;  %3822 = vmatpush3.bf16.msra.mxu1 %v5157_v55 }
 0x6f9   :  { %2117 = vmatprep.subr.bf16.mxu0 %v5162_v8  ;;  %3823 = vmatprep.subr.bf16.mxu1 %v5747_v39 }
 0x6fc   :  { %2118 = vmatpush1.bf16.msra.mxu0 %v5165_v29  ;;  %3824 = vmatpush3.bf16.msra.mxu1 %v5167_v26 }
 0x6fd   :  { %2119 = vmatprep.subr.bf16.mxu0 %v5174_v25  ;;  %3825 = vmatprep.subr.bf16.mxu1 %v5747_v39 }
 0x700   :  { %2120 = vmatpush1.bf16.msra.mxu0 %v5172_v13  ;;  %3826 = vmatpush3.bf16.msra.mxu1 %v5176_v58 }
 0x701   :  { %2121 = vmatprep.subr.bf16.mxu0 %v5179_v1  ;;  %3827 = vmatprep.subr.bf16.mxu1 %v5747_v39 }
 0x704   :  { %2122 = vmatpush1.bf16.msra.mxu0 %v5184_v17  ;;  %3828 = vmatpush3.bf16.msra.mxu1 %v5186_v23 }
 0x705   :  { %2123 = vmatprep.subr.bf16.mxu0 %v5190_v16  ;;  %3829 = vmatprep.subr.bf16.mxu1 %v5747_v39 }
 0x708   :  { %2124 = vmatpush1.bf16.msra.mxu0 %v5194_v20  ;;  %3830 = vmatpush3.bf16.msra.mxu1 %v5196_v42 }
 0x709   :  { %2125 = vmatprep.subr.bf16.mxu0 %v5200_v7  ;;  %3831 = vmatprep.subr.bf16.mxu1 %v5747_v39 }
 0x70c   :  { %2126 = vmatpush1.bf16.msra.mxu0 %v5204_v11  ;;  %3832 = vmatpush3.bf16.msra.mxu1 %v5206_v61 }
 0x70d   :  { %2240 = vmatprep.subr.bf16.mxu0 %v5133_v48  ;;  %3837 = vmatprep.subr.bf16.mxu1 %v5747_v39 }
 0x791   :  { %v5314_v4 = vpop.f32.mrf.mxu0  ;;  %v5316_v21 = vpop.f32.mrf.mxu1 }
 0x792   :  { %5756 = vst [vmem:[#allocation25_spill] sm:$0xff] %v5316_v21 }
 0x793   :  { %v5318_v30 = vpop.f32.mrf.mxu0  ;;  %v5320_v48 = vpop.f32.mrf.mxu1 }
 0x794   :  { %5757 = vst [vmem:[#allocation23_spill] sm:$0xff] %v5318_v30 }
 0x795   :  { %v5322_v2 = vpop.f32.mrf.mxu0  ;;  %v5324_v32 = vpop.f32.mrf.mxu1 }
 0x796   :  { %5758 = vst [vmem:[#allocation24_spill] sm:$0xff] %v5324_v32  ;;  %v1728_v32 = vadd.f32 %v1727_v10, %v5235_v24 }
 0x797   :  { %v5326_v6 = vpop.f32.mrf.mxu0  ;;  %v5328_v33 = vpop.f32.mrf.mxu1 }
 0x798   :  { %5759 = vst [vmem:[#allocation26_spill] sm:$0xff] %v5326_v6  ;;  %v1732_v6 = vadd.f32 %v1731_v63, %v5235_v24 }
 0x7af   :  { %v2016_v34 = vpop.f32.mrf.mxu0  ;;  %v2059_v31 = vpop.f32.mrf.mxu1 }
 0x7b0   :  { %v2066_v12 = vadd.f32 %v2016_v34, %v1726_v59 }
 0x7b1   :  { %v2018_v36 = vpop.f32.mrf.mxu0  ;;  %v3815_v51 = vpop.f32.mrf.mxu1 }
 0x7b2   :  { %v3437_v38 = vmul.f32 -1.442695, %v2066_v12  ;;  %v2080_v46 = vadd.f32 %v2018_v36, %v1728_v32  ;;  %v1800_v36 = vadd.f32 %v5246_v9, %v5253_v14 }
 0x7b3   :  { %v2020_v40 = vpop.f32.mrf.mxu0  ;;  %v2062_v41 = vpop.f32.mrf.mxu1 }
 0x7b4   :  { %4287 = vpow2.f32 %v3437_v38  ;;  %v2067_v18 = vadd.f32 %v2020_v40, %v1730_v22  ;;  %v3439_v59 = vmul.f32 -1.442695, %v2080_v46  ;;  %v2095_v32 = vadd.f32 %v2062_v41, %v5257_v3 }
 0x7b5   :  { %v3816_v21 = vpop.f32.mrf.mxu1  ;;  %v2022_v37 = vpop.f32.mrf.mxu0 }
 0x7b6   :  { %v3438_v15 = vmul.f32 -1.442695, %v2067_v18  ;;  %v2081_v30 = vadd.f32 %v2022_v37, %v1732_v6  ;;  %v2094_v18 = vadd.f32 %v2059_v31, %v5244_v35  ;;  %v1797_v37 = vadd.f32 %v5241_v47, %v5253_v14 }
 0x7b8   :  { %4289 = vpow2.f32 %v3438_v15  ;;  %v3440_v34 = vmul.f32 -1.442695, %v2081_v30 }
 0x7b9   :  { %4291 = vpow2.f32 %v3439_v59 }
 0x7ba   :  { %4293 = vpow2.f32 %v3440_v34 }
 0x7c1   :  { %v4288_v51 = vpop.eup %4287 }
 0x7c2   :  { %v2074_v56 = vadd.f32 1.0, %v4288_v51 }
 0x7c4   :  { %4295 = vrcp.f32 %v2074_v56 }
 0x7c5   :  { %v4290_v12 = vpop.eup %4289 }
 0x7c6   :  { %v2075_v38 = vadd.f32 1.0, %v4290_v12  ;;  %v4292_v21 = vpop.eup %4291 }
 0x7c7   :  { %v4294_v22 = vpop.eup %4293  ;;  %v2088_v10 = vadd.f32 1.0, %v4292_v21 }
 0x7c8   :  { %4297 = vrcp.f32 %v2075_v38  ;;  %v2089_v63 = vadd.f32 1.0, %v4294_v22 }
 0x7c9   :  { %4299 = vrcp.f32 %v2088_v10 }
 0x7ca   :  { %4301 = vrcp.f32 %v2089_v63 }
 0x7d1   :  { %v4296_v40 = vpop.eup %4295 }
 0x7d2   :  { %v2096_v15 = vmul.f32 %v4296_v40, %v2094_v18 }
 0x7d4   :  { %v2098_v30 = vadd.f32 %v2096_v15, %v1797_v37 }
 0x7d5   :  { %v4298_v6 = vpop.eup %4297 }
 0x7d6   :  { %4303 = vtanh.f32 %v2098_v30  ;;  %v2097_v46 = vmul.f32 %v4298_v6, %v2095_v32  ;;  %v4300_v31 = vpop.eup %4299 }
 0x7d7   :  { %v4302_v34 = vpop.eup %4301  ;;  %v2102_v56 = vsub.f32 1.0, %v4300_v31  ;;  %v2106_v22 = vmul.f32 %v4300_v31, %v5261_v43 }
 0x7d8   :  { %v2099_v59 = vadd.f32 %v2097_v46, %v1800_v36  ;;  %v2103_v12 = vsub.f32 1.0, %v4302_v34  ;;  %v2107_v41 = vmul.f32 %v4302_v34, %v5263_v44  ;;  %v1808_v46 = vadd.f32 %v5328_v33, %v5253_v14  ;;  %v4103_v33 = vld [vmem:[#allocation10 + $0x228] ss:$12 sps:$4 sm:$0xff]  }
 0x7da   :  { %4305 = vtanh.f32 %v2099_v59 }
 0x7e3   :  { %v4304_v51 = vpop.eup %4303 }
 0x7e4   :  { %v2104_v47 = vmul.f32 %v4304_v51, %v2102_v56 }
 0x7e6   :  { %v5342_v18 = vadd.f32 %v2106_v22, %v2104_v47 }
 0x7e7   :  { %v4306_v38 = vpop.eup %4305 }
 0x7e8   :  { %v2105_v21 = vmul.f32 %v4306_v38, %v2103_v12 }
 0x7ea   :  { %v5344_v10 = vadd.f32 %v2107_v41, %v2105_v21 }
 0x7ec   :  { %v5348_v9 = vpack.c.bf16 %v5344_v10, %v5342_v18 }
 0x7ee   :  { %2144 = vmatmul.mubr.bf16.vlgmr.msra.gmra.mxu0 %v5348_v9  ;;  %3834 = vmatmul.mubr.bf16.vlgmr.msra.gmra.mxu1 %v5348_v9 }
 0x7ef   :  { %2241 = vmatpush1.bf16.msra.mxu0 %v5135_v53  ;;  %3838 = vmatpush3.bf16.msra.mxu1 %v5137_v49  ;;  %v4105_v53 = vld [vmem:[#allocation10 + $0x22c] ss:$12 sps:$4 sm:$0xff]   ;;  %v5385_v49 = vld [vmem:[#allocation10 + $0x230] ss:$12 sps:$4 sm:$0xff]  }
 0x7f0   :  { %2242 = vmatprep.subr.bf16.mxu0 %v5142_v27  ;;  %3839 = vmatprep.subr.bf16.mxu1 %v5747_v39  ;;  %v1736_v27 = vadd.f32 %v5306_v57, %v5226_v60 }
 0x7f1   :  { %2272 = vmatprep.mubr.bf16.mxu0 %v5748_v0  ;;  %3853 = vmatprep.mubr.msk.bf16.mxu1 %vm4611_vm0, %v5747_v39 }
 0x7f3   :  { %2243 = vmatpush1.bf16.msra.mxu0 %v5145_v5  ;;  %3840 = vmatpush3.bf16.msra.mxu1 %v5147_v50 }
 0x7f4   :  { %2244 = vmatprep.subr.bf16.mxu0 %v5152_v52  ;;  %3841 = vmatprep.subr.bf16.mxu1 %v5747_v39 }
 0x7f7   :  { %2245 = vmatpush1.bf16.msra.mxu0 %v5155_v54  ;;  %3842 = vmatpush3.bf16.msra.mxu1 %v5157_v55 }
 0x7f8   :  { %2246 = vmatprep.subr.bf16.mxu0 %v5162_v8  ;;  %3843 = vmatprep.subr.bf16.mxu1 %v5747_v39  ;;  %v1740_v8 = vadd.f32 %v5310_v19, %v5226_v60 }
 0x7fb   :  { %2247 = vmatpush1.bf16.msra.mxu0 %v5165_v29  ;;  %3844 = vmatpush3.bf16.msra.mxu1 %v5167_v26 }
 0x7fc   :  { %2248 = vmatprep.subr.bf16.mxu0 %v5174_v25  ;;  %3845 = vmatprep.subr.bf16.mxu1 %v5747_v39  ;;  %v1738_v25 = vadd.f32 %v5308_v62, %v5235_v24 }
 0x7ff   :  { %2249 = vmatpush1.bf16.msra.mxu0 %v5172_v13  ;;  %3846 = vmatpush3.bf16.msra.mxu1 %v5176_v58 }
 0x800   :  { %2250 = vmatprep.subr.bf16.mxu0 %v5179_v1  ;;  %3847 = vmatprep.subr.bf16.mxu1 %v5747_v39 }
 0x803   :  { %2251 = vmatpush1.bf16.msra.mxu0 %v5184_v17  ;;  %3848 = vmatpush3.bf16.msra.mxu1 %v5186_v23 }
 0x804   :  { %2252 = vmatprep.subr.bf16.mxu0 %v5190_v16  ;;  %3849 = vmatprep.subr.bf16.mxu1 %v5747_v39 }
 0x807   :  { %2253 = vmatpush1.bf16.msra.mxu0 %v5194_v20  ;;  %3850 = vmatpush3.bf16.msra.mxu1 %v5196_v42  ;;  %v1742_v20 = vadd.f32 %v5312_v28, %v5235_v24  ;;  %v1805_v28 = vadd.f32 %v5320_v48, %v5253_v14 }
 0x808   :  { %2254 = vmatprep.subr.bf16.mxu0 %v5200_v7  ;;  %3851 = vmatprep.subr.bf16.mxu1 %v5747_v39 }
 0x80b   :  { %2255 = vmatpush1.bf16.msra.mxu0 %v5204_v11  ;;  %3852 = vmatpush3.bf16.msra.mxu1 %v5206_v61 }
 0x80c   :  { %2584 = vmatprep.subr.bf16.mxu0 %v4105_v53  ;;  %3857 = vmatprep.subr.bf16.mxu1 %v5385_v49 }
 0x8ae   :  { %v2145_v5 = vpop.f32.mrf.mxu0  ;;  %v2188_v50 = vpop.f32.mrf.mxu1 }
 0x8af   :  { %v2195_v52 = vadd.f32 %v2145_v5, %v1736_v27  ;;  %v2223_v63 = vadd.f32 %v2188_v50, %v5244_v35  ;;  %v4109_v50 = vld [vmem:[#allocation10 + $0x214] ss:$12 sps:$4 sm:$0xff]  }
 0x8b0   :  { %v2147_v54 = vpop.f32.mrf.mxu0  ;;  %v3835_v55 = vpop.f32.mrf.mxu1 }
 0x8b1   :  { %v3441_v29 = vmul.f32 -1.442695, %v2195_v52  ;;  %v2209_v17 = vadd.f32 %v2147_v54, %v1738_v25  ;;  %v4110_v52 = vld [vmem:[#allocation10 + $0x218] ss:$12 sps:$4 sm:$0xff]   ;;  %v4113_v54 = vld [vmem:[#allocation10 + $0x1fc] ss:$12 sps:$4 sm:$0xff]  }
 0x8b2   :  { %v2149_v26 = vpop.f32.mrf.mxu0  ;;  %v2191_v13 = vpop.f32.mrf.mxu1  ;;  %v4114_v55 = vld [vmem:[#allocation10 + $0x200] ss:$12 sps:$4 sm:$0xff]   ;;  %v4119_v25 = vld [vmem:[#allocation10 + $0x1c8] ss:$12 sps:$4 sm:$0xff]  }
 0x8b3   :  { %4307 = vpow2.f32 %v3441_v29  ;;  %v2196_v58 = vadd.f32 %v2149_v26, %v1740_v8  ;;  %v3443_v7 = vmul.f32 -1.442695, %v2209_v17  ;;  %v2224_v6 = vadd.f32 %v2191_v13, %v5257_v3  ;;  %v4117_v8 = vld [vmem:[#allocation10 + $0x1e4] ss:$12 sps:$4 sm:$0xff]   ;;  %v4118_v29 = vld [vmem:[#allocation10 + $0x1e8] ss:$12 sps:$4 sm:$0xff]  }
 0x8b4   :  { %v3836_v1 = vpop.f32.mrf.mxu1  ;;  %v2151_v16 = vpop.f32.mrf.mxu0  ;;  %v4115_v26 = vld [vmem:[#allocation10 + $0x1e0] ss:$12 sps:$4 sm:$0xff]   ;;  %v4122_v13 = vld [vmem:[#allocation10 + $0x1d0] ss:$12 sps:$4 sm:$0xff]  }
 0x8b5   :  { %v3442_v23 = vmul.f32 -1.442695, %v2196_v58  ;;  %v2210_v42 = vadd.f32 %v2151_v16, %v1742_v20  ;;  %v4125_v58 = vld [vmem:[#allocation10 + $0x1b4] ss:$12 sps:$4 sm:$0xff]   ;;  %v4126_v1 = vld [vmem:[#allocation10 + $0x1b8] ss:$12 sps:$4 sm:$0xff]  }
 0x8b6   :  { %v4123_v17 = vld [vmem:[#allocation10 + $0x1b0] ss:$12 sps:$4 sm:$0xff]   ;;  %v4130_v16 = vld [vmem:[#allocation10 + $0x1a0] ss:$12 sps:$4 sm:$0xff]   ;;  %v4127_v20 = vld [vmem:[#allocation10 + $0x198] ss:$12 sps:$4 sm:$0xff]  }
 0x8b7   :  { %4309 = vpow2.f32 %v3442_v23  ;;  %v3444_v11 = vmul.f32 -1.442695, %v2210_v42  ;;  %v4129_v23 = vld [vmem:[#allocation10 + $0x19c] ss:$12 sps:$4 sm:$0xff]   ;;  %v4133_v42 = vld [vmem:[#allocation10 + $0x184] ss:$12 sps:$4 sm:$0xff]  }
 0x8b8   :  { %4311 = vpow2.f32 %v3443_v7  ;;  %v4134_v7 = vld [vmem:[#allocation10 + $0x188] ss:$12 sps:$4 sm:$0xff]  }
 0x8b9   :  { %4313 = vpow2.f32 %v3444_v11  ;;  %v4131_v11 = vld [vmem:[#allocation10 + $0x180] ss:$12 sps:$4 sm:$0xff]  }
 0x8c0   :  { %v4308_v61 = vpop.eup %4307 }
 0x8c1   :  { %v2203_v43 = vadd.f32 1.0, %v4308_v61  ;;  %v5420_v61 = vld [vmem:[#allocation11 + $0x22c] ss:$12 sps:$4 sm:$0xff]  }
 0x8c3   :  { %4315 = vrcp.f32 %v2203_v43  ;;  %v5422_v43 = vld [vmem:[#allocation11 + $0x228] ss:$12 sps:$4 sm:$0xff]  }
 0x8c4   :  { %v4310_v44 = vpop.eup %4309 }
 0x8c5   :  { %v2204_v57 = vadd.f32 1.0, %v4310_v44  ;;  %v4312_v62 = vpop.eup %4311  ;;  %v5424_v44 = vld [vmem:[#allocation11 + $0x230] ss:$12 sps:$4 sm:$0xff]  }
 0x8c6   :  { %v4314_v19 = vpop.eup %4313  ;;  %v2217_v40 = vadd.f32 1.0, %v4312_v62  ;;  %v5439_v62 = vld [vmem:[#allocation11 + $0x1fc] ss:$12 sps:$4 sm:$0xff]  }
 0x8c7   :  { %4317 = vrcp.f32 %v2204_v57  ;;  %v2218_v15 = vadd.f32 1.0, %v4314_v19  ;;  %v5434_v57 = vld [vmem:[#allocation11 + $0x218] ss:$12 sps:$4 sm:$0xff]  }
 0x8c8   :  { %4319 = vrcp.f32 %v2217_v40  ;;  %v5442_v19 = vld [vmem:[#allocation11 + $0x1f8] ss:$12 sps:$4 sm:$0xff]   ;;  %v5444_v40 = vld [vmem:[#allocation11 + $0x200] ss:$12 sps:$4 sm:$0xff]  }
 0x8c9   :  { %4321 = vrcp.f32 %v2218_v15  ;;  %v5454_v15 = vld [vmem:[#allocation11 + $0x1e8] ss:$12 sps:$4 sm:$0xff]  }
 0x8d0   :  { %v4316_v37 = vpop.eup %4315 }
 0x8d1   :  { %v2225_v30 = vmul.f32 %v4316_v37, %v2223_v63  ;;  %v5449_v63 = vld [vmem:[#allocation11 + $0x1e4] ss:$12 sps:$4 sm:$0xff]   ;;  %v5452_v37 = vld [vmem:[#allocation11 + $0x1e0] ss:$12 sps:$4 sm:$0xff]  }
 0x8d3   :  { %v2227_v32 = vadd.f32 %v2225_v30, %v1805_v28  ;;  %v5459_v28 = vld [vmem:[#allocation11 + $0x1c8] ss:$12 sps:$4 sm:$0xff]   ;;  %v5461_v30 = vld [vmem:[#allocation11 + $0x1cc] ss:$12 sps:$4 sm:$0xff]  }
 0x8d4   :  { %v4318_v36 = vpop.eup %4317 }
 0x8d5   :  { %4323 = vtanh.f32 %v2227_v32  ;;  %v2226_v59 = vmul.f32 %v4318_v36, %v2224_v6  ;;  %v4320_v34 = vpop.eup %4319  ;;  %v5463_v32 = vld [vmem:[#allocation11 + $0x1d0] ss:$12 sps:$4 sm:$0xff]   ;;  %v5466_v6 = vld [vmem:[#allocation11 + $0x1b4] ss:$12 sps:$4 sm:$0xff]  }
 0x8d6   :  { %v4322_v51 = vpop.eup %4321  ;;  %v2231_v56 = vsub.f32 1.0, %v4320_v34  ;;  %v2235_v48 = vmul.f32 %v4320_v34, %v5342_v18  ;;  %v4107_v18 = vld [vmem:[#allocation10 + $0x210] ss:$12 sps:$4 sm:$0xff]   ;;  %v5483_v34 = vld [vmem:[#allocation11 + $0x1a0] ss:$12 sps:$4 sm:$0xff]  }
 0x8d7   :  { %v2228_v31 = vadd.f32 %v2226_v59, %v1808_v46  ;;  %v2232_v38 = vsub.f32 1.0, %v4322_v51  ;;  %v2236_v53 = vmul.f32 %v4322_v51, %v5344_v10  ;;  %v4111_v10 = vld [vmem:[#allocation10 + $0x1f8] ss:$12 sps:$4 sm:$0xff]   ;;  %v5471_v36 = vld [vmem:[#allocation11 + $0x1b0] ss:$12 sps:$4 sm:$0xff]  }
 0x8d8   :  { %v5473_v46 = vld [vmem:[#allocation11 + $0x1b8] ss:$12 sps:$4 sm:$0xff]   ;;  %v5477_v59 = vld [vmem:[#allocation11 + $0x19c] ss:$12 sps:$4 sm:$0xff]  }
 0x8d9   :  { %4325 = vtanh.f32 %v2228_v31  ;;  %v5481_v31 = vld [vmem:[#allocation11 + $0x198] ss:$12 sps:$4 sm:$0xff]  }
 0x8da   :  { %v5487_v51 = vld [vmem:[#allocation11 + $0x184] ss:$12 sps:$4 sm:$0xff]  }
 0x8e2   :  { %v4324_v12 = vpop.eup %4323 }
 0x8e3   :  { %v2233_v47 = vmul.f32 %v4324_v12, %v2231_v56  ;;  %v5491_v56 = vld [vmem:[#allocation11 + $0x180] ss:$12 sps:$4 sm:$0xff]   ;;  %v5493_v12 = vld [vmem:[#allocation11 + $0x188] ss:$12 sps:$4 sm:$0xff]  }
 0x8e5   :  { %v5403_v21 = vadd.f32 %v2235_v48, %v2233_v47  ;;  %v1746_v47 = vadd.f32 %v5314_v4, %v5226_v60 }
 0x8e6   :  { %v4326_v22 = vpop.eup %4325 }
 0x8e7   :  { %v2234_v41 = vmul.f32 %v4326_v22, %v2232_v38 }
 0x8e9   :  { %v5406_v27 = vadd.f32 %v2236_v53, %v2234_v41 }
 0x8eb   :  { %v2239_v5 = vpack.c.bf16 %v5406_v27, %v5403_v21 }
 0x8ed   :  { %2273 = vmatmul.mubr.bf16.vlgmr.msra.gmra.mxu0 %v2239_v5  ;;  %3854 = vmatmul.mubr.bf16.vlgmr.msra.gmra.mxu1 %v2239_v5 }
 0x8ee   :  { %2585 = vmatpush1.bf16.msra.mxu0 %v4103_v33  ;;  %3858 = vmatpush3.bf16.msra.mxu1 %v5385_v49  ;;  %v4121_v49 = vld [vmem:[#allocation10 + $0x1cc] ss:$12 sps:$4 sm:$0xff]   ;;  %v1750_v33 = vadd.f32 %v5322_v2, %v5226_v60 }
 0x8ef   :  { %3873 = vmatprep.mubr.bf16.mxu1 %v5267_v45  ;;  %2586 = vmatprep.subr.bf16.mxu0 %v4109_v50 }
 0x8f0   :  { %3859 = vmatprep.subr.bf16.mxu1 %v4110_v52  ;;  %2616 = vmatprep.mubr.bf16.mxu0 %v5748_v0 }
 0x8f2   :  { %2587 = vmatpush1.bf16.msra.mxu0 %v4107_v18  ;;  %3860 = vmatpush3.bf16.msra.mxu1 %v4110_v52  ;;  %v5760_v18 = vld [vmem:[#allocation23_spill] sm:$0xff] }
 0x8f3   :  { %2588 = vmatprep.subr.bf16.mxu0 %v4113_v54  ;;  %3861 = vmatprep.subr.bf16.mxu1 %v4114_v55  ;;  %v1748_v54 = vadd.f32 %v5760_v18, %v5235_v24 }
 0x8f6   :  { %2589 = vmatpush1.bf16.msra.mxu0 %v4111_v10  ;;  %3862 = vmatpush3.bf16.msra.mxu1 %v4114_v55 }
 0x8f7   :  { %2590 = vmatprep.subr.bf16.mxu0 %v4117_v8  ;;  %3863 = vmatprep.subr.bf16.mxu1 %v4118_v29 }
 0x8fa   :  { %2591 = vmatpush1.bf16.msra.mxu0 %v4115_v26  ;;  %3864 = vmatpush3.bf16.msra.mxu1 %v4118_v29  ;;  %v5761_v26 = vld [vmem:[#allocation26_spill] sm:$0xff] }
 0x8fb   :  { %2592 = vmatprep.subr.bf16.mxu0 %v4121_v49  ;;  %3865 = vmatprep.subr.bf16.mxu1 %v4122_v13  ;;  %v1752_v49 = vadd.f32 %v5761_v26, %v5235_v24 }
 0x8fe   :  { %2593 = vmatpush1.bf16.msra.mxu0 %v4119_v25  ;;  %3866 = vmatpush3.bf16.msra.mxu1 %v4122_v13 }
 0x8ff   :  { %2594 = vmatprep.subr.bf16.mxu0 %v4125_v58  ;;  %3867 = vmatprep.subr.bf16.mxu1 %v4126_v1 }
 0x902   :  { %2595 = vmatpush1.bf16.msra.mxu0 %v4123_v17  ;;  %3868 = vmatpush3.bf16.msra.mxu1 %v4126_v1 }
 0x903   :  { %2596 = vmatprep.subr.bf16.mxu0 %v4129_v23  ;;  %3869 = vmatprep.subr.bf16.mxu1 %v4130_v16  ;;  %v5512_v23 = vld [vmem:[%s5729_s10 + $0x6] sm:$0x7]  ;;  %s4614_s10 = smov [#allocation14]  }
 0x904   :  { %s3284_s13 = sshll.u32 %s4614_s10, 4  ;;  %s3285_s13 = int_to_ptr.vmem [resolvable:$true] %s3284_s13 }
 0x905   :  { %s4567_s9 = scalar_lea.vmem %s3285_s13, 1024  ;;  %p4572_p8 = scmp.lt.s32.totalorder %s3285_s13, %s3285_s13 }
 0x906   :  { %2597 = vmatpush1.bf16.msra.mxu0 %v4127_v20  ;;  %3870 = vmatpush3.bf16.msra.mxu1 %v4130_v16  ;;  %v5762_v20 = vld [vmem:[#allocation20_spill] sm:$0xff]  ;;  %p4568_p7 = scmp.ne.s32.totalorder %s3285_s13, %s4567_s9  ;;  %p4573_p9 = scmp.lt.s32.totalorder %s4567_s9, %s4567_s9 }
 0x907   :  { %2598 = vmatprep.subr.bf16.mxu0 %v4133_v42  ;;  %3871 = vmatprep.subr.bf16.mxu1 %v4134_v7  ;;  %v5516_v24 = vrot.slane %v5512_v23, %v5762_v20 }
 0x908   :  { %p4574_p10 = por %p4573_p9, %p4572_p8 }
 0x90a   :  { %2599 = vmatpush1.bf16.msra.mxu0 %v4131_v11  ;;  %3872 = vmatpush3.bf16.msra.mxu1 %v4134_v7  ;;  %p4575_p11 = pnand %p4574_p10, %p4568_p7 }
 0x90b   :  { %3881 = vmatprep.subr.bf16.mxu1 %v5747_v39  ;;  %2885 = vmatprep.subr.bf16.mxu0 %v5420_v61 }
 0x90d   :  { %2617 = vmatmul.mubr.bf16.vlgmr.msra.gmra.mxu0 %v5267_v45  ;;  %3874 = vmatmul.mubr.bf16.vlgmr.msra.gmra.mxu1 %v5348_v9  ;;  %v5429_v45 = vld [vmem:[#allocation11 + $0x214] ss:$12 sps:$4 sm:$0xff]  }
 0x90e   :  { %3877 = vmatprep.mubr.bf16.mxu1 %v2239_v5  ;;  %2626 = vmatprep.mubr.bf16.mxu0 %v5748_v0 }
 0x90f   :  { %2886 = vmatpush1.bf16.msra.mxu0 %v5422_v43  ;;  %3882 = vmatpush3.bf16.msra.mxu1 %v5424_v44 }
 0x910   :  { %3883 = vmatprep.subr.bf16.mxu1 %v5747_v39  ;;  %2887 = vmatprep.subr.bf16.mxu0 %v5429_v45 }
 0x913   :  { %3884 = vmatpush3.bf16.msra.mxu1 %v5434_v57 }
 0x914   :  { %3885 = vmatprep.subr.bf16.mxu1 %v5747_v39 }
 0x915   :  { %2627 = vmatmul.mubr.bf16.gmra.mxu0 %v5348_v9  ;;  %v5432_v9 = vld [vmem:[#allocation11 + $0x210] ss:$12 sps:$4 sm:$0xff]  }
 0x916   :  { %2636 = vmatprep.mubr.bf16.mxu0 %v5748_v0  ;;  %2888 = vmatpush1.bf16.msra.mxu0 %v5432_v9 }
 0x917   :  { %2889 = vmatprep.subr.bf16.mxu0 %v5439_v62  ;;  %3886 = vmatpush3.bf16.msra.mxu1 %v5444_v40 }
 0x918   :  { %3887 = vmatprep.subr.bf16.mxu1 %v5747_v39 }
 0x91a   :  { %2890 = vmatpush1.bf16.msra.mxu0 %v5442_v19 }
 0x91b   :  { %2891 = vmatprep.subr.bf16.mxu0 %v5449_v63  ;;  %3888 = vmatpush3.bf16.msra.mxu1 %v5454_v15 }
 0x91c   :  { %3889 = vmatprep.subr.bf16.mxu1 %v5747_v39 }
 0x91d   :  { %2637 = vmatmul.mubr.bf16.gmra.mxu0 %v2239_v5 }
 0x91e   :  { %2646 = vmatprep.mubr.bf16.mxu0 %v5748_v0  ;;  %2892 = vmatpush1.bf16.msra.mxu0 %v5452_v37 }
 0x91f   :  { %2893 = vmatprep.subr.bf16.mxu0 %v5461_v30  ;;  %3890 = vmatpush3.bf16.msra.mxu1 %v5463_v32 }
 0x920   :  { %3891 = vmatprep.subr.bf16.mxu1 %v5747_v39 }
 0x922   :  { %2894 = vmatpush1.bf16.msra.mxu0 %v5459_v28 }
 0x923   :  { %2895 = vmatprep.subr.bf16.mxu0 %v5466_v6  ;;  %3892 = vmatpush3.bf16.msra.mxu1 %v5473_v46 }
 0x924   :  { %3893 = vmatprep.subr.bf16.mxu1 %v5747_v39 }
 0x926   :  { %2896 = vmatpush1.bf16.msra.mxu0 %v5471_v36 }
 0x927   :  { %2897 = vmatprep.subr.bf16.mxu0 %v5477_v59  ;;  %3894 = vmatpush3.bf16.msra.mxu1 %v5483_v34 }
 0x928   :  { %3895 = vmatprep.subr.bf16.mxu1 %v5747_v39 }
 0x92a   :  { %2898 = vmatpush1.bf16.msra.mxu0 %v5481_v31 }
 0x92b   :  { %2899 = vmatprep.subr.bf16.mxu0 %v5487_v51  ;;  %3896 = vmatpush3.bf16.msra.mxu1 %v5493_v12 }
 0x92c   :  { %3901 = vmatprep.subr.bf16.mxu1 %v5747_v39 }
 0x92e   :  { %2900 = vmatpush1.bf16.msra.mxu0 %v5491_v56 }
 0x92f   :  { %3014 = vmatprep.subr.bf16.mxu0 %v5420_v61 }
 0x9ad   :  { %v2274_v48 = vpop.f32.mrf.mxu0  ;;  %v2317_v38 = vpop.f32.mrf.mxu1 }
 0x9ae   :  { %v2324_v22 = vadd.f32 %v2274_v48, %v1746_v47  ;;  %v2352_v47 = vadd.f32 %v2317_v38, %v5244_v35 }
 0x9af   :  { %v2276_v41 = vpop.f32.mrf.mxu0  ;;  %v3855_v53 = vpop.f32.mrf.mxu1 }
 0x9b0   :  { %v3445_v5 = vmul.f32 -1.442695, %v2324_v22  ;;  %v2338_v8 = vadd.f32 %v2276_v41, %v1748_v54  ;;  %v5763_v41 = vld [vmem:[#allocation22_spill] sm:$0xff] }
 0x9b1   :  { %v2278_v50 = vpop.f32.mrf.mxu0  ;;  %v2320_v52 = vpop.f32.mrf.mxu1  ;;  %v5522_v53 = vrot.slane %v5512_v23, %v5763_v41 }
 0x9b2   :  { %4327 = vpow2.f32 %v3445_v5  ;;  %v2325_v55 = vadd.f32 %v2278_v50, %v1750_v33  ;;  %v3447_v25 = vmul.f32 -1.442695, %v2338_v8  ;;  %v5764_v50 = vld [vmem:[#allocation25_spill] sm:$0xff] }
 0x9b3   :  { %v3856_v10 = vpop.f32.mrf.mxu1  ;;  %v2280_v4 = vpop.f32.mrf.mxu0  ;;  %v1813_v18 = vadd.f32 %v5764_v50, %v5253_v14 }
 0x9b4   :  { %v3446_v29 = vmul.f32 -1.442695, %v2325_v55  ;;  %v2339_v13 = vadd.f32 %v2280_v4, %v1752_v49  ;;  %v5765_v4 = vld [vmem:[#allocation24_spill] sm:$0xff] }
 0x9b5   :  { %v1816_v26 = vadd.f32 %v5765_v4, %v5253_v14  ;;  %v5766_v4 = vld [vmem:[#allocation21_spill] sm:$0xff] }
 0x9b6   :  { %4329 = vpow2.f32 %v3446_v29  ;;  %v3448_v58 = vmul.f32 -1.442695, %v2339_v13  ;;  %v2353_v29 = vadd.f32 %v2320_v52, %v5257_v3 }
 0x9b7   :  { %4331 = vpow2.f32 %v3447_v25 }
 0x9b8   :  { %4333 = vpow2.f32 %v3448_v58 }
 0x9bf   :  { %v4328_v60 = vpop.eup %4327 }
 0x9c0   :  { %v2332_v2 = vadd.f32 1.0, %v4328_v60 }
 0x9c2   :  { %4335 = vrcp.f32 %v2332_v2 }
 0x9c3   :  { %v4330_v1 = vpop.eup %4329 }
 0x9c4   :  { %v2333_v17 = vadd.f32 1.0, %v4330_v1  ;;  %v4332_v16 = vpop.eup %4331 }
 0x9c5   :  { %v4334_v42 = vpop.eup %4333  ;;  %v2346_v7 = vadd.f32 1.0, %v4332_v16 }
 0x9c6   :  { %4337 = vrcp.f32 %v2333_v17  ;;  %v2347_v33 = vadd.f32 1.0, %v4334_v42 }
 0x9c7   :  { %4339 = vrcp.f32 %v2346_v7 }
 0x9cd   :  { %v2618_v11 = vpop.f32.mrf.mxu0 }
 0x9ce   :  { %v2619_v48 = vadd.f32 %v2618_v11, %v5516_v24 }
 0x9cf   :  { %v4336_v22 = vpop.eup %4335  ;;  %v2620_v5 = vpop.f32.mrf.mxu0 }
 0x9d0   :  { %v2354_v54 = vmul.f32 %v4336_v22, %v2352_v47  ;;  %v3474_v55 = vmul.f32 -1.442695, %v2619_v48  ;;  %v2621_v13 = vadd.f32 %v2620_v5, %v5522_v53  ;;  %v5533_v5 = vpop.f32.mrf.mxu1 }
 0x9d1   :  { %v2622_v10 = vpop.f32.mrf.mxu0 }
 0x9d2   :  { %v2356_v8 = vadd.f32 %v2354_v54, %v1813_v18  ;;  %4341 = vpow2.f32 %v3474_v55  ;;  %v2623_v35 = vadd.f32 %v2622_v10, %v5516_v24  ;;  %v3476_v3 = vmul.f32 -1.442695, %v2621_v13  ;;  %v2691_v10 = vpop.f32.mrf.mxu1 }
 0x9d3   :  { %v4338_v38 = vpop.eup %4337  ;;  %4343 = vrcp.f32 %v2347_v33  ;;  %v2624_v58 = vpop.f32.mrf.mxu0 }
 0x9d4   :  { %4345 = vtanh.f32 %v2356_v8  ;;  %v2355_v49 = vmul.f32 %v4338_v38, %v2353_v29  ;;  %v3475_v25 = vmul.f32 -1.442695, %v2623_v35  ;;  %v2625_v2 = vadd.f32 %v2624_v58, %v5522_v53  ;;  %v4340_v1 = vpop.eup %4339  ;;  %v5538_v38 = vpop.f32.mrf.mxu1  ;;  %v5549_v58 = vld [vmem:[#allocation13 + $0x28] sm:$0xff] }
 0x9d5   :  { %v2360_v20 = vsub.f32 1.0, %v4340_v1  ;;  %v2364_v11 = vmul.f32 %v4340_v1, %v5403_v21  ;;  %v5536_v21 = vld [vmem:[#allocation13 + $0x20] sm:$0xff] }
 0x9d6   :  { %v2357_v60 = vadd.f32 %v2355_v49, %v1816_v26  ;;  %4347 = vpow2.f32 %v3475_v25  ;;  %v3477_v52 = vmul.f32 -1.442695, %v2625_v2 }
 0x9d8   :  { %4349 = vtanh.f32 %v2357_v60  ;;  %v2694_v60 = vpop.f32.mrf.mxu1 }
 0x9d9   :  { %4351 = vpow2.f32 %v3476_v3 }
 0x9da   :  { %4353 = vpow2.f32 %v3477_v52 }
 0x9df   :  { %v4342_v17 = vpop.eup %4341 }
 0x9e0   :  { %v4344_v16 = vpop.eup %4343  ;;  %v2728_v14 = vadd.f32 1.0, %v4342_v17 }
 0x9e1   :  { %v4346_v42 = vpop.eup %4345  ;;  %v2361_v22 = vsub.f32 1.0, %v4344_v16  ;;  %v2365_v18 = vmul.f32 %v4344_v16, %v5406_v27  ;;  %v5545_v27 = vrot.slane %v5512_v23, %v5766_v4 }
 0x9e2   :  { %4355 = vrcp.f32 %v2728_v14  ;;  %v2362_v7 = vmul.f32 %v4346_v42, %v2360_v20 }
 0x9e3   :  { %v4348_v47 = vpop.eup %4347  ;;  %v2692_v13 = vadd.f32 %v2691_v10, %v5545_v27  ;;  %v2695_v52 = vadd.f32 %v2694_v60, %v5545_v27 }
 0x9e4   :  { %v2729_v48 = vadd.f32 1.0, %v4348_v47  ;;  %v2366_v41 = vadd.f32 %v2364_v11, %v2362_v7 }
 0x9e5   :  { %v4350_v33 = vpop.eup %4349 }
 0x9e6   :  { %4357 = vrcp.f32 %v2729_v48  ;;  %v2363_v50 = vmul.f32 %v4350_v33, %v2361_v22  ;;  %v4352_v55 = vpop.eup %4351  ;;  %v2628_v22 = vpop.f32.mrf.mxu0 }
 0x9e7   :  { %v4354_v29 = vpop.eup %4353  ;;  %v2740_v35 = vadd.f32 1.0, %v4352_v55 }
 0x9e8   :  { %v2367_v54 = vadd.f32 %v2365_v18, %v2363_v50  ;;  %v2741_v49 = vadd.f32 1.0, %v4354_v29 }
 0x9e9   :  { %4359 = vrcp.f32 %v2740_v35 }
 0x9ea   :  { %v2439_v8 = vpack.c.bf16 %v2367_v54, %v2366_v41  ;;  %4361 = vrcp.f32 %v2741_v49  ;;  %v2630_v41 = vpop.f32.mrf.mxu0 }
 0x9ec   :  { %2647 = vmatmul.mubr.bf16.gmra.mxu0 %v2439_v8  ;;  %3878 = vmatmul.mubr.bf16.gmra.mxu1 %v2439_v8  ;;  %v2632_v33 = vpop.f32.mrf.mxu0 }
 0x9ed   :  { %2917 = vmatprep.mubr.bf16.mxu0 %v5748_v0  ;;  %3897 = vmatprep.mubr.msk.bf16.mxu1 %vm4611_vm0, %v5747_v39 }
 0x9ee   :  { %v2634_v50 = vpop.f32.mrf.mxu0 }
 0x9ef   :  { %v4356_v26 = vpop.eup %4355 }
 0x9f0   :  { %v2746_v25 = vmul.f32 %v4356_v26, %v5536_v21  ;;  %v5596_v18 = vpop.f32.mrf.mxu0 }
 0x9f2   :  { %v2748_v2 = vadd.f32 %v2746_v25, %v2692_v13  ;;  %v5598_v54 = vpop.f32.mrf.mxu0  ;;  %v2629_v25 = vadd.f32 %v2628_v22, %v5516_v24  ;;  %v2635_v22 = vadd.f32 %v2634_v50, %v5522_v53  ;;  %v2700_v50 = vadd.f32 %v5533_v5, %v5545_v27 }
 0x9f3   :  { %v4358_v3 = vpop.eup %4357 }
 0x9f4   :  { %4363 = vtanh.f32 %v2748_v2  ;;  %v2747_v1 = vmul.f32 %v4358_v3, %v5549_v58  ;;  %v5600_v55 = vpop.f32.mrf.mxu0 }
 0x9f6   :  { %v2749_v23 = vadd.f32 %v2747_v1, %v2695_v52  ;;  %v4360_v17 = vpop.eup %4359  ;;  %v5602_v10 = vpop.f32.mrf.mxu0 }
 0x9f7   :  { %v4362_v16 = vpop.eup %4361  ;;  %v2752_v14 = vsub.f32 1.0, %v4360_v17 }
 0x9f8   :  { %4365 = vtanh.f32 %v2749_v23  ;;  %v2753_v7 = vsub.f32 1.0, %v4362_v16  ;;  %v2633_v23 = vadd.f32 %v2632_v33, %v5516_v24 }
 0xa01   :  { %v4364_v20 = vpop.eup %4363 }
 0xa02   :  { %v5553_v42 = vmul.f32 %v4364_v20, %v2752_v14  ;;  %v2631_v20 = vadd.f32 %v2630_v41, %v5522_v53 }
 0xa04   :  { %3271 = vst [vmem:[#allocation14] sm:$0xff] %v5553_v42 }
 0xa05   :  { %v4366_v11 = vpop.eup %4365 }
 0xa06   :  { %v5556_v47 = vmul.f32 %v4366_v11, %v2753_v7 }
 0xa08   :  { %v2756_v48 = vpack.c.bf16 %v5556_v47, %v5553_v42  ;;  %3272 = vst [vmem:[#allocation14 + $0x8] sm:$0xff] %v5556_v47 }
 0xa0a   :  { %2918 = vmatmul.mubr.bf16.vlgmr.msra.gmra.mxu0 %v2756_v48  ;;  %3898 = vmatmul.mubr.bf16.vlgmr.msra.gmra.mxu1 %v2756_v48 }
 0xa0b   :  { %3015 = vmatpush1.bf16.msra.mxu0 %v5422_v43  ;;  %3902 = vmatpush3.bf16.msra.mxu1 %v5424_v44 }
 0xa0c   :  { %3016 = vmatprep.subr.bf16.mxu0 %v5429_v45  ;;  %3903 = vmatprep.subr.bf16.mxu1 %v5747_v39 }
 0xa0d   :  { %3046 = vmatprep.mubr.bf16.mxu0 %v5748_v0  ;;  %3917 = vmatprep.mubr.msk.bf16.mxu1 %vm4611_vm0, %v5747_v39 }
 0xa0f   :  { %3017 = vmatpush1.bf16.msra.mxu0 %v5432_v9  ;;  %3904 = vmatpush3.bf16.msra.mxu1 %v5434_v57 }
 0xa10   :  { %3018 = vmatprep.subr.bf16.mxu0 %v5439_v62  ;;  %3905 = vmatprep.subr.bf16.mxu1 %v5747_v39 }
 0xa13   :  { %3019 = vmatpush1.bf16.msra.mxu0 %v5442_v19  ;;  %3906 = vmatpush3.bf16.msra.mxu1 %v5444_v40 }
 0xa14   :  { %3020 = vmatprep.subr.bf16.mxu0 %v5449_v63  ;;  %3907 = vmatprep.subr.bf16.mxu1 %v5747_v39 }
 0xa17   :  { %3021 = vmatpush1.bf16.msra.mxu0 %v5452_v37  ;;  %3908 = vmatpush3.bf16.msra.mxu1 %v5454_v15 }
 0xa18   :  { %3022 = vmatprep.subr.bf16.mxu0 %v5461_v30  ;;  %3909 = vmatprep.subr.bf16.mxu1 %v5747_v39 }
 0xa1b   :  { %3023 = vmatpush1.bf16.msra.mxu0 %v5459_v28  ;;  %3910 = vmatpush3.bf16.msra.mxu1 %v5463_v32 }
 0xa1c   :  { %3024 = vmatprep.subr.bf16.mxu0 %v5466_v6  ;;  %3911 = vmatprep.subr.bf16.mxu1 %v5747_v39 }
 0xa1f   :  { %3025 = vmatpush1.bf16.msra.mxu0 %v5471_v36  ;;  %3912 = vmatpush3.bf16.msra.mxu1 %v5473_v46 }
 0xa20   :  { %3026 = vmatprep.subr.bf16.mxu0 %v5477_v59  ;;  %3913 = vmatprep.subr.bf16.mxu1 %v5747_v39 }
 0xa23   :  { %3027 = vmatpush1.bf16.msra.mxu0 %v5481_v31  ;;  %3914 = vmatpush3.bf16.msra.mxu1 %v5483_v34 }
 0xa24   :  { %3028 = vmatprep.subr.bf16.mxu0 %v5487_v51  ;;  %3915 = vmatprep.subr.bf16.mxu1 %v5747_v39 }
 0xa27   :  { %3029 = vmatpush1.bf16.msra.mxu0 %v5491_v56  ;;  %3916 = vmatpush3.bf16.msra.mxu1 %v5493_v12 }
 0xa28   :  { %3143 = vmatprep.subr.bf16.mxu0 %v5420_v61  ;;  %3921 = vmatprep.subr.bf16.mxu1 %v5747_v39 }
 0xaac   :  { %v5604_v8 = vpop.f32.mrf.mxu0  ;;  %v5606_v29 = vpop.f32.mrf.mxu1 }
 0xaad   :  { %5767 = vst [vmem:[#allocation23_spill] sm:$0xff] %v5606_v29 }
 0xaae   :  { %v5608_v35 = vpop.f32.mrf.mxu0  ;;  %v5610_v61 = vpop.f32.mrf.mxu1 }
 0xaaf   :  { %5768 = vst [vmem:[#allocation26_spill] sm:$0xff] %v5608_v35 }
 0xab0   :  { %v5612_v4 = vpop.f32.mrf.mxu0  ;;  %v5614_v26 = vpop.f32.mrf.mxu1 }
 0xab1   :  { %5769 = vst [vmem:[#allocation20_spill] sm:$0xff] %v5614_v26 }
 0xab2   :  { %v5616_v49 = vpop.f32.mrf.mxu0  ;;  %v5618_v13 = vpop.f32.mrf.mxu1 }
 0xab3   :  { %5770 = vst [vmem:[#allocation22_spill] sm:$0xff] %v5616_v49 }
 0xaca   :  { %v2919_v60 = vpop.f32.mrf.mxu0  ;;  %v2962_v2 = vpop.f32.mrf.mxu1 }
 0xacb   :  { %v2969_v3 = vadd.f32 %v2919_v60, %v2629_v25 }
 0xacc   :  { %v2921_v52 = vpop.f32.mrf.mxu0  ;;  %v3899_v1 = vpop.f32.mrf.mxu1 }
 0xacd   :  { %v3502_v17 = vmul.f32 -1.442695, %v2969_v3  ;;  %v2983_v48 = vadd.f32 %v2921_v52, %v2631_v20  ;;  %v2997_v52 = vadd.f32 %v2962_v2, %v5536_v21 }
 0xace   :  { %v2923_v16 = vpop.f32.mrf.mxu0  ;;  %v2965_v14 = vpop.f32.mrf.mxu1 }
 0xacf   :  { %4367 = vpow2.f32 %v3502_v17  ;;  %v2970_v7 = vadd.f32 %v2923_v16, %v2633_v23  ;;  %v3504_v25 = vmul.f32 -1.442695, %v2983_v48 }
 0xad0   :  { %v3900_v11 = vpop.f32.mrf.mxu1  ;;  %v2925_v29 = vpop.f32.mrf.mxu0 }
 0xad1   :  { %v3503_v26 = vmul.f32 -1.442695, %v2970_v7  ;;  %v2984_v49 = vadd.f32 %v2925_v29, %v2635_v22 }
 0xad3   :  { %4369 = vpow2.f32 %v3503_v26  ;;  %v3505_v60 = vmul.f32 -1.442695, %v2984_v49  ;;  %v2998_v49 = vadd.f32 %v2965_v14, %v5549_v58 }
 0xad4   :  { %4371 = vpow2.f32 %v3504_v25 }
 0xad5   :  { %4373 = vpow2.f32 %v3505_v60 }
 0xadc   :  { %v4368_v1 = vpop.eup %4367 }
 0xadd   :  { %v2977_v33 = vadd.f32 1.0, %v4368_v1 }
 0xadf   :  { %4375 = vrcp.f32 %v2977_v33 }
 0xae0   :  { %v4370_v3 = vpop.eup %4369 }
 0xae1   :  { %v2978_v35 = vadd.f32 1.0, %v4370_v3  ;;  %v4372_v41 = vpop.eup %4371 }
 0xae2   :  { %v4374_v23 = vpop.eup %4373  ;;  %v2991_v17 = vadd.f32 1.0, %v4372_v41 }
 0xae3   :  { %4377 = vrcp.f32 %v2978_v35  ;;  %v2992_v20 = vadd.f32 1.0, %v4374_v23  ;;  %v2703_v35 = vadd.f32 %v5538_v38, %v5545_v27 }
 0xae4   :  { %4379 = vrcp.f32 %v2991_v17 }
 0xae5   :  { %4381 = vrcp.f32 %v2992_v20 }
 0xaec   :  { %v4376_v16 = vpop.eup %4375 }
 0xaed   :  { %v2999_v29 = vmul.f32 %v4376_v16, %v2997_v52 }
 0xaef   :  { %v3001_v26 = vadd.f32 %v2999_v29, %v2700_v50  ;;  %v2711_v29 = vadd.f32 %v5618_v13, %v5545_v27 }
 0xaf0   :  { %v4378_v7 = vpop.eup %4377 }
 0xaf1   :  { %4383 = vtanh.f32 %v3001_v26  ;;  %v3000_v11 = vmul.f32 %v4378_v7, %v2998_v49  ;;  %v4380_v2 = vpop.eup %4379 }
 0xaf2   :  { %v4382_v22 = vpop.eup %4381  ;;  %v3005_v25 = vsub.f32 1.0, %v4380_v2  ;;  %v3009_v5 = vmul.f32 %v4380_v2, %v5553_v42 }
 0xaf3   :  { %v3002_v48 = vadd.f32 %v3000_v11, %v2703_v35  ;;  %v3006_v33 = vsub.f32 1.0, %v4382_v22  ;;  %v3010_v23 = vmul.f32 %v4382_v22, %v5556_v47 }
 0xaf5   :  { %4385 = vtanh.f32 %v3002_v48 }
 0xafe   :  { %v4384_v60 = vpop.eup %4383 }
 0xaff   :  { %v3007_v1 = vmul.f32 %v4384_v60, %v3005_v25 }
 0xb01   :  { %v5631_v3 = vadd.f32 %v3009_v5, %v3007_v1 }
 0xb02   :  { %v4386_v14 = vpop.eup %4385 }
 0xb03   :  { %v3008_v41 = vmul.f32 %v4386_v14, %v3006_v33  ;;  %3273 = vst [vmem:[#allocation14 + $0x10] sm:$0xff] %v5631_v3 }
 0xb05   :  { %v5635_v38 = vadd.f32 %v3010_v23, %v3008_v41 }
 0xb07   :  { %v3013_v17 = vpack.c.bf16 %v5635_v38, %v5631_v3  ;;  %3274 = vst [vmem:[#allocation14 + $0x18] sm:$0xff] %v5635_v38 }
 0xb09   :  { %3047 = vmatmul.mubr.bf16.vlgmr.msra.gmra.mxu0 %v3013_v17  ;;  %3918 = vmatmul.mubr.bf16.vlgmr.msra.gmra.mxu1 %v3013_v17 }
 0xb0a   :  { %3144 = vmatpush1.bf16.msra.mxu0 %v5422_v43  ;;  %3922 = vmatpush3.bf16.msra.mxu1 %v5424_v44 }
 0xb0b   :  { %3145 = vmatprep.subr.bf16.mxu0 %v5429_v45  ;;  %3923 = vmatprep.subr.bf16.mxu1 %v5747_v39 }
 0xb0c   :  { %3175 = vmatprep.mubr.bf16.mxu0 %v5748_v0  ;;  %3937 = vmatprep.mubr.msk.bf16.mxu1 %vm4611_vm0, %v5747_v39  ;;  %v2639_v0 = vadd.f32 %v5596_v18, %v5516_v24 }
 0xb0e   :  { %3146 = vmatpush1.bf16.msra.mxu0 %v5432_v9  ;;  %3924 = vmatpush3.bf16.msra.mxu1 %v5434_v57 }
 0xb0f   :  { %3147 = vmatprep.subr.bf16.mxu0 %v5439_v62  ;;  %3925 = vmatprep.subr.bf16.mxu1 %v5747_v39  ;;  %v2643_v62 = vadd.f32 %v5600_v55, %v5516_v24 }
 0xb12   :  { %3148 = vmatpush1.bf16.msra.mxu0 %v5442_v19  ;;  %3926 = vmatpush3.bf16.msra.mxu1 %v5444_v40 }
 0xb13   :  { %3149 = vmatprep.subr.bf16.mxu0 %v5449_v63  ;;  %3927 = vmatprep.subr.bf16.mxu1 %v5747_v39 }
 0xb16   :  { %3150 = vmatpush1.bf16.msra.mxu0 %v5452_v37  ;;  %3928 = vmatpush3.bf16.msra.mxu1 %v5454_v15 }
 0xb17   :  { %3151 = vmatprep.subr.bf16.mxu0 %v5461_v30  ;;  %3929 = vmatprep.subr.bf16.mxu1 %v5747_v39 }
 0xb1a   :  { %3152 = vmatpush1.bf16.msra.mxu0 %v5459_v28  ;;  %3930 = vmatpush3.bf16.msra.mxu1 %v5463_v32 }
 0xb1b   :  { %3153 = vmatprep.subr.bf16.mxu0 %v5466_v6  ;;  %3931 = vmatprep.subr.bf16.mxu1 %v5747_v39  ;;  %v2645_v6 = vadd.f32 %v5602_v10, %v5522_v53  ;;  %v2708_v10 = vadd.f32 %v5610_v61, %v5545_v27 }
 0xb1e   :  { %3154 = vmatpush1.bf16.msra.mxu0 %v5471_v36  ;;  %3932 = vmatpush3.bf16.msra.mxu1 %v5473_v46 }
 0xb1f   :  { %3155 = vmatprep.subr.bf16.mxu0 %v5477_v59  ;;  %3933 = vmatprep.subr.bf16.mxu1 %v5747_v39 }
 0xb22   :  { %3156 = vmatpush1.bf16.msra.mxu0 %v5481_v31  ;;  %3934 = vmatpush3.bf16.msra.mxu1 %v5483_v34 }
 0xb23   :  { %3157 = vmatprep.subr.bf16.mxu0 %v5487_v51  ;;  %3935 = vmatprep.subr.bf16.mxu1 %v5747_v39  ;;  %v2641_v39 = vadd.f32 %v5598_v54, %v5522_v53 }
 0xb26   :  { %3158 = vmatpush1.bf16.msra.mxu0 %v5491_v56  ;;  %3936 = vmatpush3.bf16.msra.mxu1 %v5493_v12 }
 0xbc9   :  { %v3048_v43 = vpop.f32.mrf.mxu0  ;;  %v3091_v44 = vpop.f32.mrf.mxu1 }
 0xbca   :  { %v3098_v45 = vadd.f32 %v3048_v43, %v2639_v0  ;;  %v3126_v18 = vadd.f32 %v3091_v44, %v5536_v21 }
 0xbcb   :  { %v3050_v9 = vpop.f32.mrf.mxu0  ;;  %v3919_v57 = vpop.f32.mrf.mxu1 }
 0xbcc   :  { %v3506_v19 = vmul.f32 -1.442695, %v3098_v45  ;;  %v3112_v28 = vadd.f32 %v3050_v9, %v2641_v39  ;;  %v5771_v9 = vld [vmem:[#allocation26_spill] sm:$0xff] }
 0xbcd   :  { %v3052_v40 = vpop.f32.mrf.mxu0  ;;  %v3094_v63 = vpop.f32.mrf.mxu1  ;;  %v2651_v57 = vadd.f32 %v5771_v9, %v5522_v53  ;;  %v5772_v39 = vld [vmem:[#allocation22_spill] sm:$0xff] }
 0xbce   :  { %4387 = vpow2.f32 %v3506_v19  ;;  %v3099_v37 = vadd.f32 %v3052_v40, %v2643_v62  ;;  %v3508_v46 = vmul.f32 -1.442695, %v3112_v28  ;;  %v3127_v20 = vadd.f32 %v3094_v63, %v5549_v58 }
 0xbcf   :  { %v3920_v15 = vpop.f32.mrf.mxu1  ;;  %v3054_v32 = vpop.f32.mrf.mxu0 }
 0xbd0   :  { %v3507_v30 = vmul.f32 -1.442695, %v3099_v37  ;;  %v3113_v36 = vadd.f32 %v3054_v32, %v2645_v6  ;;  %v2655_v37 = vadd.f32 %v5772_v39, %v5522_v53  ;;  %v5773_v53 = vld [vmem:[#allocation23_spill] sm:$0xff] }
 0xbd2   :  { %4389 = vpow2.f32 %v3507_v30  ;;  %v3509_v59 = vmul.f32 -1.442695, %v3113_v36 }
 0xbd3   :  { %4391 = vpow2.f32 %v3508_v46 }
 0xbd4   :  { %4393 = vpow2.f32 %v3509_v59 }
 0xbdb   :  { %v4388_v31 = vpop.eup %4387 }
 0xbdc   :  { %v3106_v34 = vadd.f32 1.0, %v4388_v31 }
 0xbde   :  { %4395 = vrcp.f32 %v3106_v34 }
 0xbdf   :  { %v4390_v51 = vpop.eup %4389 }
 0xbe0   :  { %v3107_v56 = vadd.f32 1.0, %v4390_v51  ;;  %v4392_v12 = vpop.eup %4391 }
 0xbe1   :  { %v4394_v42 = vpop.eup %4393  ;;  %v3120_v47 = vadd.f32 1.0, %v4392_v12 }
 0xbe2   :  { %4397 = vrcp.f32 %v3107_v56  ;;  %v3121_v55 = vadd.f32 1.0, %v4394_v42  ;;  %v2716_v56 = vadd.f32 %v5773_v53, %v5545_v27 }
 0xbe3   :  { %4399 = vrcp.f32 %v3120_v47 }
 0xbe4   :  { %4401 = vrcp.f32 %v3121_v55 }
 0xbeb   :  { %v4396_v54 = vpop.eup %4395 }
 0xbec   :  { %v3128_v52 = vmul.f32 %v4396_v54, %v3126_v18  ;;  %v5774_v54 = vld [vmem:[#allocation20_spill] sm:$0xff] }
 0xbed   :  { %v2719_v55 = vadd.f32 %v5774_v54, %v5545_v27 }
 0xbee   :  { %v3130_v16 = vadd.f32 %v3128_v52, %v2708_v10 }
 0xbef   :  { %v4398_v50 = vpop.eup %4397 }
 0xbf0   :  { %4403 = vtanh.f32 %v3130_v16  ;;  %v3129_v26 = vmul.f32 %v4398_v50, %v3127_v20  ;;  %v4400_v7 = vpop.eup %4399 }
 0xbf1   :  { %v4402_v35 = vpop.eup %4401  ;;  %v3134_v11 = vsub.f32 1.0, %v4400_v7  ;;  %v3138_v61 = vmul.f32 %v4400_v7, %v5631_v3  ;;  %v2649_v3 = vadd.f32 %v5604_v8, %v5516_v24 }
 0xbf2   :  { %v3131_v49 = vadd.f32 %v3129_v26, %v2711_v29  ;;  %v3135_v22 = vsub.f32 1.0, %v4402_v35  ;;  %v3139_v5 = vmul.f32 %v4402_v35, %v5635_v38  ;;  %v2653_v38 = vadd.f32 %v5612_v4, %v5516_v24 }
 0xbf4   :  { %4405 = vtanh.f32 %v3131_v49 }
 0xbfd   :  { %v4404_v48 = vpop.eup %4403 }
 0xbfe   :  { %v3136_v2 = vmul.f32 %v4404_v48, %v3134_v11 }
 0xc00   :  { %v5688_v25 = vadd.f32 %v3138_v61, %v3136_v2 }
 0xc01   :  { %v4406_v60 = vpop.eup %4405 }
 0xc02   :  { %v3137_v1 = vmul.f32 %v4406_v60, %v3135_v22  ;;  %3275 = vst [vmem:[#allocation14 + $0x20] sm:$0xff] %v5688_v25 }
 0xc04   :  { %v5692_v13 = vadd.f32 %v3139_v5, %v3137_v1 }
 0xc06   :  { %v3142_v33 = vpack.c.bf16 %v5692_v13, %v5688_v25  ;;  %3276 = vst [vmem:[#allocation14 + $0x28] sm:$0xff] %v5692_v13 }
 0xc08   :  { %3176 = vmatmul.mubr.bf16.vlgmr.msra.gmra.mxu0 %v3142_v33  ;;  %3938 = vmatmul.mubr.bf16.vlgmr.msra.gmra.mxu1 %v3142_v33 }
 0xcc8   :  { %v3177_v14 = vpop.f32.mrf.mxu0  ;;  %v3220_v41 = vpop.f32.mrf.mxu1 }
 0xcc9   :  { %v3227_v23 = vadd.f32 %v3177_v14, %v2649_v3  ;;  %v3255_v31 = vadd.f32 %v3220_v41, %v5536_v21 }
 0xcca   :  { %v3179_v17 = vpop.f32.mrf.mxu0  ;;  %v3939_v0 = vpop.f32.mrf.mxu1 }
 0xccb   :  { %v3510_v43 = vmul.f32 -1.442695, %v3227_v23  ;;  %v3241_v40 = vadd.f32 %v3179_v17, %v2651_v57 }
 0xccc   :  { %v3181_v44 = vpop.f32.mrf.mxu0  ;;  %v3223_v45 = vpop.f32.mrf.mxu1 }
 0xccd   :  { %4407 = vpow2.f32 %v3510_v43  ;;  %v3228_v62 = vadd.f32 %v3181_v44, %v2653_v38  ;;  %v3512_v28 = vmul.f32 -1.442695, %v3241_v40  ;;  %v3256_v47 = vadd.f32 %v3223_v45, %v5549_v58 }
 0xcce   :  { %v3940_v19 = vpop.f32.mrf.mxu1  ;;  %v3183_v8 = vpop.f32.mrf.mxu0 }
 0xccf   :  { %v3511_v63 = vmul.f32 -1.442695, %v3228_v62  ;;  %v3242_v15 = vadd.f32 %v3183_v8, %v2655_v37 }
 0xcd1   :  { %4409 = vpow2.f32 %v3511_v63  ;;  %v3513_v30 = vmul.f32 -1.442695, %v3242_v15 }
 0xcd2   :  { %4411 = vpow2.f32 %v3512_v28 }
 0xcd3   :  { %4413 = vpow2.f32 %v3513_v30 }
 0xcda   :  { %v4408_v24 = vpop.eup %4407 }
 0xcdb   :  { %v3235_v4 = vadd.f32 1.0, %v4408_v24 }
 0xcdd   :  { %4415 = vrcp.f32 %v3235_v4 }
 0xcde   :  { %v4410_v32 = vpop.eup %4409 }
 0xcdf   :  { %v3236_v6 = vadd.f32 1.0, %v4410_v32  ;;  %v4412_v36 = vpop.eup %4411 }
 0xce0   :  { %v4414_v46 = vpop.eup %4413  ;;  %v3249_v59 = vadd.f32 1.0, %v4412_v36 }
 0xce1   :  { %4417 = vrcp.f32 %v3236_v6  ;;  %v3250_v51 = vadd.f32 1.0, %v4414_v46 }
 0xce2   :  { %4419 = vrcp.f32 %v3249_v59 }
 0xce3   :  { %4421 = vrcp.f32 %v3250_v51 }
 0xcea   :  { %v4416_v34 = vpop.eup %4415 }
 0xceb   :  { %v3257_v12 = vmul.f32 %v4416_v34, %v3255_v31 }
 0xced   :  { %v3259_v42 = vadd.f32 %v3257_v12, %v2716_v56 }
 0xcee   :  { %v4418_v18 = vpop.eup %4417 }
 0xcef   :  { %4423 = vtanh.f32 %v3259_v42  ;;  %v3258_v10 = vmul.f32 %v4418_v18, %v3256_v47  ;;  %v4420_v21 = vpop.eup %4419 }
 0xcf0   :  { %v4422_v16 = vpop.eup %4421  ;;  %v3263_v20 = vsub.f32 1.0, %v4420_v21  ;;  %v3267_v26 = vmul.f32 %v4420_v21, %v5688_v25 }
 0xcf1   :  { %v3260_v52 = vadd.f32 %v3258_v10, %v2719_v55  ;;  %v3264_v7 = vsub.f32 1.0, %v4422_v16  ;;  %v3268_v27 = vmul.f32 %v4422_v16, %v5692_v13 }
 0xcf3   :  { %4425 = vtanh.f32 %v3260_v52 }
 0xcfc   :  { %v4424_v50 = vpop.eup %4423 }
 0xcfd   :  { %v3265_v29 = vmul.f32 %v4424_v50, %v3263_v20 }
 0xcff   :  { %v3269_v49 = vadd.f32 %v3267_v26, %v3265_v29 }
 0xd00   :  { %v4426_v35 = vpop.eup %4425 }
 0xd01   :  { %3277 = vst [vmem:[#allocation14 + $0x30] sm:$0xff] %v3269_v49  ;;  %v3266_v58 = vmul.f32 %v4426_v35, %v3264_v7 }
 0xd03   :  { %v3270_v11 = vadd.f32 %v3268_v27, %v3266_v58 }
 0xd05   :  { %3278 = vst [vmem:[#allocation14 + $0x38] sm:$0xff] %v3270_v11 }
 0xd06   :  { %4578 = shalt.err (!%p4575_p11)
}
 0xd07   :  { %3290 = dma.vmem_to_hbm [thread:$0]  %s3285_s13, 1024, %s5731_s12, [#allocation4], %s4605_s23, %s4605_s23, %s4606_s24  }
 0xd08   :  { %4595 = dma.done.wait [#allocation4], 1024  }
 0xd09   :  { %4596 = vsyncadd [#allocation4], 4294966272 }
 0xd0a   :  { %3294 = vsyncpa [#allocation3], 1 }
 0xd0b   :  { %3295 = vsyncpa [#allocation6], 1 }
 0xd0c   :  { %3296 = vsyncpa [#allocation9], 1 }
 0xd0d   :  { %3297 = vsyncpa [#allocation12], 1 }
 0xd0e   :  { %3298 = vsyncpa [#allocation4], 1 }

</bundles_post_ra>
